<compile_context>
chip_gen: v7x
topology: tpu7x:2x2x1
jax: 0.10.0
libtpu: 0.0.40
codegen_flags: <defaults>
</compile_context>

<pallas_src>
import math

import jax
import jax.numpy as jnp
from jax.experimental import pallas as pl
from jax.experimental.pallas import tpu as pltpu  # noqa: F401  (TPU backend)

# ----- small hyperparameters consistent with the forward pass -----
BATCH = 2
SEQ_LEN = 8
IN_DIM = 4
D_MODEL = 32
N_HEADS = 4
D_K = D_MODEL // N_HEADS        # 8
D_FF = 64
N_LAYERS = 2
BP_HIDDEN = 64
BP_OUT = 1
LN_EPS = 1e-5


# ----------------------------- fused Pallas kernel ---------------------------

def _tpmodel_kernel(x_ref, emb_w_ref, emb_b_ref, pos_ref,
                    wqkv_ref, bqkv_ref, wo_ref, bo_ref,
                    w1_ref, b1_ref, w2_ref, b2_ref,
                    ln1_g_ref, ln1_b_ref, ln2_g_ref, ln2_b_ref,
                    bp_w1_ref, bp_b1_ref, bp_w2_ref, bp_b2_ref,
                    o_ref):
    f32 = jnp.float32
    scale = 1.0 / math.sqrt(D_K)

    def layer_norm(v, g, b):
        mean = jnp.mean(v, axis=-1, keepdims=True)
        var = jnp.mean(jnp.square(v - mean), axis=-1, keepdims=True)
        return (v - mean) * jax.lax.rsqrt(var + LN_EPS) * g + b

    # --- encoder: input projection + positional encoding (all in VMEM) ---
    x = jnp.dot(x_ref[...], emb_w_ref[...], preferred_element_type=f32)
    x = x + emb_b_ref[...] + pos_ref[...]               # (B*S, D_MODEL)

    # --- N encoder layers, fully unrolled; x never leaves VMEM ---
    for li in range(N_LAYERS):
        # fused Q|K|V projection: one (B*S, D) @ (D, 3D) MXU push
        qkv = jnp.dot(x, wqkv_ref[li], preferred_element_type=f32) + bqkv_ref[li]
        q = qkv[:, 0:D_MODEL]
        k = qkv[:, D_MODEL:2 * D_MODEL]
        v = qkv[:, 2 * D_MODEL:3 * D_MODEL]
        wo = wo_ref[li]                                  # (D, D)

        attn_blocks = []
        for b in range(BATCH):
            r0, r1 = b * SEQ_LEN, (b + 1) * SEQ_LEN
            acc_b = jnp.zeros((SEQ_LEN, D_MODEL), f32)
            for h in range(N_HEADS):
                c0, c1 = h * D_K, (h + 1) * D_K
                qh = q[r0:r1, c0:c1]                     # (S, D_K)
                kh = k[r0:r1, c0:c1]
                vh = v[r0:r1, c0:c1]
                s = jnp.dot(qh, kh.T, preferred_element_type=f32) * scale
                s = s - jnp.max(s, axis=-1, keepdims=True)
                p = jnp.exp(s)
                p = p * pl.reciprocal(jnp.sum(p, axis=-1, keepdims=True),
                                      approx=True)
                ctx = jnp.dot(p, vh, preferred_element_type=f32)     # (S, D_K)
                # fold the head straight into the output projection so the
                # narrow (S, D_K) context is never materialized/re-assembled.
                acc_b = acc_b + jnp.dot(ctx, wo[c0:c1, :],
                                        preferred_element_type=f32)
            attn_blocks.append(acc_b + bo_ref[li])
        attn = jnp.concatenate(attn_blocks, axis=0)      # (B*S, D_MODEL)
        x = layer_norm(attn + x, ln1_g_ref[li], ln1_b_ref[li])

        # position-wise FFN
        h1 = jnp.dot(x, w1_ref[li], preferred_element_type=f32) + b1_ref[li]
        h1 = jnp.maximum(h1, 0.0)
        ff = jnp.dot(h1, w2_ref[li], preferred_element_type=f32) + b2_ref[li]
        x = layer_norm(ff + x, ln2_g_ref[li], ln2_b_ref[li])

    # --- BP head: x.view(B, S*D) -> Linear -> ReLU -> Linear ---
    # flat[b] @ W1 == sum_s x[b, s, :] @ W1[s*D:(s+1)*D, :]  (avoids in-kernel reshape)
    for b in range(BATCH):
        acc = jnp.zeros((1, BP_HIDDEN), f32)
        for s in range(SEQ_LEN):
            r = b * SEQ_LEN + s
            acc = acc + jnp.dot(x[r:r + 1, :],
                                bp_w1_ref[s * D_MODEL:(s + 1) * D_MODEL, :],
                                preferred_element_type=f32)
        hb = jnp.maximum(acc + bp_b1_ref[...], 0.0)                  # (1, BP_HIDDEN)
        out_b = jnp.dot(hb, bp_w2_ref[...],
                        preferred_element_type=f32) + bp_b2_ref[...]  # (1, 1)
        o_ref[b:b + 1, :] = out_b.astype(o_ref.dtype)


# --------------------------- parameters (glue) ------------------------------

def _dense_init(key, fan_in, fan_out):
    k1, k2 = jax.random.split(key)
    lim = 1.0 / math.sqrt(fan_in)
    w = jax.random.uniform(k1, (fan_in, fan_out), jnp.float32, -lim, lim)
    b = jax.random.uniform(k2, (1, fan_out), jnp.float32, -lim, lim)
    return w, b


def _positional_encoding(seq_len, d_model):
    pos = jnp.arange(seq_len, dtype=jnp.float32)[:, None]
    i = jnp.arange(d_model // 2, dtype=jnp.float32)[None, :]
    angle = pos / jnp.power(10000.0, 2.0 * i / d_model)
    pe = jnp.zeros((seq_len, d_model), jnp.float32)
    pe = pe.at[:, 0::2].set(jnp.sin(angle))
    pe = pe.at[:, 1::2].set(jnp.cos(angle))
    return pe


def init_params(key):
    keys = jax.random.split(key, 2 + N_LAYERS)
    params = {}
    params["emb_w"], params["emb_b"] = _dense_init(keys[0], IN_DIM, D_MODEL)
    # positional encoding pre-tiled to (B*S, D) so the add is fused in-kernel
    params["pos"] = jnp.tile(_positional_encoding(SEQ_LEN, D_MODEL), (BATCH, 1))

    names = ["wqkv", "bqkv", "wo", "bo", "w1", "b1", "w2", "b2",
             "ln1_g", "ln1_b", "ln2_g", "ln2_b"]
    stacks = {n: [] for n in names}
    for li in range(N_LAYERS):
        lk = jax.random.split(keys[2 + li], 6)
        wq, bq = _dense_init(lk[0], D_MODEL, N_HEADS * D_K)
        wk, bk = _dense_init(lk[1], D_MODEL, N_HEADS * D_K)
        wv, bv = _dense_init(lk[2], D_MODEL, N_HEADS * D_K)
        wo, bo = _dense_init(lk[3], N_HEADS * D_K, D_MODEL)
        w1, b1 = _dense_init(lk[4], D_MODEL, D_FF)
        w2, b2 = _dense_init(lk[5], D_FF, D_MODEL)
        stacks["wqkv"].append(jnp.concatenate([wq, wk, wv], axis=1))   # (D, 3D)
        stacks["bqkv"].append(jnp.concatenate([bq, bk, bv], axis=1))   # (1, 3D)
        stacks["wo"].append(wo); stacks["bo"].append(bo)
        stacks["w1"].append(w1); stacks["b1"].append(b1)
        stacks["w2"].append(w2); stacks["b2"].append(b2)
        stacks["ln1_g"].append(jnp.ones((1, D_MODEL), jnp.float32))
        stacks["ln1_b"].append(jnp.zeros((1, D_MODEL), jnp.float32))
        stacks["ln2_g"].append(jnp.ones((1, D_MODEL), jnp.float32))
        stacks["ln2_b"].append(jnp.zeros((1, D_MODEL), jnp.float32))
    for n in names:
        params[n] = jnp.stack(stacks[n])                 # leading layer axis

    bk_ = jax.random.split(keys[1], 2)
    params["bp_w1"], params["bp_b1"] = _dense_init(bk_[0], SEQ_LEN * D_MODEL, BP_HIDDEN)
    params["bp_w2"], params["bp_b2"] = _dense_init(bk_[1], BP_HIDDEN, BP_OUT)
    return params


# ------------------------------ forward pass --------------------------------

@jax.jit
def tpmodel_forward(params, enc_inputs):
    """enc_inputs: (B, S, IN_DIM) -> (B, 1).  Entire model in one pallas_call."""
    B, S, _ = enc_inputs.shape
    x2d = enc_inputs.reshape(B * S, IN_DIM)              # free XLA reshape
    return pl.pallas_call(
        _tpmodel_kernel,
        out_shape=jax.ShapeDtypeStruct((B, BP_OUT), jnp.float32),
        # no grid, no BlockSpecs: every array (<100 KB total) is placed whole
        # in VMEM; single invocation on one TensorCore, no pipelining needed.
    )(
        x2d, params["emb_w"], params["emb_b"], params["pos"],
        params["wqkv"], params["bqkv"], params["wo"], params["bo"],
        params["w1"], params["b1"], params["w2"], params["b2"],
        params["ln1_g"], params["ln1_b"], params["ln2_g"], params["ln2_b"],
        params["bp_w1"], params["bp_b1"], params["bp_w2"], params["bp_b2"],
    )


if __name__ == "__main__":
    key = jax.random.PRNGKey(0)
    pkey, xkey = jax.random.split(key)
    params = init_params(pkey)
    enc_inputs = jax.random.normal(xkey, (BATCH, SEQ_LEN, IN_DIM), jnp.float32)

    out = tpmodel_forward(params, enc_inputs)
    jax.block_until_ready(out)
    assert out.shape == (BATCH, BP_OUT), out.shape
    assert bool(jnp.all(jnp.isfinite(out))), "non-finite output"
    print("KERNEL_OK")
</pallas_src>

<mosaic_0001>
module attributes {stable_mosaic.version = 11 : i64} {
  func.func @_tpmodel_kernel(%arg0: memref<16x4xf32, #tpu.memory_space<vmem>>, %arg1: memref<4x32xf32, #tpu.memory_space<vmem>>, %arg2: memref<1x32xf32, #tpu.memory_space<vmem>>, %arg3: memref<16x32xf32, #tpu.memory_space<vmem>>, %arg4: memref<2x32x96xf32, #tpu.memory_space<vmem>>, %arg5: memref<2x1x96xf32, #tpu.memory_space<vmem>>, %arg6: memref<2x32x32xf32, #tpu.memory_space<vmem>>, %arg7: memref<2x1x32xf32, #tpu.memory_space<vmem>>, %arg8: memref<2x32x64xf32, #tpu.memory_space<vmem>>, %arg9: memref<2x1x64xf32, #tpu.memory_space<vmem>>, %arg10: memref<2x64x32xf32, #tpu.memory_space<vmem>>, %arg11: memref<2x1x32xf32, #tpu.memory_space<vmem>>, %arg12: memref<2x1x32xf32, #tpu.memory_space<vmem>>, %arg13: memref<2x1x32xf32, #tpu.memory_space<vmem>>, %arg14: memref<2x1x32xf32, #tpu.memory_space<vmem>>, %arg15: memref<2x1x32xf32, #tpu.memory_space<vmem>>, %arg16: memref<256x64xf32, #tpu.memory_space<vmem>>, %arg17: memref<1x64xf32, #tpu.memory_space<vmem>>, %arg18: memref<64x1xf32, #tpu.memory_space<vmem>>, %arg19: memref<1x1xf32, #tpu.memory_space<vmem>>, %arg20: memref<2x1xf32, #tpu.memory_space<vmem>>) attributes {dimension_semantics = [], scalar_prefetch = 0 : i64, scratch_operands = 0 : i64, tpu.core_type = #tpu.core_type<tc>} {
    %c0 = arith.constant 0 : index
    %c0_0 = arith.constant 0 : index
    %0 = vector.load %arg0[%c0, %c0_0] : memref<16x4xf32, #tpu.memory_space<vmem>>, vector<16x4xf32>
    %c0_1 = arith.constant 0 : index
    %c0_2 = arith.constant 0 : index
    %1 = vector.load %arg1[%c0_1, %c0_2] : memref<4x32xf32, #tpu.memory_space<vmem>>, vector<4x32xf32>
    %cst = arith.constant dense<0.000000e+00> : vector<16x32xf32>
    %2 = tpu.matmul %0, %1, %cst {dimension_numbers = #tpu.dot_dimension_numbers<[1], [0], [0], [1], [0, 0, 1, 1], [], []>} : vector<16x4xf32>, vector<4x32xf32>, vector<16x32xf32> -> vector<16x32xf32>
    %c0_3 = arith.constant 0 : index
    %c0_4 = arith.constant 0 : index
    %3 = vector.load %arg2[%c0_3, %c0_4] : memref<1x32xf32, #tpu.memory_space<vmem>>, vector<1x32xf32>
    %4 = vector.broadcast %3 : vector<1x32xf32> to vector<16x32xf32>
    %5 = arith.addf %2, %4 : vector<16x32xf32>
    %c0_5 = arith.constant 0 : index
    %c0_6 = arith.constant 0 : index
    %6 = vector.load %arg3[%c0_5, %c0_6] : memref<16x32xf32, #tpu.memory_space<vmem>>, vector<16x32xf32>
    %7 = arith.addf %5, %6 : vector<16x32xf32>
    %c0_7 = arith.constant 0 : index
    %c0_8 = arith.constant 0 : index
    %c0_9 = arith.constant 0 : index
    %8 = vector.load %arg4[%c0_7, %c0_8, %c0_9] : memref<2x32x96xf32, #tpu.memory_space<vmem>>, vector<1x32x96xf32>
    %9 = vector.shape_cast %8 : vector<1x32x96xf32> to vector<32x96xf32>
    %cst_10 = arith.constant dense<0.000000e+00> : vector<16x96xf32>
    %10 = tpu.matmul %7, %9, %cst_10 {dimension_numbers = #tpu.dot_dimension_numbers<[1], [0], [0], [1], [0, 0, 1, 1], [], []>} : vector<16x32xf32>, vector<32x96xf32>, vector<16x96xf32> -> vector<16x96xf32>
    %c0_11 = arith.constant 0 : index
    %c0_12 = arith.constant 0 : index
    %c0_13 = arith.constant 0 : index
    %11 = vector.load %arg5[%c0_11, %c0_12, %c0_13] : memref<2x1x96xf32, #tpu.memory_space<vmem>>, vector<1x1x96xf32>
    %12 = vector.shape_cast %11 : vector<1x1x96xf32> to vector<1x96xf32>
    %13 = vector.broadcast %12 : vector<1x96xf32> to vector<16x96xf32>
    %14 = arith.addf %10, %13 : vector<16x96xf32>
    %15 = vector.extract_strided_slice %14 {offsets = [0, 0], sizes = [16, 32], strides = [1, 1]} : vector<16x96xf32> to vector<16x32xf32>
    %16 = vector.extract_strided_slice %14 {offsets = [0, 32], sizes = [16, 32], strides = [1, 1]} : vector<16x96xf32> to vector<16x32xf32>
    %17 = vector.extract_strided_slice %14 {offsets = [0, 64], sizes = [16, 32], strides = [1, 1]} : vector<16x96xf32> to vector<16x32xf32>
    %c0_14 = arith.constant 0 : index
    %c0_15 = arith.constant 0 : index
    %c0_16 = arith.constant 0 : index
    %18 = vector.load %arg6[%c0_14, %c0_15, %c0_16] : memref<2x32x32xf32, #tpu.memory_space<vmem>>, vector<1x32x32xf32>
    %19 = vector.shape_cast %18 : vector<1x32x32xf32> to vector<32x32xf32>
    %cst_17 = arith.constant 0.000000e+00 : f32
    %20 = vector.broadcast %cst_17 : f32 to vector<8x32xf32>
    %21 = vector.extract_strided_slice %15 {offsets = [0, 0], sizes = [8, 8], strides = [1, 1]} : vector<16x32xf32> to vector<8x8xf32>
    %22 = vector.extract_strided_slice %16 {offsets = [0, 0], sizes = [8, 8], strides = [1, 1]} : vector<16x32xf32> to vector<8x8xf32>
    %23 = vector.extract_strided_slice %17 {offsets = [0, 0], sizes = [8, 8], strides = [1, 1]} : vector<16x32xf32> to vector<8x8xf32>
    %24 = tpu.transpose %22, [1, 0] : vector<8x8xf32> -> vector<8x8xf32>
    %cst_18 = arith.constant dense<0.000000e+00> : vector<8x8xf32>
    %25 = tpu.matmul %21, %24, %cst_18 {dimension_numbers = #tpu.dot_dimension_numbers<[1], [0], [0], [1], [0, 0, 1, 1], [], []>} : vector<8x8xf32>, vector<8x8xf32>, vector<8x8xf32> -> vector<8x8xf32>
    %cst_19 = arith.constant 0.353553385 : f32
    %26 = vector.broadcast %cst_19 : f32 to vector<8x8xf32>
    %27 = arith.mulf %25, %26 : vector<8x8xf32>
    %cst_20 = arith.constant dense<0xFF800000> : vector<8xf32>
    %28 = vector.multi_reduction <maximumf>, %27, %cst_20 [1] : vector<8x8xf32> to vector<8xf32>
    %29 = vector.shape_cast %28 : vector<8xf32> to vector<8x1xf32>
    %30 = vector.broadcast %29 : vector<8x1xf32> to vector<8x8xf32>
    %31 = arith.subf %27, %30 : vector<8x8xf32>
    %32 = math.exp %31 : vector<8x8xf32>
    %cst_21 = arith.constant dense<0.000000e+00> : vector<8xf32>
    %33 = vector.multi_reduction <add>, %32, %cst_21 [1] : vector<8x8xf32> to vector<8xf32>
    %34 = vector.shape_cast %33 : vector<8xf32> to vector<8x1xf32>
    %35 = tpu.reciprocal %34 {approx = true} : vector<8x1xf32> -> vector<8x1xf32>
    %36 = vector.broadcast %35 : vector<8x1xf32> to vector<8x8xf32>
    %37 = arith.mulf %32, %36 : vector<8x8xf32>
    %cst_22 = arith.constant dense<0.000000e+00> : vector<8x8xf32>
    %38 = tpu.matmul %37, %23, %cst_22 {dimension_numbers = #tpu.dot_dimension_numbers<[1], [0], [0], [1], [0, 0, 1, 1], [], []>} : vector<8x8xf32>, vector<8x8xf32>, vector<8x8xf32> -> vector<8x8xf32>
    %39 = vector.extract_strided_slice %19 {offsets = [0, 0], sizes = [8, 32], strides = [1, 1]} : vector<32x32xf32> to vector<8x32xf32>
    %cst_23 = arith.constant dense<0.000000e+00> : vector<8x32xf32>
    %40 = tpu.matmul %38, %39, %cst_23 {dimension_numbers = #tpu.dot_dimension_numbers<[1], [0], [0], [1], [0, 0, 1, 1], [], []>} : vector<8x8xf32>, vector<8x32xf32>, vector<8x32xf32> -> vector<8x32xf32>
    %41 = arith.addf %20, %40 : vector<8x32xf32>
    %42 = vector.extract_strided_slice %15 {offsets = [0, 8], sizes = [8, 8], strides = [1, 1]} : vector<16x32xf32> to vector<8x8xf32>
    %43 = vector.extract_strided_slice %16 {offsets = [0, 8], sizes = [8, 8], strides = [1, 1]} : vector<16x32xf32> to vector<8x8xf32>
    %44 = vector.extract_strided_slice %17 {offsets = [0, 8], sizes = [8, 8], strides = [1, 1]} : vector<16x32xf32> to vector<8x8xf32>
    %45 = tpu.transpose %43, [1, 0] : vector<8x8xf32> -> vector<8x8xf32>
    %cst_24 = arith.constant dense<0.000000e+00> : vector<8x8xf32>
    %46 = tpu.matmul %42, %45, %cst_24 {dimension_numbers = #tpu.dot_dimension_numbers<[1], [0], [0], [1], [0, 0, 1, 1], [], []>} : vector<8x8xf32>, vector<8x8xf32>, vector<8x8xf32> -> vector<8x8xf32>
    %cst_25 = arith.constant 0.353553385 : f32
    %47 = vector.broadcast %cst_25 : f32 to vector<8x8xf32>
    %48 = arith.mulf %46, %47 : vector<8x8xf32>
    %cst_26 = arith.constant dense<0xFF800000> : vector<8xf32>
    %49 = vector.multi_reduction <maximumf>, %48, %cst_26 [1] : vector<8x8xf32> to vector<8xf32>
    %50 = vector.shape_cast %49 : vector<8xf32> to vector<8x1xf32>
    %51 = vector.broadcast %50 : vector<8x1xf32> to vector<8x8xf32>
    %52 = arith.subf %48, %51 : vector<8x8xf32>
    %53 = math.exp %52 : vector<8x8xf32>
    %cst_27 = arith.constant dense<0.000000e+00> : vector<8xf32>
    %54 = vector.multi_reduction <add>, %53, %cst_27 [1] : vector<8x8xf32> to vector<8xf32>
    %55 = vector.shape_cast %54 : vector<8xf32> to vector<8x1xf32>
    %56 = tpu.reciprocal %55 {approx = true} : vector<8x1xf32> -> vector<8x1xf32>
    %57 = vector.broadcast %56 : vector<8x1xf32> to vector<8x8xf32>
    %58 = arith.mulf %53, %57 : vector<8x8xf32>
    %cst_28 = arith.constant dense<0.000000e+00> : vector<8x8xf32>
    %59 = tpu.matmul %58, %44, %cst_28 {dimension_numbers = #tpu.dot_dimension_numbers<[1], [0], [0], [1], [0, 0, 1, 1], [], []>} : vector<8x8xf32>, vector<8x8xf32>, vector<8x8xf32> -> vector<8x8xf32>
    %60 = vector.extract_strided_slice %19 {offsets = [8, 0], sizes = [8, 32], strides = [1, 1]} : vector<32x32xf32> to vector<8x32xf32>
    %cst_29 = arith.constant dense<0.000000e+00> : vector<8x32xf32>
    %61 = tpu.matmul %59, %60, %cst_29 {dimension_numbers = #tpu.dot_dimension_numbers<[1], [0], [0], [1], [0, 0, 1, 1], [], []>} : vector<8x8xf32>, vector<8x32xf32>, vector<8x32xf32> -> vector<8x32xf32>
    %62 = arith.addf %41, %61 : vector<8x32xf32>
    %63 = vector.extract_strided_slice %15 {offsets = [0, 16], sizes = [8, 8], strides = [1, 1]} : vector<16x32xf32> to vector<8x8xf32>
    %64 = vector.extract_strided_slice %16 {offsets = [0, 16], sizes = [8, 8], strides = [1, 1]} : vector<16x32xf32> to vector<8x8xf32>
    %65 = vector.extract_strided_slice %17 {offsets = [0, 16], sizes = [8, 8], strides = [1, 1]} : vector<16x32xf32> to vector<8x8xf32>
    %66 = tpu.transpose %64, [1, 0] : vector<8x8xf32> -> vector<8x8xf32>
    %cst_30 = arith.constant dense<0.000000e+00> : vector<8x8xf32>
    %67 = tpu.matmul %63, %66, %cst_30 {dimension_numbers = #tpu.dot_dimension_numbers<[1], [0], [0], [1], [0, 0, 1, 1], [], []>} : vector<8x8xf32>, vector<8x8xf32>, vector<8x8xf32> -> vector<8x8xf32>
    %cst_31 = arith.constant 0.353553385 : f32
    %68 = vector.broadcast %cst_31 : f32 to vector<8x8xf32>
    %69 = arith.mulf %67, %68 : vector<8x8xf32>
    %cst_32 = arith.constant dense<0xFF800000> : vector<8xf32>
    %70 = vector.multi_reduction <maximumf>, %69, %cst_32 [1] : vector<8x8xf32> to vector<8xf32>
    %71 = vector.shape_cast %70 : vector<8xf32> to vector<8x1xf32>
    %72 = vector.broadcast %71 : vector<8x1xf32> to vector<8x8xf32>
    %73 = arith.subf %69, %72 : vector<8x8xf32>
    %74 = math.exp %73 : vector<8x8xf32>
    %cst_33 = arith.constant dense<0.000000e+00> : vector<8xf32>
    %75 = vector.multi_reduction <add>, %74, %cst_33 [1] : vector<8x8xf32> to vector<8xf32>
    %76 = vector.shape_cast %75 : vector<8xf32> to vector<8x1xf32>
    %77 = tpu.reciprocal %76 {approx = true} : vector<8x1xf32> -> vector<8x1xf32>
    %78 = vector.broadcast %77 : vector<8x1xf32> to vector<8x8xf32>
    %79 = arith.mulf %74, %78 : vector<8x8xf32>
    %cst_34 = arith.constant dense<0.000000e+00> : vector<8x8xf32>
    %80 = tpu.matmul %79, %65, %cst_34 {dimension_numbers = #tpu.dot_dimension_numbers<[1], [0], [0], [1], [0, 0, 1, 1], [], []>} : vector<8x8xf32>, vector<8x8xf32>, vector<8x8xf32> -> vector<8x8xf32>
    %81 = vector.extract_strided_slice %19 {offsets = [16, 0], sizes = [8, 32], strides = [1, 1]} : vector<32x32xf32> to vector<8x32xf32>
    %cst_35 = arith.constant dense<0.000000e+00> : vector<8x32xf32>
    %82 = tpu.matmul %80, %81, %cst_35 {dimension_numbers = #tpu.dot_dimension_numbers<[1], [0], [0], [1], [0, 0, 1, 1], [], []>} : vector<8x8xf32>, vector<8x32xf32>, vector<8x32xf32> -> vector<8x32xf32>
    %83 = arith.addf %62, %82 : vector<8x32xf32>
    %84 = vector.extract_strided_slice %15 {offsets = [0, 24], sizes = [8, 8], strides = [1, 1]} : vector<16x32xf32> to vector<8x8xf32>
    %85 = vector.extract_strided_slice %16 {offsets = [0, 24], sizes = [8, 8], strides = [1, 1]} : vector<16x32xf32> to vector<8x8xf32>
    %86 = vector.extract_strided_slice %17 {offsets = [0, 24], sizes = [8, 8], strides = [1, 1]} : vector<16x32xf32> to vector<8x8xf32>
    %87 = tpu.transpose %85, [1, 0] : vector<8x8xf32> -> vector<8x8xf32>
    %cst_36 = arith.constant dense<0.000000e+00> : vector<8x8xf32>
    %88 = tpu.matmul %84, %87, %cst_36 {dimension_numbers = #tpu.dot_dimension_numbers<[1], [0], [0], [1], [0, 0, 1, 1], [], []>} : vector<8x8xf32>, vector<8x8xf32>, vector<8x8xf32> -> vector<8x8xf32>
    %cst_37 = arith.constant 0.353553385 : f32
    %89 = vector.broadcast %cst_37 : f32 to vector<8x8xf32>
    %90 = arith.mulf %88, %89 : vector<8x8xf32>
    %cst_38 = arith.constant dense<0xFF800000> : vector<8xf32>
    %91 = vector.multi_reduction <maximumf>, %90, %cst_38 [1] : vector<8x8xf32> to vector<8xf32>
    %92 = vector.shape_cast %91 : vector<8xf32> to vector<8x1xf32>
    %93 = vector.broadcast %92 : vector<8x1xf32> to vector<8x8xf32>
    %94 = arith.subf %90, %93 : vector<8x8xf32>
    %95 = math.exp %94 : vector<8x8xf32>
    %cst_39 = arith.constant dense<0.000000e+00> : vector<8xf32>
    %96 = vector.multi_reduction <add>, %95, %cst_39 [1] : vector<8x8xf32> to vector<8xf32>
    %97 = vector.shape_cast %96 : vector<8xf32> to vector<8x1xf32>
    %98 = tpu.reciprocal %97 {approx = true} : vector<8x1xf32> -> vector<8x1xf32>
    %99 = vector.broadcast %98 : vector<8x1xf32> to vector<8x8xf32>
    %100 = arith.mulf %95, %99 : vector<8x8xf32>
    %cst_40 = arith.constant dense<0.000000e+00> : vector<8x8xf32>
    %101 = tpu.matmul %100, %86, %cst_40 {dimension_numbers = #tpu.dot_dimension_numbers<[1], [0], [0], [1], [0, 0, 1, 1], [], []>} : vector<8x8xf32>, vector<8x8xf32>, vector<8x8xf32> -> vector<8x8xf32>
    %102 = vector.extract_strided_slice %19 {offsets = [24, 0], sizes = [8, 32], strides = [1, 1]} : vector<32x32xf32> to vector<8x32xf32>
    %cst_41 = arith.constant dense<0.000000e+00> : vector<8x32xf32>
    %103 = tpu.matmul %101, %102, %cst_41 {dimension_numbers = #tpu.dot_dimension_numbers<[1], [0], [0], [1], [0, 0, 1, 1], [], []>} : vector<8x8xf32>, vector<8x32xf32>, vector<8x32xf32> -> vector<8x32xf32>
    %104 = arith.addf %83, %103 : vector<8x32xf32>
    %c0_42 = arith.constant 0 : index
    %c0_43 = arith.constant 0 : index
    %c0_44 = arith.constant 0 : index
    %105 = vector.load %arg7[%c0_42, %c0_43, %c0_44] : memref<2x1x32xf32, #tpu.memory_space<vmem>>, vector<1x1x32xf32>
    %106 = vector.shape_cast %105 : vector<1x1x32xf32> to vector<1x32xf32>
    %107 = vector.broadcast %106 : vector<1x32xf32> to vector<8x32xf32>
    %108 = arith.addf %104, %107 : vector<8x32xf32>
    %cst_45 = arith.constant 0.000000e+00 : f32
    %109 = vector.broadcast %cst_45 : f32 to vector<8x32xf32>
    %110 = vector.extract_strided_slice %15 {offsets = [8, 0], sizes = [8, 8], strides = [1, 1]} : vector<16x32xf32> to vector<8x8xf32>
    %111 = vector.extract_strided_slice %16 {offsets = [8, 0], sizes = [8, 8], strides = [1, 1]} : vector<16x32xf32> to vector<8x8xf32>
    %112 = vector.extract_strided_slice %17 {offsets = [8, 0], sizes = [8, 8], strides = [1, 1]} : vector<16x32xf32> to vector<8x8xf32>
    %113 = tpu.transpose %111, [1, 0] : vector<8x8xf32> -> vector<8x8xf32>
    %cst_46 = arith.constant dense<0.000000e+00> : vector<8x8xf32>
    %114 = tpu.matmul %110, %113, %cst_46 {dimension_numbers = #tpu.dot_dimension_numbers<[1], [0], [0], [1], [0, 0, 1, 1], [], []>} : vector<8x8xf32>, vector<8x8xf32>, vector<8x8xf32> -> vector<8x8xf32>
    %cst_47 = arith.constant 0.353553385 : f32
    %115 = vector.broadcast %cst_47 : f32 to vector<8x8xf32>
    %116 = arith.mulf %114, %115 : vector<8x8xf32>
    %cst_48 = arith.constant dense<0xFF800000> : vector<8xf32>
    %117 = vector.multi_reduction <maximumf>, %116, %cst_48 [1] : vector<8x8xf32> to vector<8xf32>
    %118 = vector.shape_cast %117 : vector<8xf32> to vector<8x1xf32>
    %119 = vector.broadcast %118 : vector<8x1xf32> to vector<8x8xf32>
    %120 = arith.subf %116, %119 : vector<8x8xf32>
    %121 = math.exp %120 : vector<8x8xf32>
    %cst_49 = arith.constant dense<0.000000e+00> : vector<8xf32>
    %122 = vector.multi_reduction <add>, %121, %cst_49 [1] : vector<8x8xf32> to vector<8xf32>
    %123 = vector.shape_cast %122 : vector<8xf32> to vector<8x1xf32>
    %124 = tpu.reciprocal %123 {approx = true} : vector<8x1xf32> -> vector<8x1xf32>
    %125 = vector.broadcast %124 : vector<8x1xf32> to vector<8x8xf32>
    %126 = arith.mulf %121, %125 : vector<8x8xf32>
    %cst_50 = arith.constant dense<0.000000e+00> : vector<8x8xf32>
    %127 = tpu.matmul %126, %112, %cst_50 {dimension_numbers = #tpu.dot_dimension_numbers<[1], [0], [0], [1], [0, 0, 1, 1], [], []>} : vector<8x8xf32>, vector<8x8xf32>, vector<8x8xf32> -> vector<8x8xf32>
    %128 = vector.extract_strided_slice %19 {offsets = [0, 0], sizes = [8, 32], strides = [1, 1]} : vector<32x32xf32> to vector<8x32xf32>
    %cst_51 = arith.constant dense<0.000000e+00> : vector<8x32xf32>
    %129 = tpu.matmul %127, %128, %cst_51 {dimension_numbers = #tpu.dot_dimension_numbers<[1], [0], [0], [1], [0, 0, 1, 1], [], []>} : vector<8x8xf32>, vector<8x32xf32>, vector<8x32xf32> -> vector<8x32xf32>
    %130 = arith.addf %109, %129 : vector<8x32xf32>
    %131 = vector.extract_strided_slice %15 {offsets = [8, 8], sizes = [8, 8], strides = [1, 1]} : vector<16x32xf32> to vector<8x8xf32>
    %132 = vector.extract_strided_slice %16 {offsets = [8, 8], sizes = [8, 8], strides = [1, 1]} : vector<16x32xf32> to vector<8x8xf32>
    %133 = vector.extract_strided_slice %17 {offsets = [8, 8], sizes = [8, 8], strides = [1, 1]} : vector<16x32xf32> to vector<8x8xf32>
    %134 = tpu.transpose %132, [1, 0] : vector<8x8xf32> -> vector<8x8xf32>
    %cst_52 = arith.constant dense<0.000000e+00> : vector<8x8xf32>
    %135 = tpu.matmul %131, %134, %cst_52 {dimension_numbers = #tpu.dot_dimension_numbers<[1], [0], [0], [1], [0, 0, 1, 1], [], []>} : vector<8x8xf32>, vector<8x8xf32>, vector<8x8xf32> -> vector<8x8xf32>
    %cst_53 = arith.constant 0.353553385 : f32
    %136 = vector.broadcast %cst_53 : f32 to vector<8x8xf32>
    %137 = arith.mulf %135, %136 : vector<8x8xf32>
    %cst_54 = arith.constant dense<0xFF800000> : vector<8xf32>
    %138 = vector.multi_reduction <maximumf>, %137, %cst_54 [1] : vector<8x8xf32> to vector<8xf32>
    %139 = vector.shape_cast %138 : vector<8xf32> to vector<8x1xf32>
    %140 = vector.broadcast %139 : vector<8x1xf32> to vector<8x8xf32>
    %141 = arith.subf %137, %140 : vector<8x8xf32>
    %142 = math.exp %141 : vector<8x8xf32>
    %cst_55 = arith.constant dense<0.000000e+00> : vector<8xf32>
    %143 = vector.multi_reduction <add>, %142, %cst_55 [1] : vector<8x8xf32> to vector<8xf32>
    %144 = vector.shape_cast %143 : vector<8xf32> to vector<8x1xf32>
    %145 = tpu.reciprocal %144 {approx = true} : vector<8x1xf32> -> vector<8x1xf32>
    %146 = vector.broadcast %145 : vector<8x1xf32> to vector<8x8xf32>
    %147 = arith.mulf %142, %146 : vector<8x8xf32>
    %cst_56 = arith.constant dense<0.000000e+00> : vector<8x8xf32>
    %148 = tpu.matmul %147, %133, %cst_56 {dimension_numbers = #tpu.dot_dimension_numbers<[1], [0], [0], [1], [0, 0, 1, 1], [], []>} : vector<8x8xf32>, vector<8x8xf32>, vector<8x8xf32> -> vector<8x8xf32>
    %149 = vector.extract_strided_slice %19 {offsets = [8, 0], sizes = [8, 32], strides = [1, 1]} : vector<32x32xf32> to vector<8x32xf32>
    %cst_57 = arith.constant dense<0.000000e+00> : vector<8x32xf32>
    %150 = tpu.matmul %148, %149, %cst_57 {dimension_numbers = #tpu.dot_dimension_numbers<[1], [0], [0], [1], [0, 0, 1, 1], [], []>} : vector<8x8xf32>, vector<8x32xf32>, vector<8x32xf32> -> vector<8x32xf32>
    %151 = arith.addf %130, %150 : vector<8x32xf32>
    %152 = vector.extract_strided_slice %15 {offsets = [8, 16], sizes = [8, 8], strides = [1, 1]} : vector<16x32xf32> to vector<8x8xf32>
    %153 = vector.extract_strided_slice %16 {offsets = [8, 16], sizes = [8, 8], strides = [1, 1]} : vector<16x32xf32> to vector<8x8xf32>
    %154 = vector.extract_strided_slice %17 {offsets = [8, 16], sizes = [8, 8], strides = [1, 1]} : vector<16x32xf32> to vector<8x8xf32>
    %155 = tpu.transpose %153, [1, 0] : vector<8x8xf32> -> vector<8x8xf32>
    %cst_58 = arith.constant dense<0.000000e+00> : vector<8x8xf32>
    %156 = tpu.matmul %152, %155, %cst_58 {dimension_numbers = #tpu.dot_dimension_numbers<[1], [0], [0], [1], [0, 0, 1, 1], [], []>} : vector<8x8xf32>, vector<8x8xf32>, vector<8x8xf32> -> vector<8x8xf32>
    %cst_59 = arith.constant 0.353553385 : f32
    %157 = vector.broadcast %cst_59 : f32 to vector<8x8xf32>
    %158 = arith.mulf %156, %157 : vector<8x8xf32>
    %cst_60 = arith.constant dense<0xFF800000> : vector<8xf32>
    %159 = vector.multi_reduction <maximumf>, %158, %cst_60 [1] : vector<8x8xf32> to vector<8xf32>
    %160 = vector.shape_cast %159 : vector<8xf32> to vector<8x1xf32>
    %161 = vector.broadcast %160 : vector<8x1xf32> to vector<8x8xf32>
    %162 = arith.subf %158, %161 : vector<8x8xf32>
    %163 = math.exp %162 : vector<8x8xf32>
    %cst_61 = arith.constant dense<0.000000e+00> : vector<8xf32>
    %164 = vector.multi_reduction <add>, %163, %cst_61 [1] : vector<8x8xf32> to vector<8xf32>
    %165 = vector.shape_cast %164 : vector<8xf32> to vector<8x1xf32>
    %166 = tpu.reciprocal %165 {approx = true} : vector<8x1xf32> -> vector<8x1xf32>
    %167 = vector.broadcast %166 : vector<8x1xf32> to vector<8x8xf32>
    %168 = arith.mulf %163, %167 : vector<8x8xf32>
    %cst_62 = arith.constant dense<0.000000e+00> : vector<8x8xf32>
    %169 = tpu.matmul %168, %154, %cst_62 {dimension_numbers = #tpu.dot_dimension_numbers<[1], [0], [0], [1], [0, 0, 1, 1], [], []>} : vector<8x8xf32>, vector<8x8xf32>, vector<8x8xf32> -> vector<8x8xf32>
    %170 = vector.extract_strided_slice %19 {offsets = [16, 0], sizes = [8, 32], strides = [1, 1]} : vector<32x32xf32> to vector<8x32xf32>
    %cst_63 = arith.constant dense<0.000000e+00> : vector<8x32xf32>
    %171 = tpu.matmul %169, %170, %cst_63 {dimension_numbers = #tpu.dot_dimension_numbers<[1], [0], [0], [1], [0, 0, 1, 1], [], []>} : vector<8x8xf32>, vector<8x32xf32>, vector<8x32xf32> -> vector<8x32xf32>
    %172 = arith.addf %151, %171 : vector<8x32xf32>
    %173 = vector.extract_strided_slice %15 {offsets = [8, 24], sizes = [8, 8], strides = [1, 1]} : vector<16x32xf32> to vector<8x8xf32>
    %174 = vector.extract_strided_slice %16 {offsets = [8, 24], sizes = [8, 8], strides = [1, 1]} : vector<16x32xf32> to vector<8x8xf32>
    %175 = vector.extract_strided_slice %17 {offsets = [8, 24], sizes = [8, 8], strides = [1, 1]} : vector<16x32xf32> to vector<8x8xf32>
    %176 = tpu.transpose %174, [1, 0] : vector<8x8xf32> -> vector<8x8xf32>
    %cst_64 = arith.constant dense<0.000000e+00> : vector<8x8xf32>
    %177 = tpu.matmul %173, %176, %cst_64 {dimension_numbers = #tpu.dot_dimension_numbers<[1], [0], [0], [1], [0, 0, 1, 1], [], []>} : vector<8x8xf32>, vector<8x8xf32>, vector<8x8xf32> -> vector<8x8xf32>
    %cst_65 = arith.constant 0.353553385 : f32
    %178 = vector.broadcast %cst_65 : f32 to vector<8x8xf32>
    %179 = arith.mulf %177, %178 : vector<8x8xf32>
    %cst_66 = arith.constant dense<0xFF800000> : vector<8xf32>
    %180 = vector.multi_reduction <maximumf>, %179, %cst_66 [1] : vector<8x8xf32> to vector<8xf32>
    %181 = vector.shape_cast %180 : vector<8xf32> to vector<8x1xf32>
    %182 = vector.broadcast %181 : vector<8x1xf32> to vector<8x8xf32>
    %183 = arith.subf %179, %182 : vector<8x8xf32>
    %184 = math.exp %183 : vector<8x8xf32>
    %cst_67 = arith.constant dense<0.000000e+00> : vector<8xf32>
    %185 = vector.multi_reduction <add>, %184, %cst_67 [1] : vector<8x8xf32> to vector<8xf32>
    %186 = vector.shape_cast %185 : vector<8xf32> to vector<8x1xf32>
    %187 = tpu.reciprocal %186 {approx = true} : vector<8x1xf32> -> vector<8x1xf32>
    %188 = vector.broadcast %187 : vector<8x1xf32> to vector<8x8xf32>
    %189 = arith.mulf %184, %188 : vector<8x8xf32>
    %cst_68 = arith.constant dense<0.000000e+00> : vector<8x8xf32>
    %190 = tpu.matmul %189, %175, %cst_68 {dimension_numbers = #tpu.dot_dimension_numbers<[1], [0], [0], [1], [0, 0, 1, 1], [], []>} : vector<8x8xf32>, vector<8x8xf32>, vector<8x8xf32> -> vector<8x8xf32>
    %191 = vector.extract_strided_slice %19 {offsets = [24, 0], sizes = [8, 32], strides = [1, 1]} : vector<32x32xf32> to vector<8x32xf32>
    %cst_69 = arith.constant dense<0.000000e+00> : vector<8x32xf32>
    %192 = tpu.matmul %190, %191, %cst_69 {dimension_numbers = #tpu.dot_dimension_numbers<[1], [0], [0], [1], [0, 0, 1, 1], [], []>} : vector<8x8xf32>, vector<8x32xf32>, vector<8x32xf32> -> vector<8x32xf32>
    %193 = arith.addf %172, %192 : vector<8x32xf32>
    %c0_70 = arith.constant 0 : index
    %c0_71 = arith.constant 0 : index
    %c0_72 = arith.constant 0 : index
    %194 = vector.load %arg7[%c0_70, %c0_71, %c0_72] : memref<2x1x32xf32, #tpu.memory_space<vmem>>, vector<1x1x32xf32>
    %195 = vector.shape_cast %194 : vector<1x1x32xf32> to vector<1x32xf32>
    %196 = vector.broadcast %195 : vector<1x32xf32> to vector<8x32xf32>
    %197 = arith.addf %193, %196 : vector<8x32xf32>
    %198 = tpu.concatenate %108, %197 in 0 : vector<8x32xf32>, vector<8x32xf32> -> vector<16x32xf32>
    %199 = arith.addf %198, %7 : vector<16x32xf32>
    %c0_73 = arith.constant 0 : index
    %c0_74 = arith.constant 0 : index
    %c0_75 = arith.constant 0 : index
    %200 = vector.load %arg12[%c0_73, %c0_74, %c0_75] : memref<2x1x32xf32, #tpu.memory_space<vmem>>, vector<1x1x32xf32>
    %201 = vector.shape_cast %200 : vector<1x1x32xf32> to vector<1x32xf32>
    %c0_76 = arith.constant 0 : index
    %c0_77 = arith.constant 0 : index
    %c0_78 = arith.constant 0 : index
    %202 = vector.load %arg13[%c0_76, %c0_77, %c0_78] : memref<2x1x32xf32, #tpu.memory_space<vmem>>, vector<1x1x32xf32>
    %203 = vector.shape_cast %202 : vector<1x1x32xf32> to vector<1x32xf32>
    %cst_79 = arith.constant dense<0.000000e+00> : vector<16xf32>
    %204 = vector.multi_reduction <add>, %199, %cst_79 [1] : vector<16x32xf32> to vector<16xf32>
    %205 = vector.shape_cast %204 : vector<16xf32> to vector<16x1xf32>
    %cst_80 = arith.constant 3.200000e+01 : f32
    %206 = vector.broadcast %cst_80 : f32 to vector<16x1xf32>
    %207 = arith.divf %205, %206 : vector<16x1xf32>
    %208 = vector.broadcast %207 : vector<16x1xf32> to vector<16x32xf32>
    %209 = arith.subf %199, %208 : vector<16x32xf32>
    %210 = arith.mulf %209, %209 : vector<16x32xf32>
    %cst_81 = arith.constant dense<0.000000e+00> : vector<16xf32>
    %211 = vector.multi_reduction <add>, %210, %cst_81 [1] : vector<16x32xf32> to vector<16xf32>
    %212 = vector.shape_cast %211 : vector<16xf32> to vector<16x1xf32>
    %cst_82 = arith.constant 3.200000e+01 : f32
    %213 = vector.broadcast %cst_82 : f32 to vector<16x1xf32>
    %214 = arith.divf %212, %213 : vector<16x1xf32>
    %215 = vector.broadcast %207 : vector<16x1xf32> to vector<16x32xf32>
    %216 = arith.subf %199, %215 : vector<16x32xf32>
    %cst_83 = arith.constant 9.99999974E-6 : f32
    %217 = vector.broadcast %cst_83 : f32 to vector<16x1xf32>
    %218 = arith.addf %214, %217 : vector<16x1xf32>
    %219 = math.rsqrt %218 : vector<16x1xf32>
    %220 = vector.broadcast %219 : vector<16x1xf32> to vector<16x32xf32>
    %221 = arith.mulf %216, %220 : vector<16x32xf32>
    %222 = vector.broadcast %201 : vector<1x32xf32> to vector<16x32xf32>
    %223 = arith.mulf %221, %222 : vector<16x32xf32>
    %224 = vector.broadcast %203 : vector<1x32xf32> to vector<16x32xf32>
    %225 = arith.addf %223, %224 : vector<16x32xf32>
    %c0_84 = arith.constant 0 : index
    %c0_85 = arith.constant 0 : index
    %c0_86 = arith.constant 0 : index
    %226 = vector.load %arg8[%c0_84, %c0_85, %c0_86] : memref<2x32x64xf32, #tpu.memory_space<vmem>>, vector<1x32x64xf32>
    %227 = vector.shape_cast %226 : vector<1x32x64xf32> to vector<32x64xf32>
    %cst_87 = arith.constant dense<0.000000e+00> : vector<16x64xf32>
    %228 = tpu.matmul %225, %227, %cst_87 {dimension_numbers = #tpu.dot_dimension_numbers<[1], [0], [0], [1], [0, 0, 1, 1], [], []>} : vector<16x32xf32>, vector<32x64xf32>, vector<16x64xf32> -> vector<16x64xf32>
    %c0_88 = arith.constant 0 : index
    %c0_89 = arith.constant 0 : index
    %c0_90 = arith.constant 0 : index
    %229 = vector.load %arg9[%c0_88, %c0_89, %c0_90] : memref<2x1x64xf32, #tpu.memory_space<vmem>>, vector<1x1x64xf32>
    %230 = vector.shape_cast %229 : vector<1x1x64xf32> to vector<1x64xf32>
    %231 = vector.broadcast %230 : vector<1x64xf32> to vector<16x64xf32>
    %232 = arith.addf %228, %231 : vector<16x64xf32>
    %cst_91 = arith.constant 0.000000e+00 : f32
    %233 = vector.broadcast %cst_91 : f32 to vector<16x64xf32>
    %234 = arith.maximumf %232, %233 : vector<16x64xf32>
    %c0_92 = arith.constant 0 : index
    %c0_93 = arith.constant 0 : index
    %c0_94 = arith.constant 0 : index
    %235 = vector.load %arg10[%c0_92, %c0_93, %c0_94] : memref<2x64x32xf32, #tpu.memory_space<vmem>>, vector<1x64x32xf32>
    %236 = vector.shape_cast %235 : vector<1x64x32xf32> to vector<64x32xf32>
    %cst_95 = arith.constant dense<0.000000e+00> : vector<16x32xf32>
    %237 = tpu.matmul %234, %236, %cst_95 {dimension_numbers = #tpu.dot_dimension_numbers<[1], [0], [0], [1], [0, 0, 1, 1], [], []>} : vector<16x64xf32>, vector<64x32xf32>, vector<16x32xf32> -> vector<16x32xf32>
    %c0_96 = arith.constant 0 : index
    %c0_97 = arith.constant 0 : index
    %c0_98 = arith.constant 0 : index
    %238 = vector.load %arg11[%c0_96, %c0_97, %c0_98] : memref<2x1x32xf32, #tpu.memory_space<vmem>>, vector<1x1x32xf32>
    %239 = vector.shape_cast %238 : vector<1x1x32xf32> to vector<1x32xf32>
    %240 = vector.broadcast %239 : vector<1x32xf32> to vector<16x32xf32>
    %241 = arith.addf %237, %240 : vector<16x32xf32>
    %242 = arith.addf %241, %225 : vector<16x32xf32>
    %c0_99 = arith.constant 0 : index
    %c0_100 = arith.constant 0 : index
    %c0_101 = arith.constant 0 : index
    %243 = vector.load %arg14[%c0_99, %c0_100, %c0_101] : memref<2x1x32xf32, #tpu.memory_space<vmem>>, vector<1x1x32xf32>
    %244 = vector.shape_cast %243 : vector<1x1x32xf32> to vector<1x32xf32>
    %c0_102 = arith.constant 0 : index
    %c0_103 = arith.constant 0 : index
    %c0_104 = arith.constant 0 : index
    %245 = vector.load %arg15[%c0_102, %c0_103, %c0_104] : memref<2x1x32xf32, #tpu.memory_space<vmem>>, vector<1x1x32xf32>
    %246 = vector.shape_cast %245 : vector<1x1x32xf32> to vector<1x32xf32>
    %cst_105 = arith.constant dense<0.000000e+00> : vector<16xf32>
    %247 = vector.multi_reduction <add>, %242, %cst_105 [1] : vector<16x32xf32> to vector<16xf32>
    %248 = vector.shape_cast %247 : vector<16xf32> to vector<16x1xf32>
    %cst_106 = arith.constant 3.200000e+01 : f32
    %249 = vector.broadcast %cst_106 : f32 to vector<16x1xf32>
    %250 = arith.divf %248, %249 : vector<16x1xf32>
    %251 = vector.broadcast %250 : vector<16x1xf32> to vector<16x32xf32>
    %252 = arith.subf %242, %251 : vector<16x32xf32>
    %253 = arith.mulf %252, %252 : vector<16x32xf32>
    %cst_107 = arith.constant dense<0.000000e+00> : vector<16xf32>
    %254 = vector.multi_reduction <add>, %253, %cst_107 [1] : vector<16x32xf32> to vector<16xf32>
    %255 = vector.shape_cast %254 : vector<16xf32> to vector<16x1xf32>
    %cst_108 = arith.constant 3.200000e+01 : f32
    %256 = vector.broadcast %cst_108 : f32 to vector<16x1xf32>
    %257 = arith.divf %255, %256 : vector<16x1xf32>
    %258 = vector.broadcast %250 : vector<16x1xf32> to vector<16x32xf32>
    %259 = arith.subf %242, %258 : vector<16x32xf32>
    %cst_109 = arith.constant 9.99999974E-6 : f32
    %260 = vector.broadcast %cst_109 : f32 to vector<16x1xf32>
    %261 = arith.addf %257, %260 : vector<16x1xf32>
    %262 = math.rsqrt %261 : vector<16x1xf32>
    %263 = vector.broadcast %262 : vector<16x1xf32> to vector<16x32xf32>
    %264 = arith.mulf %259, %263 : vector<16x32xf32>
    %265 = vector.broadcast %244 : vector<1x32xf32> to vector<16x32xf32>
    %266 = arith.mulf %264, %265 : vector<16x32xf32>
    %267 = vector.broadcast %246 : vector<1x32xf32> to vector<16x32xf32>
    %268 = arith.addf %266, %267 : vector<16x32xf32>
    %c1 = arith.constant 1 : index
    %c0_110 = arith.constant 0 : index
    %c0_111 = arith.constant 0 : index
    %269 = vector.load %arg4[%c1, %c0_110, %c0_111] : memref<2x32x96xf32, #tpu.memory_space<vmem>>, vector<1x32x96xf32>
    %270 = vector.shape_cast %269 : vector<1x32x96xf32> to vector<32x96xf32>
    %cst_112 = arith.constant dense<0.000000e+00> : vector<16x96xf32>
    %271 = tpu.matmul %268, %270, %cst_112 {dimension_numbers = #tpu.dot_dimension_numbers<[1], [0], [0], [1], [0, 0, 1, 1], [], []>} : vector<16x32xf32>, vector<32x96xf32>, vector<16x96xf32> -> vector<16x96xf32>
    %c1_113 = arith.constant 1 : index
    %c0_114 = arith.constant 0 : index
    %c0_115 = arith.constant 0 : index
    %272 = vector.load %arg5[%c1_113, %c0_114, %c0_115] : memref<2x1x96xf32, #tpu.memory_space<vmem>>, vector<1x1x96xf32>
    %273 = vector.shape_cast %272 : vector<1x1x96xf32> to vector<1x96xf32>
    %274 = vector.broadcast %273 : vector<1x96xf32> to vector<16x96xf32>
    %275 = arith.addf %271, %274 : vector<16x96xf32>
    %276 = vector.extract_strided_slice %275 {offsets = [0, 0], sizes = [16, 32], strides = [1, 1]} : vector<16x96xf32> to vector<16x32xf32>
    %277 = vector.extract_strided_slice %275 {offsets = [0, 32], sizes = [16, 32], strides = [1, 1]} : vector<16x96xf32> to vector<16x32xf32>
    %278 = vector.extract_strided_slice %275 {offsets = [0, 64], sizes = [16, 32], strides = [1, 1]} : vector<16x96xf32> to vector<16x32xf32>
    %c1_116 = arith.constant 1 : index
    %c0_117 = arith.constant 0 : index
    %c0_118 = arith.constant 0 : index
    %279 = vector.load %arg6[%c1_116, %c0_117, %c0_118] : memref<2x32x32xf32, #tpu.memory_space<vmem>>, vector<1x32x32xf32>
    %280 = vector.shape_cast %279 : vector<1x32x32xf32> to vector<32x32xf32>
    %cst_119 = arith.constant 0.000000e+00 : f32
    %281 = vector.broadcast %cst_119 : f32 to vector<8x32xf32>
    %282 = vector.extract_strided_slice %276 {offsets = [0, 0], sizes = [8, 8], strides = [1, 1]} : vector<16x32xf32> to vector<8x8xf32>
    %283 = vector.extract_strided_slice %277 {offsets = [0, 0], sizes = [8, 8], strides = [1, 1]} : vector<16x32xf32> to vector<8x8xf32>
    %284 = vector.extract_strided_slice %278 {offsets = [0, 0], sizes = [8, 8], strides = [1, 1]} : vector<16x32xf32> to vector<8x8xf32>
    %285 = tpu.transpose %283, [1, 0] : vector<8x8xf32> -> vector<8x8xf32>
    %cst_120 = arith.constant dense<0.000000e+00> : vector<8x8xf32>
    %286 = tpu.matmul %282, %285, %cst_120 {dimension_numbers = #tpu.dot_dimension_numbers<[1], [0], [0], [1], [0, 0, 1, 1], [], []>} : vector<8x8xf32>, vector<8x8xf32>, vector<8x8xf32> -> vector<8x8xf32>
    %cst_121 = arith.constant 0.353553385 : f32
    %287 = vector.broadcast %cst_121 : f32 to vector<8x8xf32>
    %288 = arith.mulf %286, %287 : vector<8x8xf32>
    %cst_122 = arith.constant dense<0xFF800000> : vector<8xf32>
    %289 = vector.multi_reduction <maximumf>, %288, %cst_122 [1] : vector<8x8xf32> to vector<8xf32>
    %290 = vector.shape_cast %289 : vector<8xf32> to vector<8x1xf32>
    %291 = vector.broadcast %290 : vector<8x1xf32> to vector<8x8xf32>
    %292 = arith.subf %288, %291 : vector<8x8xf32>
    %293 = math.exp %292 : vector<8x8xf32>
    %cst_123 = arith.constant dense<0.000000e+00> : vector<8xf32>
    %294 = vector.multi_reduction <add>, %293, %cst_123 [1] : vector<8x8xf32> to vector<8xf32>
    %295 = vector.shape_cast %294 : vector<8xf32> to vector<8x1xf32>
    %296 = tpu.reciprocal %295 {approx = true} : vector<8x1xf32> -> vector<8x1xf32>
    %297 = vector.broadcast %296 : vector<8x1xf32> to vector<8x8xf32>
    %298 = arith.mulf %293, %297 : vector<8x8xf32>
    %cst_124 = arith.constant dense<0.000000e+00> : vector<8x8xf32>
    %299 = tpu.matmul %298, %284, %cst_124 {dimension_numbers = #tpu.dot_dimension_numbers<[1], [0], [0], [1], [0, 0, 1, 1], [], []>} : vector<8x8xf32>, vector<8x8xf32>, vector<8x8xf32> -> vector<8x8xf32>
    %300 = vector.extract_strided_slice %280 {offsets = [0, 0], sizes = [8, 32], strides = [1, 1]} : vector<32x32xf32> to vector<8x32xf32>
    %cst_125 = arith.constant dense<0.000000e+00> : vector<8x32xf32>
    %301 = tpu.matmul %299, %300, %cst_125 {dimension_numbers = #tpu.dot_dimension_numbers<[1], [0], [0], [1], [0, 0, 1, 1], [], []>} : vector<8x8xf32>, vector<8x32xf32>, vector<8x32xf32> -> vector<8x32xf32>
    %302 = arith.addf %281, %301 : vector<8x32xf32>
    %303 = vector.extract_strided_slice %276 {offsets = [0, 8], sizes = [8, 8], strides = [1, 1]} : vector<16x32xf32> to vector<8x8xf32>
    %304 = vector.extract_strided_slice %277 {offsets = [0, 8], sizes = [8, 8], strides = [1, 1]} : vector<16x32xf32> to vector<8x8xf32>
    %305 = vector.extract_strided_slice %278 {offsets = [0, 8], sizes = [8, 8], strides = [1, 1]} : vector<16x32xf32> to vector<8x8xf32>
    %306 = tpu.transpose %304, [1, 0] : vector<8x8xf32> -> vector<8x8xf32>
    %cst_126 = arith.constant dense<0.000000e+00> : vector<8x8xf32>
    %307 = tpu.matmul %303, %306, %cst_126 {dimension_numbers = #tpu.dot_dimension_numbers<[1], [0], [0], [1], [0, 0, 1, 1], [], []>} : vector<8x8xf32>, vector<8x8xf32>, vector<8x8xf32> -> vector<8x8xf32>
    %cst_127 = arith.constant 0.353553385 : f32
    %308 = vector.broadcast %cst_127 : f32 to vector<8x8xf32>
    %309 = arith.mulf %307, %308 : vector<8x8xf32>
    %cst_128 = arith.constant dense<0xFF800000> : vector<8xf32>
    %310 = vector.multi_reduction <maximumf>, %309, %cst_128 [1] : vector<8x8xf32> to vector<8xf32>
    %311 = vector.shape_cast %310 : vector<8xf32> to vector<8x1xf32>
    %312 = vector.broadcast %311 : vector<8x1xf32> to vector<8x8xf32>
    %313 = arith.subf %309, %312 : vector<8x8xf32>
    %314 = math.exp %313 : vector<8x8xf32>
    %cst_129 = arith.constant dense<0.000000e+00> : vector<8xf32>
    %315 = vector.multi_reduction <add>, %314, %cst_129 [1] : vector<8x8xf32> to vector<8xf32>
    %316 = vector.shape_cast %315 : vector<8xf32> to vector<8x1xf32>
    %317 = tpu.reciprocal %316 {approx = true} : vector<8x1xf32> -> vector<8x1xf32>
    %318 = vector.broadcast %317 : vector<8x1xf32> to vector<8x8xf32>
    %319 = arith.mulf %314, %318 : vector<8x8xf32>
    %cst_130 = arith.constant dense<0.000000e+00> : vector<8x8xf32>
    %320 = tpu.matmul %319, %305, %cst_130 {dimension_numbers = #tpu.dot_dimension_numbers<[1], [0], [0], [1], [0, 0, 1, 1], [], []>} : vector<8x8xf32>, vector<8x8xf32>, vector<8x8xf32> -> vector<8x8xf32>
    %321 = vector.extract_strided_slice %280 {offsets = [8, 0], sizes = [8, 32], strides = [1, 1]} : vector<32x32xf32> to vector<8x32xf32>
    %cst_131 = arith.constant dense<0.000000e+00> : vector<8x32xf32>
    %322 = tpu.matmul %320, %321, %cst_131 {dimension_numbers = #tpu.dot_dimension_numbers<[1], [0], [0], [1], [0, 0, 1, 1], [], []>} : vector<8x8xf32>, vector<8x32xf32>, vector<8x32xf32> -> vector<8x32xf32>
    %323 = arith.addf %302, %322 : vector<8x32xf32>
    %324 = vector.extract_strided_slice %276 {offsets = [0, 16], sizes = [8, 8], strides = [1, 1]} : vector<16x32xf32> to vector<8x8xf32>
    %325 = vector.extract_strided_slice %277 {offsets = [0, 16], sizes = [8, 8], strides = [1, 1]} : vector<16x32xf32> to vector<8x8xf32>
    %326 = vector.extract_strided_slice %278 {offsets = [0, 16], sizes = [8, 8], strides = [1, 1]} : vector<16x32xf32> to vector<8x8xf32>
    %327 = tpu.transpose %325, [1, 0] : vector<8x8xf32> -> vector<8x8xf32>
    %cst_132 = arith.constant dense<0.000000e+00> : vector<8x8xf32>
    %328 = tpu.matmul %324, %327, %cst_132 {dimension_numbers = #tpu.dot_dimension_numbers<[1], [0], [0], [1], [0, 0, 1, 1], [], []>} : vector<8x8xf32>, vector<8x8xf32>, vector<8x8xf32> -> vector<8x8xf32>
    %cst_133 = arith.constant 0.353553385 : f32
    %329 = vector.broadcast %cst_133 : f32 to vector<8x8xf32>
    %330 = arith.mulf %328, %329 : vector<8x8xf32>
    %cst_134 = arith.constant dense<0xFF800000> : vector<8xf32>
    %331 = vector.multi_reduction <maximumf>, %330, %cst_134 [1] : vector<8x8xf32> to vector<8xf32>
    %332 = vector.shape_cast %331 : vector<8xf32> to vector<8x1xf32>
    %333 = vector.broadcast %332 : vector<8x1xf32> to vector<8x8xf32>
    %334 = arith.subf %330, %333 : vector<8x8xf32>
    %335 = math.exp %334 : vector<8x8xf32>
    %cst_135 = arith.constant dense<0.000000e+00> : vector<8xf32>
    %336 = vector.multi_reduction <add>, %335, %cst_135 [1] : vector<8x8xf32> to vector<8xf32>
    %337 = vector.shape_cast %336 : vector<8xf32> to vector<8x1xf32>
    %338 = tpu.reciprocal %337 {approx = true} : vector<8x1xf32> -> vector<8x1xf32>
    %339 = vector.broadcast %338 : vector<8x1xf32> to vector<8x8xf32>
    %340 = arith.mulf %335, %339 : vector<8x8xf32>
    %cst_136 = arith.constant dense<0.000000e+00> : vector<8x8xf32>
    %341 = tpu.matmul %340, %326, %cst_136 {dimension_numbers = #tpu.dot_dimension_numbers<[1], [0], [0], [1], [0, 0, 1, 1], [], []>} : vector<8x8xf32>, vector<8x8xf32>, vector<8x8xf32> -> vector<8x8xf32>
    %342 = vector.extract_strided_slice %280 {offsets = [16, 0], sizes = [8, 32], strides = [1, 1]} : vector<32x32xf32> to vector<8x32xf32>
    %cst_137 = arith.constant dense<0.000000e+00> : vector<8x32xf32>
    %343 = tpu.matmul %341, %342, %cst_137 {dimension_numbers = #tpu.dot_dimension_numbers<[1], [0], [0], [1], [0, 0, 1, 1], [], []>} : vector<8x8xf32>, vector<8x32xf32>, vector<8x32xf32> -> vector<8x32xf32>
    %344 = arith.addf %323, %343 : vector<8x32xf32>
    %345 = vector.extract_strided_slice %276 {offsets = [0, 24], sizes = [8, 8], strides = [1, 1]} : vector<16x32xf32> to vector<8x8xf32>
    %346 = vector.extract_strided_slice %277 {offsets = [0, 24], sizes = [8, 8], strides = [1, 1]} : vector<16x32xf32> to vector<8x8xf32>
    %347 = vector.extract_strided_slice %278 {offsets = [0, 24], sizes = [8, 8], strides = [1, 1]} : vector<16x32xf32> to vector<8x8xf32>
    %348 = tpu.transpose %346, [1, 0] : vector<8x8xf32> -> vector<8x8xf32>
    %cst_138 = arith.constant dense<0.000000e+00> : vector<8x8xf32>
    %349 = tpu.matmul %345, %348, %cst_138 {dimension_numbers = #tpu.dot_dimension_numbers<[1], [0], [0], [1], [0, 0, 1, 1], [], []>} : vector<8x8xf32>, vector<8x8xf32>, vector<8x8xf32> -> vector<8x8xf32>
    %cst_139 = arith.constant 0.353553385 : f32
    %350 = vector.broadcast %cst_139 : f32 to vector<8x8xf32>
    %351 = arith.mulf %349, %350 : vector<8x8xf32>
    %cst_140 = arith.constant dense<0xFF800000> : vector<8xf32>
    %352 = vector.multi_reduction <maximumf>, %351, %cst_140 [1] : vector<8x8xf32> to vector<8xf32>
    %353 = vector.shape_cast %352 : vector<8xf32> to vector<8x1xf32>
    %354 = vector.broadcast %353 : vector<8x1xf32> to vector<8x8xf32>
    %355 = arith.subf %351, %354 : vector<8x8xf32>
    %356 = math.exp %355 : vector<8x8xf32>
    %cst_141 = arith.constant dense<0.000000e+00> : vector<8xf32>
    %357 = vector.multi_reduction <add>, %356, %cst_141 [1] : vector<8x8xf32> to vector<8xf32>
    %358 = vector.shape_cast %357 : vector<8xf32> to vector<8x1xf32>
    %359 = tpu.reciprocal %358 {approx = true} : vector<8x1xf32> -> vector<8x1xf32>
    %360 = vector.broadcast %359 : vector<8x1xf32> to vector<8x8xf32>
    %361 = arith.mulf %356, %360 : vector<8x8xf32>
    %cst_142 = arith.constant dense<0.000000e+00> : vector<8x8xf32>
    %362 = tpu.matmul %361, %347, %cst_142 {dimension_numbers = #tpu.dot_dimension_numbers<[1], [0], [0], [1], [0, 0, 1, 1], [], []>} : vector<8x8xf32>, vector<8x8xf32>, vector<8x8xf32> -> vector<8x8xf32>
    %363 = vector.extract_strided_slice %280 {offsets = [24, 0], sizes = [8, 32], strides = [1, 1]} : vector<32x32xf32> to vector<8x32xf32>
    %cst_143 = arith.constant dense<0.000000e+00> : vector<8x32xf32>
    %364 = tpu.matmul %362, %363, %cst_143 {dimension_numbers = #tpu.dot_dimension_numbers<[1], [0], [0], [1], [0, 0, 1, 1], [], []>} : vector<8x8xf32>, vector<8x32xf32>, vector<8x32xf32> -> vector<8x32xf32>
    %365 = arith.addf %344, %364 : vector<8x32xf32>
    %c1_144 = arith.constant 1 : index
    %c0_145 = arith.constant 0 : index
    %c0_146 = arith.constant 0 : index
    %366 = vector.load %arg7[%c1_144, %c0_145, %c0_146] : memref<2x1x32xf32, #tpu.memory_space<vmem>>, vector<1x1x32xf32>
    %367 = vector.shape_cast %366 : vector<1x1x32xf32> to vector<1x32xf32>
    %368 = vector.broadcast %367 : vector<1x32xf32> to vector<8x32xf32>
    %369 = arith.addf %365, %368 : vector<8x32xf32>
    %cst_147 = arith.constant 0.000000e+00 : f32
    %370 = vector.broadcast %cst_147 : f32 to vector<8x32xf32>
    %371 = vector.extract_strided_slice %276 {offsets = [8, 0], sizes = [8, 8], strides = [1, 1]} : vector<16x32xf32> to vector<8x8xf32>
    %372 = vector.extract_strided_slice %277 {offsets = [8, 0], sizes = [8, 8], strides = [1, 1]} : vector<16x32xf32> to vector<8x8xf32>
    %373 = vector.extract_strided_slice %278 {offsets = [8, 0], sizes = [8, 8], strides = [1, 1]} : vector<16x32xf32> to vector<8x8xf32>
    %374 = tpu.transpose %372, [1, 0] : vector<8x8xf32> -> vector<8x8xf32>
    %cst_148 = arith.constant dense<0.000000e+00> : vector<8x8xf32>
    %375 = tpu.matmul %371, %374, %cst_148 {dimension_numbers = #tpu.dot_dimension_numbers<[1], [0], [0], [1], [0, 0, 1, 1], [], []>} : vector<8x8xf32>, vector<8x8xf32>, vector<8x8xf32> -> vector<8x8xf32>
    %cst_149 = arith.constant 0.353553385 : f32
    %376 = vector.broadcast %cst_149 : f32 to vector<8x8xf32>
    %377 = arith.mulf %375, %376 : vector<8x8xf32>
    %cst_150 = arith.constant dense<0xFF800000> : vector<8xf32>
    %378 = vector.multi_reduction <maximumf>, %377, %cst_150 [1] : vector<8x8xf32> to vector<8xf32>
    %379 = vector.shape_cast %378 : vector<8xf32> to vector<8x1xf32>
    %380 = vector.broadcast %379 : vector<8x1xf32> to vector<8x8xf32>
    %381 = arith.subf %377, %380 : vector<8x8xf32>
    %382 = math.exp %381 : vector<8x8xf32>
    %cst_151 = arith.constant dense<0.000000e+00> : vector<8xf32>
    %383 = vector.multi_reduction <add>, %382, %cst_151 [1] : vector<8x8xf32> to vector<8xf32>
    %384 = vector.shape_cast %383 : vector<8xf32> to vector<8x1xf32>
    %385 = tpu.reciprocal %384 {approx = true} : vector<8x1xf32> -> vector<8x1xf32>
    %386 = vector.broadcast %385 : vector<8x1xf32> to vector<8x8xf32>
    %387 = arith.mulf %382, %386 : vector<8x8xf32>
    %cst_152 = arith.constant dense<0.000000e+00> : vector<8x8xf32>
    %388 = tpu.matmul %387, %373, %cst_152 {dimension_numbers = #tpu.dot_dimension_numbers<[1], [0], [0], [1], [0, 0, 1, 1], [], []>} : vector<8x8xf32>, vector<8x8xf32>, vector<8x8xf32> -> vector<8x8xf32>
    %389 = vector.extract_strided_slice %280 {offsets = [0, 0], sizes = [8, 32], strides = [1, 1]} : vector<32x32xf32> to vector<8x32xf32>
    %cst_153 = arith.constant dense<0.000000e+00> : vector<8x32xf32>
    %390 = tpu.matmul %388, %389, %cst_153 {dimension_numbers = #tpu.dot_dimension_numbers<[1], [0], [0], [1], [0, 0, 1, 1], [], []>} : vector<8x8xf32>, vector<8x32xf32>, vector<8x32xf32> -> vector<8x32xf32>
    %391 = arith.addf %370, %390 : vector<8x32xf32>
    %392 = vector.extract_strided_slice %276 {offsets = [8, 8], sizes = [8, 8], strides = [1, 1]} : vector<16x32xf32> to vector<8x8xf32>
    %393 = vector.extract_strided_slice %277 {offsets = [8, 8], sizes = [8, 8], strides = [1, 1]} : vector<16x32xf32> to vector<8x8xf32>
    %394 = vector.extract_strided_slice %278 {offsets = [8, 8], sizes = [8, 8], strides = [1, 1]} : vector<16x32xf32> to vector<8x8xf32>
    %395 = tpu.transpose %393, [1, 0] : vector<8x8xf32> -> vector<8x8xf32>
    %cst_154 = arith.constant dense<0.000000e+00> : vector<8x8xf32>
    %396 = tpu.matmul %392, %395, %cst_154 {dimension_numbers = #tpu.dot_dimension_numbers<[1], [0], [0], [1], [0, 0, 1, 1], [], []>} : vector<8x8xf32>, vector<8x8xf32>, vector<8x8xf32> -> vector<8x8xf32>
    %cst_155 = arith.constant 0.353553385 : f32
    %397 = vector.broadcast %cst_155 : f32 to vector<8x8xf32>
    %398 = arith.mulf %396, %397 : vector<8x8xf32>
    %cst_156 = arith.constant dense<0xFF800000> : vector<8xf32>
    %399 = vector.multi_reduction <maximumf>, %398, %cst_156 [1] : vector<8x8xf32> to vector<8xf32>
    %400 = vector.shape_cast %399 : vector<8xf32> to vector<8x1xf32>
    %401 = vector.broadcast %400 : vector<8x1xf32> to vector<8x8xf32>
    %402 = arith.subf %398, %401 : vector<8x8xf32>
    %403 = math.exp %402 : vector<8x8xf32>
    %cst_157 = arith.constant dense<0.000000e+00> : vector<8xf32>
    %404 = vector.multi_reduction <add>, %403, %cst_157 [1] : vector<8x8xf32> to vector<8xf32>
    %405 = vector.shape_cast %404 : vector<8xf32> to vector<8x1xf32>
    %406 = tpu.reciprocal %405 {approx = true} : vector<8x1xf32> -> vector<8x1xf32>
    %407 = vector.broadcast %406 : vector<8x1xf32> to vector<8x8xf32>
    %408 = arith.mulf %403, %407 : vector<8x8xf32>
    %cst_158 = arith.constant dense<0.000000e+00> : vector<8x8xf32>
    %409 = tpu.matmul %408, %394, %cst_158 {dimension_numbers = #tpu.dot_dimension_numbers<[1], [0], [0], [1], [0, 0, 1, 1], [], []>} : vector<8x8xf32>, vector<8x8xf32>, vector<8x8xf32> -> vector<8x8xf32>
    %410 = vector.extract_strided_slice %280 {offsets = [8, 0], sizes = [8, 32], strides = [1, 1]} : vector<32x32xf32> to vector<8x32xf32>
    %cst_159 = arith.constant dense<0.000000e+00> : vector<8x32xf32>
    %411 = tpu.matmul %409, %410, %cst_159 {dimension_numbers = #tpu.dot_dimension_numbers<[1], [0], [0], [1], [0, 0, 1, 1], [], []>} : vector<8x8xf32>, vector<8x32xf32>, vector<8x32xf32> -> vector<8x32xf32>
    %412 = arith.addf %391, %411 : vector<8x32xf32>
    %413 = vector.extract_strided_slice %276 {offsets = [8, 16], sizes = [8, 8], strides = [1, 1]} : vector<16x32xf32> to vector<8x8xf32>
    %414 = vector.extract_strided_slice %277 {offsets = [8, 16], sizes = [8, 8], strides = [1, 1]} : vector<16x32xf32> to vector<8x8xf32>
    %415 = vector.extract_strided_slice %278 {offsets = [8, 16], sizes = [8, 8], strides = [1, 1]} : vector<16x32xf32> to vector<8x8xf32>
    %416 = tpu.transpose %414, [1, 0] : vector<8x8xf32> -> vector<8x8xf32>
    %cst_160 = arith.constant dense<0.000000e+00> : vector<8x8xf32>
    %417 = tpu.matmul %413, %416, %cst_160 {dimension_numbers = #tpu.dot_dimension_numbers<[1], [0], [0], [1], [0, 0, 1, 1], [], []>} : vector<8x8xf32>, vector<8x8xf32>, vector<8x8xf32> -> vector<8x8xf32>
    %cst_161 = arith.constant 0.353553385 : f32
    %418 = vector.broadcast %cst_161 : f32 to vector<8x8xf32>
    %419 = arith.mulf %417, %418 : vector<8x8xf32>
    %cst_162 = arith.constant dense<0xFF800000> : vector<8xf32>
    %420 = vector.multi_reduction <maximumf>, %419, %cst_162 [1] : vector<8x8xf32> to vector<8xf32>
    %421 = vector.shape_cast %420 : vector<8xf32> to vector<8x1xf32>
    %422 = vector.broadcast %421 : vector<8x1xf32> to vector<8x8xf32>
    %423 = arith.subf %419, %422 : vector<8x8xf32>
    %424 = math.exp %423 : vector<8x8xf32>
    %cst_163 = arith.constant dense<0.000000e+00> : vector<8xf32>
    %425 = vector.multi_reduction <add>, %424, %cst_163 [1] : vector<8x8xf32> to vector<8xf32>
    %426 = vector.shape_cast %425 : vector<8xf32> to vector<8x1xf32>
    %427 = tpu.reciprocal %426 {approx = true} : vector<8x1xf32> -> vector<8x1xf32>
    %428 = vector.broadcast %427 : vector<8x1xf32> to vector<8x8xf32>
    %429 = arith.mulf %424, %428 : vector<8x8xf32>
    %cst_164 = arith.constant dense<0.000000e+00> : vector<8x8xf32>
    %430 = tpu.matmul %429, %415, %cst_164 {dimension_numbers = #tpu.dot_dimension_numbers<[1], [0], [0], [1], [0, 0, 1, 1], [], []>} : vector<8x8xf32>, vector<8x8xf32>, vector<8x8xf32> -> vector<8x8xf32>
    %431 = vector.extract_strided_slice %280 {offsets = [16, 0], sizes = [8, 32], strides = [1, 1]} : vector<32x32xf32> to vector<8x32xf32>
    %cst_165 = arith.constant dense<0.000000e+00> : vector<8x32xf32>
    %432 = tpu.matmul %430, %431, %cst_165 {dimension_numbers = #tpu.dot_dimension_numbers<[1], [0], [0], [1], [0, 0, 1, 1], [], []>} : vector<8x8xf32>, vector<8x32xf32>, vector<8x32xf32> -> vector<8x32xf32>
    %433 = arith.addf %412, %432 : vector<8x32xf32>
    %434 = vector.extract_strided_slice %276 {offsets = [8, 24], sizes = [8, 8], strides = [1, 1]} : vector<16x32xf32> to vector<8x8xf32>
    %435 = vector.extract_strided_slice %277 {offsets = [8, 24], sizes = [8, 8], strides = [1, 1]} : vector<16x32xf32> to vector<8x8xf32>
    %436 = vector.extract_strided_slice %278 {offsets = [8, 24], sizes = [8, 8], strides = [1, 1]} : vector<16x32xf32> to vector<8x8xf32>
    %437 = tpu.transpose %435, [1, 0] : vector<8x8xf32> -> vector<8x8xf32>
    %cst_166 = arith.constant dense<0.000000e+00> : vector<8x8xf32>
    %438 = tpu.matmul %434, %437, %cst_166 {dimension_numbers = #tpu.dot_dimension_numbers<[1], [0], [0], [1], [0, 0, 1, 1], [], []>} : vector<8x8xf32>, vector<8x8xf32>, vector<8x8xf32> -> vector<8x8xf32>
    %cst_167 = arith.constant 0.353553385 : f32
    %439 = vector.broadcast %cst_167 : f32 to vector<8x8xf32>
    %440 = arith.mulf %438, %439 : vector<8x8xf32>
    %cst_168 = arith.constant dense<0xFF800000> : vector<8xf32>
    %441 = vector.multi_reduction <maximumf>, %440, %cst_168 [1] : vector<8x8xf32> to vector<8xf32>
    %442 = vector.shape_cast %441 : vector<8xf32> to vector<8x1xf32>
    %443 = vector.broadcast %442 : vector<8x1xf32> to vector<8x8xf32>
    %444 = arith.subf %440, %443 : vector<8x8xf32>
    %445 = math.exp %444 : vector<8x8xf32>
    %cst_169 = arith.constant dense<0.000000e+00> : vector<8xf32>
    %446 = vector.multi_reduction <add>, %445, %cst_169 [1] : vector<8x8xf32> to vector<8xf32>
    %447 = vector.shape_cast %446 : vector<8xf32> to vector<8x1xf32>
    %448 = tpu.reciprocal %447 {approx = true} : vector<8x1xf32> -> vector<8x1xf32>
    %449 = vector.broadcast %448 : vector<8x1xf32> to vector<8x8xf32>
    %450 = arith.mulf %445, %449 : vector<8x8xf32>
    %cst_170 = arith.constant dense<0.000000e+00> : vector<8x8xf32>
    %451 = tpu.matmul %450, %436, %cst_170 {dimension_numbers = #tpu.dot_dimension_numbers<[1], [0], [0], [1], [0, 0, 1, 1], [], []>} : vector<8x8xf32>, vector<8x8xf32>, vector<8x8xf32> -> vector<8x8xf32>
    %452 = vector.extract_strided_slice %280 {offsets = [24, 0], sizes = [8, 32], strides = [1, 1]} : vector<32x32xf32> to vector<8x32xf32>
    %cst_171 = arith.constant dense<0.000000e+00> : vector<8x32xf32>
    %453 = tpu.matmul %451, %452, %cst_171 {dimension_numbers = #tpu.dot_dimension_numbers<[1], [0], [0], [1], [0, 0, 1, 1], [], []>} : vector<8x8xf32>, vector<8x32xf32>, vector<8x32xf32> -> vector<8x32xf32>
    %454 = arith.addf %433, %453 : vector<8x32xf32>
    %c1_172 = arith.constant 1 : index
    %c0_173 = arith.constant 0 : index
    %c0_174 = arith.constant 0 : index
    %455 = vector.load %arg7[%c1_172, %c0_173, %c0_174] : memref<2x1x32xf32, #tpu.memory_space<vmem>>, vector<1x1x32xf32>
    %456 = vector.shape_cast %455 : vector<1x1x32xf32> to vector<1x32xf32>
    %457 = vector.broadcast %456 : vector<1x32xf32> to vector<8x32xf32>
    %458 = arith.addf %454, %457 : vector<8x32xf32>
    %459 = tpu.concatenate %369, %458 in 0 : vector<8x32xf32>, vector<8x32xf32> -> vector<16x32xf32>
    %460 = arith.addf %459, %268 : vector<16x32xf32>
    %c1_175 = arith.constant 1 : index
    %c0_176 = arith.constant 0 : index
    %c0_177 = arith.constant 0 : index
    %461 = vector.load %arg12[%c1_175, %c0_176, %c0_177] : memref<2x1x32xf32, #tpu.memory_space<vmem>>, vector<1x1x32xf32>
    %462 = vector.shape_cast %461 : vector<1x1x32xf32> to vector<1x32xf32>
    %c1_178 = arith.constant 1 : index
    %c0_179 = arith.constant 0 : index
    %c0_180 = arith.constant 0 : index
    %463 = vector.load %arg13[%c1_178, %c0_179, %c0_180] : memref<2x1x32xf32, #tpu.memory_space<vmem>>, vector<1x1x32xf32>
    %464 = vector.shape_cast %463 : vector<1x1x32xf32> to vector<1x32xf32>
    %cst_181 = arith.constant dense<0.000000e+00> : vector<16xf32>
    %465 = vector.multi_reduction <add>, %460, %cst_181 [1] : vector<16x32xf32> to vector<16xf32>
    %466 = vector.shape_cast %465 : vector<16xf32> to vector<16x1xf32>
    %cst_182 = arith.constant 3.200000e+01 : f32
    %467 = vector.broadcast %cst_182 : f32 to vector<16x1xf32>
    %468 = arith.divf %466, %467 : vector<16x1xf32>
    %469 = vector.broadcast %468 : vector<16x1xf32> to vector<16x32xf32>
    %470 = arith.subf %460, %469 : vector<16x32xf32>
    %471 = arith.mulf %470, %470 : vector<16x32xf32>
    %cst_183 = arith.constant dense<0.000000e+00> : vector<16xf32>
    %472 = vector.multi_reduction <add>, %471, %cst_183 [1] : vector<16x32xf32> to vector<16xf32>
    %473 = vector.shape_cast %472 : vector<16xf32> to vector<16x1xf32>
    %cst_184 = arith.constant 3.200000e+01 : f32
    %474 = vector.broadcast %cst_184 : f32 to vector<16x1xf32>
    %475 = arith.divf %473, %474 : vector<16x1xf32>
    %476 = vector.broadcast %468 : vector<16x1xf32> to vector<16x32xf32>
    %477 = arith.subf %460, %476 : vector<16x32xf32>
    %cst_185 = arith.constant 9.99999974E-6 : f32
    %478 = vector.broadcast %cst_185 : f32 to vector<16x1xf32>
    %479 = arith.addf %475, %478 : vector<16x1xf32>
    %480 = math.rsqrt %479 : vector<16x1xf32>
    %481 = vector.broadcast %480 : vector<16x1xf32> to vector<16x32xf32>
    %482 = arith.mulf %477, %481 : vector<16x32xf32>
    %483 = vector.broadcast %462 : vector<1x32xf32> to vector<16x32xf32>
    %484 = arith.mulf %482, %483 : vector<16x32xf32>
    %485 = vector.broadcast %464 : vector<1x32xf32> to vector<16x32xf32>
    %486 = arith.addf %484, %485 : vector<16x32xf32>
    %c1_186 = arith.constant 1 : index
    %c0_187 = arith.constant 0 : index
    %c0_188 = arith.constant 0 : index
    %487 = vector.load %arg8[%c1_186, %c0_187, %c0_188] : memref<2x32x64xf32, #tpu.memory_space<vmem>>, vector<1x32x64xf32>
    %488 = vector.shape_cast %487 : vector<1x32x64xf32> to vector<32x64xf32>
    %cst_189 = arith.constant dense<0.000000e+00> : vector<16x64xf32>
    %489 = tpu.matmul %486, %488, %cst_189 {dimension_numbers = #tpu.dot_dimension_numbers<[1], [0], [0], [1], [0, 0, 1, 1], [], []>} : vector<16x32xf32>, vector<32x64xf32>, vector<16x64xf32> -> vector<16x64xf32>
    %c1_190 = arith.constant 1 : index
    %c0_191 = arith.constant 0 : index
    %c0_192 = arith.constant 0 : index
    %490 = vector.load %arg9[%c1_190, %c0_191, %c0_192] : memref<2x1x64xf32, #tpu.memory_space<vmem>>, vector<1x1x64xf32>
    %491 = vector.shape_cast %490 : vector<1x1x64xf32> to vector<1x64xf32>
    %492 = vector.broadcast %491 : vector<1x64xf32> to vector<16x64xf32>
    %493 = arith.addf %489, %492 : vector<16x64xf32>
    %cst_193 = arith.constant 0.000000e+00 : f32
    %494 = vector.broadcast %cst_193 : f32 to vector<16x64xf32>
    %495 = arith.maximumf %493, %494 : vector<16x64xf32>
    %c1_194 = arith.constant 1 : index
    %c0_195 = arith.constant 0 : index
    %c0_196 = arith.constant 0 : index
    %496 = vector.load %arg10[%c1_194, %c0_195, %c0_196] : memref<2x64x32xf32, #tpu.memory_space<vmem>>, vector<1x64x32xf32>
    %497 = vector.shape_cast %496 : vector<1x64x32xf32> to vector<64x32xf32>
    %cst_197 = arith.constant dense<0.000000e+00> : vector<16x32xf32>
    %498 = tpu.matmul %495, %497, %cst_197 {dimension_numbers = #tpu.dot_dimension_numbers<[1], [0], [0], [1], [0, 0, 1, 1], [], []>} : vector<16x64xf32>, vector<64x32xf32>, vector<16x32xf32> -> vector<16x32xf32>
    %c1_198 = arith.constant 1 : index
    %c0_199 = arith.constant 0 : index
    %c0_200 = arith.constant 0 : index
    %499 = vector.load %arg11[%c1_198, %c0_199, %c0_200] : memref<2x1x32xf32, #tpu.memory_space<vmem>>, vector<1x1x32xf32>
    %500 = vector.shape_cast %499 : vector<1x1x32xf32> to vector<1x32xf32>
    %501 = vector.broadcast %500 : vector<1x32xf32> to vector<16x32xf32>
    %502 = arith.addf %498, %501 : vector<16x32xf32>
    %503 = arith.addf %502, %486 : vector<16x32xf32>
    %c1_201 = arith.constant 1 : index
    %c0_202 = arith.constant 0 : index
    %c0_203 = arith.constant 0 : index
    %504 = vector.load %arg14[%c1_201, %c0_202, %c0_203] : memref<2x1x32xf32, #tpu.memory_space<vmem>>, vector<1x1x32xf32>
    %505 = vector.shape_cast %504 : vector<1x1x32xf32> to vector<1x32xf32>
    %c1_204 = arith.constant 1 : index
    %c0_205 = arith.constant 0 : index
    %c0_206 = arith.constant 0 : index
    %506 = vector.load %arg15[%c1_204, %c0_205, %c0_206] : memref<2x1x32xf32, #tpu.memory_space<vmem>>, vector<1x1x32xf32>
    %507 = vector.shape_cast %506 : vector<1x1x32xf32> to vector<1x32xf32>
    %cst_207 = arith.constant dense<0.000000e+00> : vector<16xf32>
    %508 = vector.multi_reduction <add>, %503, %cst_207 [1] : vector<16x32xf32> to vector<16xf32>
    %509 = vector.shape_cast %508 : vector<16xf32> to vector<16x1xf32>
    %cst_208 = arith.constant 3.200000e+01 : f32
    %510 = vector.broadcast %cst_208 : f32 to vector<16x1xf32>
    %511 = arith.divf %509, %510 : vector<16x1xf32>
    %512 = vector.broadcast %511 : vector<16x1xf32> to vector<16x32xf32>
    %513 = arith.subf %503, %512 : vector<16x32xf32>
    %514 = arith.mulf %513, %513 : vector<16x32xf32>
    %cst_209 = arith.constant dense<0.000000e+00> : vector<16xf32>
    %515 = vector.multi_reduction <add>, %514, %cst_209 [1] : vector<16x32xf32> to vector<16xf32>
    %516 = vector.shape_cast %515 : vector<16xf32> to vector<16x1xf32>
    %cst_210 = arith.constant 3.200000e+01 : f32
    %517 = vector.broadcast %cst_210 : f32 to vector<16x1xf32>
    %518 = arith.divf %516, %517 : vector<16x1xf32>
    %519 = vector.broadcast %511 : vector<16x1xf32> to vector<16x32xf32>
    %520 = arith.subf %503, %519 : vector<16x32xf32>
    %cst_211 = arith.constant 9.99999974E-6 : f32
    %521 = vector.broadcast %cst_211 : f32 to vector<16x1xf32>
    %522 = arith.addf %518, %521 : vector<16x1xf32>
    %523 = math.rsqrt %522 : vector<16x1xf32>
    %524 = vector.broadcast %523 : vector<16x1xf32> to vector<16x32xf32>
    %525 = arith.mulf %520, %524 : vector<16x32xf32>
    %526 = vector.broadcast %505 : vector<1x32xf32> to vector<16x32xf32>
    %527 = arith.mulf %525, %526 : vector<16x32xf32>
    %528 = vector.broadcast %507 : vector<1x32xf32> to vector<16x32xf32>
    %529 = arith.addf %527, %528 : vector<16x32xf32>
    %cst_212 = arith.constant 0.000000e+00 : f32
    %530 = vector.broadcast %cst_212 : f32 to vector<1x64xf32>
    %531 = vector.extract_strided_slice %529 {offsets = [0, 0], sizes = [1, 32], strides = [1, 1]} : vector<16x32xf32> to vector<1x32xf32>
    %c0_213 = arith.constant 0 : index
    %c0_214 = arith.constant 0 : index
    %532 = vector.load %arg16[%c0_213, %c0_214] : memref<256x64xf32, #tpu.memory_space<vmem>>, vector<32x64xf32>
    %cst_215 = arith.constant dense<0.000000e+00> : vector<1x64xf32>
    %533 = tpu.matmul %531, %532, %cst_215 {dimension_numbers = #tpu.dot_dimension_numbers<[1], [0], [0], [1], [0, 0, 1, 1], [], []>} : vector<1x32xf32>, vector<32x64xf32>, vector<1x64xf32> -> vector<1x64xf32>
    %534 = arith.addf %530, %533 : vector<1x64xf32>
    %535 = vector.extract_strided_slice %529 {offsets = [1, 0], sizes = [1, 32], strides = [1, 1]} : vector<16x32xf32> to vector<1x32xf32>
    %c32 = arith.constant 32 : index
    %c0_216 = arith.constant 0 : index
    %536 = vector.load %arg16[%c32, %c0_216] : memref<256x64xf32, #tpu.memory_space<vmem>>, vector<32x64xf32>
    %cst_217 = arith.constant dense<0.000000e+00> : vector<1x64xf32>
    %537 = tpu.matmul %535, %536, %cst_217 {dimension_numbers = #tpu.dot_dimension_numbers<[1], [0], [0], [1], [0, 0, 1, 1], [], []>} : vector<1x32xf32>, vector<32x64xf32>, vector<1x64xf32> -> vector<1x64xf32>
    %538 = arith.addf %534, %537 : vector<1x64xf32>
    %539 = vector.extract_strided_slice %529 {offsets = [2, 0], sizes = [1, 32], strides = [1, 1]} : vector<16x32xf32> to vector<1x32xf32>
    %c64 = arith.constant 64 : index
    %c0_218 = arith.constant 0 : index
    %540 = vector.load %arg16[%c64, %c0_218] : memref<256x64xf32, #tpu.memory_space<vmem>>, vector<32x64xf32>
    %cst_219 = arith.constant dense<0.000000e+00> : vector<1x64xf32>
    %541 = tpu.matmul %539, %540, %cst_219 {dimension_numbers = #tpu.dot_dimension_numbers<[1], [0], [0], [1], [0, 0, 1, 1], [], []>} : vector<1x32xf32>, vector<32x64xf32>, vector<1x64xf32> -> vector<1x64xf32>
    %542 = arith.addf %538, %541 : vector<1x64xf32>
    %543 = vector.extract_strided_slice %529 {offsets = [3, 0], sizes = [1, 32], strides = [1, 1]} : vector<16x32xf32> to vector<1x32xf32>
    %c96 = arith.constant 96 : index
    %c0_220 = arith.constant 0 : index
    %544 = vector.load %arg16[%c96, %c0_220] : memref<256x64xf32, #tpu.memory_space<vmem>>, vector<32x64xf32>
    %cst_221 = arith.constant dense<0.000000e+00> : vector<1x64xf32>
    %545 = tpu.matmul %543, %544, %cst_221 {dimension_numbers = #tpu.dot_dimension_numbers<[1], [0], [0], [1], [0, 0, 1, 1], [], []>} : vector<1x32xf32>, vector<32x64xf32>, vector<1x64xf32> -> vector<1x64xf32>
    %546 = arith.addf %542, %545 : vector<1x64xf32>
    %547 = vector.extract_strided_slice %529 {offsets = [4, 0], sizes = [1, 32], strides = [1, 1]} : vector<16x32xf32> to vector<1x32xf32>
    %c128 = arith.constant 128 : index
    %c0_222 = arith.constant 0 : index
    %548 = vector.load %arg16[%c128, %c0_222] : memref<256x64xf32, #tpu.memory_space<vmem>>, vector<32x64xf32>
    %cst_223 = arith.constant dense<0.000000e+00> : vector<1x64xf32>
    %549 = tpu.matmul %547, %548, %cst_223 {dimension_numbers = #tpu.dot_dimension_numbers<[1], [0], [0], [1], [0, 0, 1, 1], [], []>} : vector<1x32xf32>, vector<32x64xf32>, vector<1x64xf32> -> vector<1x64xf32>
    %550 = arith.addf %546, %549 : vector<1x64xf32>
    %551 = vector.extract_strided_slice %529 {offsets = [5, 0], sizes = [1, 32], strides = [1, 1]} : vector<16x32xf32> to vector<1x32xf32>
    %c160 = arith.constant 160 : index
    %c0_224 = arith.constant 0 : index
    %552 = vector.load %arg16[%c160, %c0_224] : memref<256x64xf32, #tpu.memory_space<vmem>>, vector<32x64xf32>
    %cst_225 = arith.constant dense<0.000000e+00> : vector<1x64xf32>
    %553 = tpu.matmul %551, %552, %cst_225 {dimension_numbers = #tpu.dot_dimension_numbers<[1], [0], [0], [1], [0, 0, 1, 1], [], []>} : vector<1x32xf32>, vector<32x64xf32>, vector<1x64xf32> -> vector<1x64xf32>
    %554 = arith.addf %550, %553 : vector<1x64xf32>
    %555 = vector.extract_strided_slice %529 {offsets = [6, 0], sizes = [1, 32], strides = [1, 1]} : vector<16x32xf32> to vector<1x32xf32>
    %c192 = arith.constant 192 : index
    %c0_226 = arith.constant 0 : index
    %556 = vector.load %arg16[%c192, %c0_226] : memref<256x64xf32, #tpu.memory_space<vmem>>, vector<32x64xf32>
    %cst_227 = arith.constant dense<0.000000e+00> : vector<1x64xf32>
    %557 = tpu.matmul %555, %556, %cst_227 {dimension_numbers = #tpu.dot_dimension_numbers<[1], [0], [0], [1], [0, 0, 1, 1], [], []>} : vector<1x32xf32>, vector<32x64xf32>, vector<1x64xf32> -> vector<1x64xf32>
    %558 = arith.addf %554, %557 : vector<1x64xf32>
    %559 = vector.extract_strided_slice %529 {offsets = [7, 0], sizes = [1, 32], strides = [1, 1]} : vector<16x32xf32> to vector<1x32xf32>
    %c224 = arith.constant 224 : index
    %c0_228 = arith.constant 0 : index
    %560 = vector.load %arg16[%c224, %c0_228] : memref<256x64xf32, #tpu.memory_space<vmem>>, vector<32x64xf32>
    %cst_229 = arith.constant dense<0.000000e+00> : vector<1x64xf32>
    %561 = tpu.matmul %559, %560, %cst_229 {dimension_numbers = #tpu.dot_dimension_numbers<[1], [0], [0], [1], [0, 0, 1, 1], [], []>} : vector<1x32xf32>, vector<32x64xf32>, vector<1x64xf32> -> vector<1x64xf32>
    %562 = arith.addf %558, %561 : vector<1x64xf32>
    %c0_230 = arith.constant 0 : index
    %c0_231 = arith.constant 0 : index
    %563 = vector.load %arg17[%c0_230, %c0_231] : memref<1x64xf32, #tpu.memory_space<vmem>>, vector<1x64xf32>
    %564 = arith.addf %562, %563 : vector<1x64xf32>
    %cst_232 = arith.constant 0.000000e+00 : f32
    %565 = vector.broadcast %cst_232 : f32 to vector<1x64xf32>
    %566 = arith.maximumf %564, %565 : vector<1x64xf32>
    %c0_233 = arith.constant 0 : index
    %c0_234 = arith.constant 0 : index
    %567 = vector.load %arg18[%c0_233, %c0_234] : memref<64x1xf32, #tpu.memory_space<vmem>>, vector<64x1xf32>
    %cst_235 = arith.constant dense<0.000000e+00> : vector<1x1xf32>
    %568 = tpu.matmul %566, %567, %cst_235 {dimension_numbers = #tpu.dot_dimension_numbers<[1], [0], [0], [1], [0, 0, 1, 1], [], []>} : vector<1x64xf32>, vector<64x1xf32>, vector<1x1xf32> -> vector<1x1xf32>
    %c0_236 = arith.constant 0 : index
    %c0_237 = arith.constant 0 : index
    %569 = vector.load %arg19[%c0_236, %c0_237] : memref<1x1xf32, #tpu.memory_space<vmem>>, vector<1x1xf32>
    %570 = arith.addf %568, %569 : vector<1x1xf32>
    %c0_238 = arith.constant 0 : index
    %c0_239 = arith.constant 0 : index
    %571 = vector.load %arg20[%c0_238, %c0_239] : memref<2x1xf32, #tpu.memory_space<vmem>>, vector<1x1xf32>
    tpu.vector_store %arg20[%c0_238, %c0_239], %570 {strides = array<i32>} : memref<2x1xf32, #tpu.memory_space<vmem>>, vector<1x1xf32>,
    %cst_240 = arith.constant 0.000000e+00 : f32
    %572 = vector.broadcast %cst_240 : f32 to vector<1x64xf32>
    %573 = vector.extract_strided_slice %529 {offsets = [8, 0], sizes = [1, 32], strides = [1, 1]} : vector<16x32xf32> to vector<1x32xf32>
    %c0_241 = arith.constant 0 : index
    %c0_242 = arith.constant 0 : index
    %574 = vector.load %arg16[%c0_241, %c0_242] : memref<256x64xf32, #tpu.memory_space<vmem>>, vector<32x64xf32>
    %cst_243 = arith.constant dense<0.000000e+00> : vector<1x64xf32>
    %575 = tpu.matmul %573, %574, %cst_243 {dimension_numbers = #tpu.dot_dimension_numbers<[1], [0], [0], [1], [0, 0, 1, 1], [], []>} : vector<1x32xf32>, vector<32x64xf32>, vector<1x64xf32> -> vector<1x64xf32>
    %576 = arith.addf %572, %575 : vector<1x64xf32>
    %577 = vector.extract_strided_slice %529 {offsets = [9, 0], sizes = [1, 32], strides = [1, 1]} : vector<16x32xf32> to vector<1x32xf32>
    %c32_244 = arith.constant 32 : index
    %c0_245 = arith.constant 0 : index
    %578 = vector.load %arg16[%c32_244, %c0_245] : memref<256x64xf32, #tpu.memory_space<vmem>>, vector<32x64xf32>
    %cst_246 = arith.constant dense<0.000000e+00> : vector<1x64xf32>
    %579 = tpu.matmul %577, %578, %cst_246 {dimension_numbers = #tpu.dot_dimension_numbers<[1], [0], [0], [1], [0, 0, 1, 1], [], []>} : vector<1x32xf32>, vector<32x64xf32>, vector<1x64xf32> -> vector<1x64xf32>
    %580 = arith.addf %576, %579 : vector<1x64xf32>
    %581 = vector.extract_strided_slice %529 {offsets = [10, 0], sizes = [1, 32], strides = [1, 1]} : vector<16x32xf32> to vector<1x32xf32>
    %c64_247 = arith.constant 64 : index
    %c0_248 = arith.constant 0 : index
    %582 = vector.load %arg16[%c64_247, %c0_248] : memref<256x64xf32, #tpu.memory_space<vmem>>, vector<32x64xf32>
    %cst_249 = arith.constant dense<0.000000e+00> : vector<1x64xf32>
    %583 = tpu.matmul %581, %582, %cst_249 {dimension_numbers = #tpu.dot_dimension_numbers<[1], [0], [0], [1], [0, 0, 1, 1], [], []>} : vector<1x32xf32>, vector<32x64xf32>, vector<1x64xf32> -> vector<1x64xf32>
    %584 = arith.addf %580, %583 : vector<1x64xf32>
    %585 = vector.extract_strided_slice %529 {offsets = [11, 0], sizes = [1, 32], strides = [1, 1]} : vector<16x32xf32> to vector<1x32xf32>
    %c96_250 = arith.constant 96 : index
    %c0_251 = arith.constant 0 : index
    %586 = vector.load %arg16[%c96_250, %c0_251] : memref<256x64xf32, #tpu.memory_space<vmem>>, vector<32x64xf32>
    %cst_252 = arith.constant dense<0.000000e+00> : vector<1x64xf32>
    %587 = tpu.matmul %585, %586, %cst_252 {dimension_numbers = #tpu.dot_dimension_numbers<[1], [0], [0], [1], [0, 0, 1, 1], [], []>} : vector<1x32xf32>, vector<32x64xf32>, vector<1x64xf32> -> vector<1x64xf32>
    %588 = arith.addf %584, %587 : vector<1x64xf32>
    %589 = vector.extract_strided_slice %529 {offsets = [12, 0], sizes = [1, 32], strides = [1, 1]} : vector<16x32xf32> to vector<1x32xf32>
    %c128_253 = arith.constant 128 : index
    %c0_254 = arith.constant 0 : index
    %590 = vector.load %arg16[%c128_253, %c0_254] : memref<256x64xf32, #tpu.memory_space<vmem>>, vector<32x64xf32>
    %cst_255 = arith.constant dense<0.000000e+00> : vector<1x64xf32>
    %591 = tpu.matmul %589, %590, %cst_255 {dimension_numbers = #tpu.dot_dimension_numbers<[1], [0], [0], [1], [0, 0, 1, 1], [], []>} : vector<1x32xf32>, vector<32x64xf32>, vector<1x64xf32> -> vector<1x64xf32>
    %592 = arith.addf %588, %591 : vector<1x64xf32>
    %593 = vector.extract_strided_slice %529 {offsets = [13, 0], sizes = [1, 32], strides = [1, 1]} : vector<16x32xf32> to vector<1x32xf32>
    %c160_256 = arith.constant 160 : index
    %c0_257 = arith.constant 0 : index
    %594 = vector.load %arg16[%c160_256, %c0_257] : memref<256x64xf32, #tpu.memory_space<vmem>>, vector<32x64xf32>
    %cst_258 = arith.constant dense<0.000000e+00> : vector<1x64xf32>
    %595 = tpu.matmul %593, %594, %cst_258 {dimension_numbers = #tpu.dot_dimension_numbers<[1], [0], [0], [1], [0, 0, 1, 1], [], []>} : vector<1x32xf32>, vector<32x64xf32>, vector<1x64xf32> -> vector<1x64xf32>
    %596 = arith.addf %592, %595 : vector<1x64xf32>
    %597 = vector.extract_strided_slice %529 {offsets = [14, 0], sizes = [1, 32], strides = [1, 1]} : vector<16x32xf32> to vector<1x32xf32>
    %c192_259 = arith.constant 192 : index
    %c0_260 = arith.constant 0 : index
    %598 = vector.load %arg16[%c192_259, %c0_260] : memref<256x64xf32, #tpu.memory_space<vmem>>, vector<32x64xf32>
    %cst_261 = arith.constant dense<0.000000e+00> : vector<1x64xf32>
    %599 = tpu.matmul %597, %598, %cst_261 {dimension_numbers = #tpu.dot_dimension_numbers<[1], [0], [0], [1], [0, 0, 1, 1], [], []>} : vector<1x32xf32>, vector<32x64xf32>, vector<1x64xf32> -> vector<1x64xf32>
    %600 = arith.addf %596, %599 : vector<1x64xf32>
    %601 = vector.extract_strided_slice %529 {offsets = [15, 0], sizes = [1, 32], strides = [1, 1]} : vector<16x32xf32> to vector<1x32xf32>
    %c224_262 = arith.constant 224 : index
    %c0_263 = arith.constant 0 : index
    %602 = vector.load %arg16[%c224_262, %c0_263] : memref<256x64xf32, #tpu.memory_space<vmem>>, vector<32x64xf32>
    %cst_264 = arith.constant dense<0.000000e+00> : vector<1x64xf32>
    %603 = tpu.matmul %601, %602, %cst_264 {dimension_numbers = #tpu.dot_dimension_numbers<[1], [0], [0], [1], [0, 0, 1, 1], [], []>} : vector<1x32xf32>, vector<32x64xf32>, vector<1x64xf32> -> vector<1x64xf32>
    %604 = arith.addf %600, %603 : vector<1x64xf32>
    %c0_265 = arith.constant 0 : index
    %c0_266 = arith.constant 0 : index
    %605 = vector.load %arg17[%c0_265, %c0_266] : memref<1x64xf32, #tpu.memory_space<vmem>>, vector<1x64xf32>
    %606 = arith.addf %604, %605 : vector<1x64xf32>
    %cst_267 = arith.constant 0.000000e+00 : f32
    %607 = vector.broadcast %cst_267 : f32 to vector<1x64xf32>
    %608 = arith.maximumf %606, %607 : vector<1x64xf32>
    %c0_268 = arith.constant 0 : index
    %c0_269 = arith.constant 0 : index
    %609 = vector.load %arg18[%c0_268, %c0_269] : memref<64x1xf32, #tpu.memory_space<vmem>>, vector<64x1xf32>
    %cst_270 = arith.constant dense<0.000000e+00> : vector<1x1xf32>
    %610 = tpu.matmul %608, %609, %cst_270 {dimension_numbers = #tpu.dot_dimension_numbers<[1], [0], [0], [1], [0, 0, 1, 1], [], []>} : vector<1x64xf32>, vector<64x1xf32>, vector<1x1xf32> -> vector<1x1xf32>
    %c0_271 = arith.constant 0 : index
    %c0_272 = arith.constant 0 : index
    %611 = vector.load %arg19[%c0_271, %c0_272] : memref<1x1xf32, #tpu.memory_space<vmem>>, vector<1x1xf32>
    %612 = arith.addf %610, %611 : vector<1x1xf32>
    %c1_273 = arith.constant 1 : index
    %c0_274 = arith.constant 0 : index
    %613 = vector.load %arg20[%c1_273, %c0_274] : memref<2x1xf32, #tpu.memory_space<vmem>>, vector<1x1xf32>
    tpu.vector_store %arg20[%c1_273, %c0_274], %612 {strides = array<i32>} : memref<2x1xf32, #tpu.memory_space<vmem>>, vector<1x1xf32>,
    return
  }
}

</mosaic_0001>

<bundles_post_ra>
// kernel: tpmodel_forward.1
= control target key start
LH: loop header
LB: loop body
LE: loop exit
PB: predicated region body
PF: predicated region fallthrough
CT: control target
= control target key end

     0   :  { %vm84_vm0 = vcmask 1043456   ;;  %vm77_vm1 = vcmask 31744   ;;  %vm178_vm2 = vcmask 261120   ;;  %v7408_v18 = vmov 0.0   ;;  %s7411_s21 = smov 96   ;;  %s8483_s22 = smov 56   ;;  %s8449_s1 = inlined_call_operand.vmem [shape: f32[4,32], index: 1, kind: input, shape index: {}]   ;;  %s8450_s0 = inlined_call_operand.vmem [shape: f32[16,4], index: 0, kind: input, shape index: {}]   ;;  %s8451_s4 = inlined_call_operand.vmem [shape: f32[2,32,96], index: 4, kind: input, shape index: {}]   ;;  %s8452_s2 = inlined_call_operand.vmem [shape: f32[1,32], index: 2, kind: input, shape index: {}]   ;;  %s8453_s3 = inlined_call_operand.vmem [shape: f32[16,32], index: 3, kind: input, shape index: {}]   ;;  %s8454_s5 = inlined_call_operand.vmem [shape: f32[2,1,96], index: 5, kind: input, shape index: {}]   ;;  %s8455_s6 = inlined_call_operand.vmem [shape: f32[2,32,32], index: 6, kind: input, shape index: {}]   ;;  %s8456_s7 = inlined_call_operand.vmem [shape: f32[2,1,32], index: 7, kind: input, shape index: {}]   ;;  %s8457_s12 = inlined_call_operand.vmem [shape: f32[2,1,32], index: 12, kind: input, shape index: {}]   ;;  %s8458_s13 = inlined_call_operand.vmem [shape: f32[2,1,32], index: 13, kind: input, shape index: {}]   ;;  %s8459_s8 = inlined_call_operand.vmem [shape: f32[2,32,64], index: 8, kind: input, shape index: {}]   ;;  %s8460_s10 = inlined_call_operand.vmem [shape: f32[2,64,32], index: 10, kind: input, shape index: {}]   ;;  %s8461_s9 = inlined_call_operand.vmem [shape: f32[2,1,64], index: 9, kind: input, shape index: {}]   ;;  %s8462_s11 = inlined_call_operand.vmem [shape: f32[2,1,32], index: 11, kind: input, shape index: {}]   ;;  %s8463_s14 = inlined_call_operand.vmem [shape: f32[2,1,32], index: 14, kind: input, shape index: {}]   ;;  %s8464_s15 = inlined_call_operand.vmem [shape: f32[2,1,32], index: 15, kind: input, shape index: {}]   ;;  %s8465_s16 = inlined_call_operand.vmem [shape: f32[256,64], index: 16, kind: input, shape index: {}]   ;;  %s8466_s18 = inlined_call_operand.vmem [shape: f32[64,1], index: 18, kind: input, shape index: {}]   ;;  %s8467_s19 = inlined_call_operand.<no memory space> [shape: f32[1,1], index: 19, kind: input, shape index: {}]   ;;  %s8468_s17 = inlined_call_operand.vmem [shape: f32[1,64], index: 17, kind: input, shape index: {}]   ;;  %s8469_s20 = inlined_call_operand.vmem [shape: f32[2,1], index: 20, kind: output, shape index: {}]  }
   0x1   :  { %8487 = sst [smem:[#allocation3_spill]] %s8449_s1  ;;  %vm7409_vm3 = vmmov 0   ;;  %v6210_v19 = vld [vmem:[%s8454_s5] ss:$0 sm:$0xff]  ;;  %s7410_s1 = smov 120   ;;  %vm267_vm4 = vcmask 64512  }
   0x2   :  { %8488 = sst [smem:[#allocation4_spill]] %s8450_s0  ;;  %s8492_s23 = sld [smem:[#allocation3_spill]]  ;;  %v7610_v45 = vld [vmem:[%s8455_s6 + $0x8] sm:$0xff]  ;;  %v7625_v54 = vld [vmem:[%s8455_s6] sm:$0xff]  ;;  %vm2344_vm5 = vcmask 523264   ;;  %vm5492_vm6 = vcmask 0  }
   0x3   :  { %8489 = sst [smem:[#allocation5_spill]] %s8451_s4  ;;  %s8493_s25 = sld [smem:[#allocation4_spill]] }
   0x4   :  { %8490 = sst [smem:[#allocation6_spill]] %s8452_s2  ;;  %s7412_s0 = smov 88  }
   0x5   :  { %8491 = sst [smem:[#allocation7_spill]] %s8453_s3  ;;  %s8494_s3 = sld [smem:[#allocation5_spill]] }
   0x6   :  { %s8495_s4 = sld [smem:[#allocation6_spill]]  ;;  %s8496_s26 = sld [smem:[#allocation7_spill]] }
   0x7   :  { %s8485_s24 = smov 80   ;;  %s8475_s28 = smov 72  }
   0x8   :  { %v69_v0 = vld [vmem:[%s8492_s23] sm:$0xf]  ;;  %s7414_s23 = smov 64   ;;  %s8477_s29 = smov 104  }
   0x9   :  { %v67_v1 = vld [vmem:[%s8493_s25] sm:$0xff]  ;;  %v68_v2 = vld [vmem:[%s8493_s25 + $0x8] sm:$0xff]  ;;  %6589 = vmatprep.subr.msk.mxu0 %vm84_vm0, %v69_v0  ;;  %s8479_s30 = smov 48   ;;  %s8500_s27 = smov 48  }
   0xa   :  { %6591 = vmatprep.mubr.msk.f32.mxu0 %vm77_vm1, %v67_v1  ;;  %6590 = vmatpush3.msk.msra.mxu0 %vm84_vm0, %v69_v0 }
   0xb   :  { %v167_v3 = vld [vmem:[%s8494_s3] sm:$0xff]  ;;  %v168_v4 = vld [vmem:[%s8494_s3 + $0x8] sm:$0xff]  ;;  %6592 = vmatmul.mubr.msk.f32.vlgmr.msra.gmra.mrb[0].mxu0 %vm77_vm1, %v68_v2  ;;  %v169_v6 = vld [vmem:[%s8494_s3 + $0x10] sm:$0xff]  ;;  %6610 = vmatprep.subr.mxu0 %v7408_v18 }
   0xc   :  { %v7130_v5 = vpack.c.bf16 %v168_v4, %v167_v3  ;;  %v170_v7 = vld [vmem:[%s8494_s3 + $0x18] sm:$0xff]  ;;  %v6206_v9 = vld [vmem:[%s8495_s4] ss:$0 sm:$0xff]  ;;  %v164_v14 = vld [vmem:[%s8496_s26 + $0x8] sm:$0xff]  ;;  %6612 = vmatprep.mubr.msk.f32.mxu0 %vm7409_vm3, %v7408_v18  ;;  %s8481_s4 = smov 112  }
   0xd   :  { %v7134_v8 = vpack.c.bf16 %v170_v7, %v169_v6  ;;  %v163_v13 = vld [vmem:[%s8496_s26] sm:$0xff]  ;;  %s8473_s26 = smov 40  }
   0xe   :  { %7131 = vmatprep.subr.bf16.mxu1 %v7130_v5 }
   0xf   :  { %7133 = vmatpush3.bf16.msra.mxu1 %v7130_v5 }
  0x10   :  { %7135 = vmatprep.subr.bf16.mxu1 %v7134_v8 }
  0x13   :  { %7137 = vmatpush3.bf16.msra.mxu1 %v7134_v8 }
  0x14   :  { %6605 = vmatprep.subr.mxu1 %v7408_v18 }
  0xde   :  { %v6593_v10 = vpop.f32.mrb[0].mxu0 }
  0xdf   :  { %v160_v11 = vadd.f32 %v6593_v10, %v6206_v9  ;;  %v154_v12 = vpop.f32.mrb[1].mxu0 }
  0xe0   :  { %v155_v15 = vadd.f32 %v6206_v9, %v154_v12 }
  0xe1   :  { %v7559_v17 = vadd.f32 %v164_v14, %v160_v11 }
  0xe2   :  { %v7557_v16 = vadd.f32 %v163_v13, %v155_v15 }
  0xe4   :  { %6602 = vmatprep.mubr.msk.f32.mxu1 %vm178_vm2, %v7557_v16 }
  0xe5   :  { %6603 = vmatmul.mubr.msk.f32.vlgmr.msra.gmra.mrb[0].mxu1 %vm178_vm2, %v7559_v17 }
  0xe6   :  { %6607 = vmatprep.mubr.msk.f32.mxu1 %vm7409_vm3, %v7408_v18 }
 0x1b8   :  { %v6604_v20 = vpop.f32.mrb[0].mxu1 }
 0x1b9   :  { %v7574_v21 = vadd.f32 %v6604_v20, %v6210_v19  ;;  %v251_v22 = vpop.f32.mrb[1].mxu1  ;;  %v7664_v20 = vld [vmem:[%s8455_s6 + $0x10] sm:$0xff] }
 0x1ba   :  { %v7576_v23 = vadd.f32 %v6210_v19, %v251_v22 }
 0x1bc   :  { %430 = vrot.lane.b32.xlu1 %v7576_v23, %s7410_s1  ;;  %265 = vrot.lane.b32.xlu0 %v7576_v23, %s7411_s21 }
 0x1c0   :  { %432 = vrot.lane.b32.xlu0 %v7576_v23, %s7412_s0 }
 0x22e   :  { %v266_v24 = vpop.permute.xlu0 %265  ;;  %v431_v26 = vpop.permute.xlu1 %430 }
 0x22f   :  { %6606 = vmatpush3.xpose.msk.msra.mxu1 %vm267_vm4, %v266_v24 }
 0x230   :  { %6615 = vmatprep.subr.mxu1 %v7408_v18 }
 0x232   :  { %6608 = vmatmul.mubr.msk.f32.vlgmr.msra.gmra.mrb[2].mxu1 %vm267_vm4, %v7576_v23  ;;  %v433_v25 = vpop.permute.xlu0 %432 }
 0x233   :  { %6616 = vmatpush3.xpose.msk.msra.mxu1 %vm267_vm4, %v433_v25  ;;  %6617 = vmatprep.mubr.msk.f32.mxu1 %vm7409_vm3, %v7408_v18 }
 0x234   :  { %6625 = vmatprep.subr.mxu1 %v7408_v18 }
 0x236   :  { %6618 = vmatmul.mubr.msk.f32.vlgmr.msra.gmra.mrb[4].mxu1 %vm267_vm4, %v431_v26 }
 0x237   :  { %6627 = vmatprep.mubr.msk.f32.mxu1 %vm7409_vm3, %v7408_v18  ;;  %6626 = vmatpush3.msra.mxu1 %v7610_v45 }
 0x238   :  { %6635 = vmatprep.subr.mxu1 %v7408_v18 }
 0x305   :  { %v338_v27 = vpop.f32.mrb[2].mxu1 }
 0x306   :  { %v342_v28 = vmul.f32 0.35355338, %v338_v27  ;;  %v6609_v29 = vpop.f32.mrb[3].mxu1 }
 0x308   :  { %v343_v30 = vsel %vm267_vm4, %v342_v28, -inf }
 0x309   :  { %344 = vmax.xlane.f32.xlu1 %v343_v30  ;;  %v504_v31 = vpop.f32.mrb[4].mxu1 }
 0x30a   :  { %v508_v32 = vmul.f32 0.35355338, %v504_v31  ;;  %v6619_v33 = vpop.f32.mrb[5].mxu1 }
 0x30c   :  { %v509_v34 = vsel %vm267_vm4, %v508_v32, -inf }
 0x30d   :  { %510 = vmax.xlane.f32.xlu0 %v509_v34 }
 0x396   :  { %v345_v35 = vpop.xlane.xlu1 %344 }
 0x397   :  { %v346_v36 = vsub.f32 %v342_v28, %v345_v35 }
 0x399   :  { %v347_v37 = vmul.f32 1.442695, %v346_v36 }
 0x39a   :  { %v511_v38 = vpop.xlane.xlu0 %510 }
 0x39b   :  { %7328 = vpow2.f32 %v347_v37  ;;  %v512_v39 = vsub.f32 %v508_v32, %v511_v38 }
 0x39d   :  { %v513_v40 = vmul.f32 1.442695, %v512_v39 }
 0x39f   :  { %7330 = vpow2.f32 %v513_v40 }
 0x3a5   :  { %v7329_v41 = vpop.eup %7328 }
 0x3a6   :  { %v349_v42 = vsel %vm267_vm4, %v7329_v41, 0.0 }
 0x3a7   :  { %350 = vadd.xlane.f32.xlu0 %v349_v42 }
 0x3a9   :  { %v7331_v43 = vpop.eup %7330 }
 0x3aa   :  { %v515_v44 = vsel %vm267_vm4, %v7331_v43, 0.0 }
 0x3ab   :  { %516 = vadd.xlane.f32.xlu1 %v515_v44 }
 0x3bc   :  { %520 = vrot.lane.b32.xlu1 %v7576_v23, %s8483_s22 }
 0x3bd   :  { %354 = vrot.lane.b32.xlu0 %v7576_v23, %s7414_s23 }
 0x3c0   :  { %744 = vrot.lane.b32.xlu1 %v7576_v23, %s8485_s24 }
 0x3c1   :  { %742 = vrot.lane.b32.xlu0 %v7576_v23, %s8481_s4 }
 0x434   :  { %v351_v46 = vpop.xlane.xlu0 %350 }
 0x435   :  { %7332 = vrcp.f32 %v351_v46 }
 0x438   :  { %v517_v47 = vpop.xlane.xlu1 %516  ;;  %v355_v48 = vpop.permute.xlu0 %354 }
 0x439   :  { %7334 = vrcp.f32 %v517_v47  ;;  %6611 = vmatpush3.msra.mxu0 %v355_v48 }
 0x43a   :  { %6620 = vmatprep.subr.mxu0 %v7408_v18 }
 0x43c   :  { %v521_v51 = vpop.permute.xlu1 %520  ;;  %v743_v60 = vpop.permute.xlu0 %742 }
 0x43f   :  { %v7333_v49 = vpop.eup %7332 }
 0x440   :  { %v353_v50 = vmul.f32 %v7333_v49, %v7329_v41  ;;  %v745_v58 = vpop.permute.xlu1 %744 }
 0x442   :  { %6613 = vmatmul.mubr.msk.f32.vlgmr.msra.gmra.mrb[2].mxu0 %vm267_vm4, %v353_v50 }
 0x443   :  { %v7335_v52 = vpop.eup %7334  ;;  %6621 = vmatpush3.msra.mxu0 %v521_v51  ;;  %6622 = vmatprep.mubr.msk.f32.mxu0 %vm7409_vm3, %v7408_v18 }
 0x444   :  { %v519_v53 = vmul.f32 %v7335_v52, %v7331_v43  ;;  %6630 = vmatprep.subr.mxu0 %v7408_v18  ;;  %v7700_v43 = vld [vmem:[%s8455_s6 + $0x18] sm:$0xff] }
 0x446   :  { %6623 = vmatmul.mubr.msk.f32.vlgmr.msra.gmra.mrb[4].mxu0 %vm267_vm4, %v519_v53 }
 0x447   :  { %6632 = vmatprep.mubr.msk.f32.mxu0 %vm7409_vm3, %v7408_v18  ;;  %6631 = vmatpush3.msra.mxu0 %v7625_v54 }
 0x448   :  { %6640 = vmatprep.subr.mxu0 %v7408_v18 }
 0x515   :  { %v426_v55 = vpop.f32.mrb[2].mxu0 }
 0x516   :  { %v6614_v56 = vpop.f32.mrb[3].mxu0  ;;  %6633 = vmatmul.mubr.msk.f32.vlgmr.msra.gmra.mrb[6].mxu0 %vm267_vm4, %v426_v55 }
 0x517   :  { %6642 = vmatprep.mubr.msk.f32.mxu0 %vm7409_vm3, %v7408_v18 }
 0x519   :  { %v592_v57 = vpop.f32.mrb[4].mxu0 }
 0x51a   :  { %v6624_v59 = vpop.f32.mrb[5].mxu0  ;;  %6628 = vmatmul.mubr.msk.f32.vlgmr.msra.gmra.mrb[6].mxu1 %vm267_vm4, %v592_v57 }
 0x51b   :  { %6636 = vmatpush3.xpose.msk.msra.mxu1 %vm267_vm4, %v745_v58  ;;  %6637 = vmatprep.mubr.msk.f32.mxu1 %vm7409_vm3, %v7408_v18 }
 0x51c   :  { %6645 = vmatprep.subr.mxu1 %v7408_v18 }
 0x51e   :  { %6638 = vmatmul.mubr.msk.f32.vlgmr.msra.gmra.mrb[8].mxu1 %vm267_vm4, %v743_v60 }
 0x51f   :  { %6647 = vmatprep.mubr.msk.f32.mxu1 %vm7409_vm3, %v7408_v18  ;;  %6646 = vmatpush3.msra.mxu1 %v7664_v20 }
 0x520   :  { %6655 = vmatprep.subr.mxu1 %v7408_v18 }
 0x5e9   :  { %v738_v61 = vpop.f32.mrb[6].mxu0 }
 0x5ea   :  { %v6634_v62 = vpop.f32.mrb[7].mxu0 }
 0x5ed   :  { %v665_v63 = vpop.f32.mrb[6].mxu1 }
 0x5ee   :  { %v7640_v0 = vadd.f32 %v738_v61, %v665_v63  ;;  %v6629_v1 = vpop.f32.mrb[7].mxu1 }
 0x5f1   :  { %v816_v2 = vpop.f32.mrb[8].mxu1 }
 0x5f2   :  { %v820_v3 = vmul.f32 0.35355338, %v816_v2  ;;  %v6639_v4 = vpop.f32.mrb[9].mxu1 }
 0x5f4   :  { %v821_v5 = vsel %vm267_vm4, %v820_v3, -inf }
 0x5f5   :  { %822 = vmax.xlane.f32.xlu1 %v821_v5 }
 0x606   :  { %984 = vrot.lane.b32.xlu1 %v7576_v23, %s8475_s28 }
 0x60a   :  { %982 = vrot.lane.b32.xlu1 %v7576_v23, %s8477_s29 }
 0x60e   :  { %1231 = vrot.lane.b32.xlu1 %v7574_v21, %s7411_s21 }
 0x682   :  { %v823_v6 = vpop.xlane.xlu1 %822 }
 0x683   :  { %v824_v7 = vsub.f32 %v820_v3, %v823_v6 }
 0x685   :  { %v825_v8 = vmul.f32 1.442695, %v824_v7 }
 0x686   :  { %v985_v14 = vpop.permute.xlu1 %984 }
 0x687   :  { %7336 = vpow2.f32 %v825_v8 }
 0x68a   :  { %v983_v19 = vpop.permute.xlu1 %982 }
 0x68e   :  { %v1232_v37 = vpop.permute.xlu1 %1231 }
 0x691   :  { %v7337_v9 = vpop.eup %7336 }
 0x692   :  { %v827_v10 = vsel %vm267_vm4, %v7337_v9, 0.0 }
 0x693   :  { %828 = vadd.xlane.f32.xlu0 %v827_v10 }
 0x6a9   :  { %832 = vrot.lane.b32.xlu0 %v7576_v23, %s8479_s30 }
 0x720   :  { %v829_v11 = vpop.xlane.xlu0 %828 }
 0x721   :  { %7338 = vrcp.f32 %v829_v11 }
 0x724   :  { %v833_v12 = vpop.permute.xlu0 %832 }
 0x725   :  { %6641 = vmatpush3.msra.mxu0 %v833_v12 }
 0x726   :  { %6650 = vmatprep.subr.mxu0 %v7408_v18 }
 0x72b   :  { %v7339_v13 = vpop.eup %7338 }
 0x72c   :  { %v831_v15 = vmul.f32 %v7339_v13, %v7337_v9 }
 0x72e   :  { %6643 = vmatmul.mubr.msk.f32.vlgmr.msra.gmra.mrb[8].mxu0 %vm267_vm4, %v831_v15 }
 0x72f   :  { %6651 = vmatpush3.xpose.msk.msra.mxu0 %vm267_vm4, %v985_v14  ;;  %6652 = vmatprep.mubr.msk.f32.mxu0 %vm7409_vm3, %v7408_v18 }
 0x730   :  { %6660 = vmatprep.subr.mxu0 %v7408_v18 }
 0x732   :  { %6653 = vmatmul.mubr.msk.f32.vlgmr.msra.gmra.mrb[10].mxu0 %vm267_vm4, %v983_v19 }
 0x733   :  { %6662 = vmatprep.mubr.msk.f32.mxu0 %vm7409_vm3, %v7408_v18  ;;  %6661 = vmatpush3.msra.mxu0 %v7700_v43 }
 0x734   :  { %6670 = vmatprep.subr.mxu0 %v7408_v18 }
 0x801   :  { %v904_v22 = vpop.f32.mrb[8].mxu0 }
 0x802   :  { %v6644_v24 = vpop.f32.mrb[9].mxu0  ;;  %6648 = vmatmul.mubr.msk.f32.vlgmr.msra.gmra.mrb[10].mxu1 %vm267_vm4, %v904_v22 }
 0x803   :  { %6657 = vmatprep.mubr.msk.f32.mxu1 %vm7409_vm3, %v7408_v18 }
 0x805   :  { %v1056_v25 = vpop.f32.mrb[10].mxu0 }
 0x806   :  { %v1060_v26 = vmul.f32 0.35355338, %v1056_v25  ;;  %v6654_v27 = vpop.f32.mrb[11].mxu0 }
 0x808   :  { %v1061_v28 = vsel %vm267_vm4, %v1060_v26, -inf }
 0x809   :  { %1062 = vmax.xlane.f32.xlu0 %v1061_v28 }
 0x81f   :  { %1072 = vrot.lane.b32.xlu0 %v7576_v23, %s8473_s26 }
 0x823   :  { %1397 = vrot.lane.b32.xlu0 %v7574_v21, %s7412_s0 }
 0x896   :  { %v1063_v29 = vpop.xlane.xlu0 %1062 }
 0x897   :  { %v1064_v30 = vsub.f32 %v1060_v26, %v1063_v29 }
 0x899   :  { %v1065_v31 = vmul.f32 1.442695, %v1064_v30 }
 0x89a   :  { %v1073_v32 = vpop.permute.xlu0 %1072 }
 0x89b   :  { %7340 = vpow2.f32 %v1065_v31  ;;  %6656 = vmatpush3.msra.mxu1 %v1073_v32 }
 0x89c   :  { %6665 = vmatprep.subr.mxu1 %v7408_v18 }
 0x89e   :  { %v1398_v41 = vpop.permute.xlu0 %1397 }
 0x8a5   :  { %v7341_v33 = vpop.eup %7340 }
 0x8a6   :  { %v1067_v34 = vsel %vm267_vm4, %v7341_v33, 0.0 }
 0x8a7   :  { %1068 = vadd.xlane.f32.xlu1 %v1067_v34 }
 0x8b8   :  { %1395 = vrot.lane.b32.xlu1 %v7574_v21, %s7410_s1 }
 0x8d5   :  { %v977_v35 = vpop.f32.mrb[10].mxu1 }
 0x8d6   :  { %v981_v23 = vadd.f32 %v977_v35, %v7640_v0  ;;  %v6649_v36 = vpop.f32.mrb[11].mxu1 }
 0x934   :  { %v1069_v38 = vpop.xlane.xlu1 %1068 }
 0x935   :  { %7342 = vrcp.f32 %v1069_v38 }
 0x938   :  { %v1396_v42 = vpop.permute.xlu1 %1395 }
 0x93f   :  { %v7343_v39 = vpop.eup %7342 }
 0x940   :  { %v1071_v40 = vmul.f32 %v7343_v39, %v7341_v33 }
 0x942   :  { %6658 = vmatmul.mubr.msk.f32.vlgmr.msra.gmra.mrb[12].mxu1 %vm267_vm4, %v1071_v40 }
 0x943   :  { %6666 = vmatpush3.xpose.msk.msra.mxu1 %vm267_vm4, %v1232_v37  ;;  %6667 = vmatprep.mubr.msk.f32.mxu1 %vm7409_vm3, %v7408_v18 }
 0x944   :  { %6675 = vmatprep.subr.mxu1 %v7408_v18 }
 0x946   :  { %6668 = vmatmul.mubr.msk.f32.vlgmr.msra.gmra.mrb[14].mxu1 %vm267_vm4, %v7574_v21 }
 0x947   :  { %6676 = vmatpush3.xpose.msk.msra.mxu1 %vm267_vm4, %v1398_v41  ;;  %6677 = vmatprep.mubr.msk.f32.mxu1 %vm7409_vm3, %v7408_v18  ;;  %v6229_v41 = vld [vmem:[%s8456_s7] ss:$0 sm:$0xff] }
 0x948   :  { %6685 = vmatprep.subr.mxu1 %v7408_v18 }
 0x94a   :  { %6678 = vmatmul.mubr.msk.f32.vlgmr.msra.gmra.mrb[16].mxu1 %vm267_vm4, %v1396_v42 }
 0x94b   :  { %6686 = vmatpush3.msra.mxu1 %v7610_v45  ;;  %6687 = vmatprep.mubr.msk.f32.mxu1 %vm7409_vm3, %v7408_v18 }
 0x94c   :  { %6695 = vmatprep.subr.mxu1 %v7408_v18 }
 0xa15   :  { %v1144_v44 = vpop.f32.mrb[12].mxu1 }
 0xa16   :  { %v6659_v46 = vpop.f32.mrb[13].mxu1  ;;  %6663 = vmatmul.mubr.msk.f32.vlgmr.msra.gmra.mrb[12].mxu0 %vm267_vm4, %v1144_v44 }
 0xa17   :  { %6672 = vmatprep.mubr.msk.f32.mxu0 %vm7409_vm3, %v7408_v18 }
 0xa19   :  { %v1303_v45 = vpop.f32.mrb[14].mxu1 }
 0xa1a   :  { %v1307_v47 = vmul.f32 0.35355338, %v1303_v45  ;;  %v6669_v48 = vpop.f32.mrb[15].mxu1 }
 0xa1c   :  { %v1308_v49 = vsel %vm267_vm4, %v1307_v47, -inf }
 0xa1d   :  { %1309 = vmax.xlane.f32.xlu0 %v1308_v49  ;;  %v1469_v50 = vpop.f32.mrb[16].mxu1 }
 0xa1e   :  { %v1473_v51 = vmul.f32 0.35355338, %v1469_v50  ;;  %v6679_v52 = vpop.f32.mrb[17].mxu1 }
 0xa20   :  { %v1474_v53 = vsel %vm267_vm4, %v1473_v51, -inf }
 0xa21   :  { %1475 = vmax.xlane.f32.xlu1 %v1474_v53 }
 0xa32   :  { %1319 = vrot.lane.b32.xlu1 %v7574_v21, %s7414_s23 }
 0xa36   :  { %1709 = vrot.lane.b32.xlu1 %v7574_v21, %s8485_s24  ;;  %s8498_s24 = smov 56  }
 0xa3a   :  { %1707 = vrot.lane.b32.xlu1 %v7574_v21, %s8481_s4  ;;  %s8499_s4 = smov 112  }
 0xaaa   :  { %v1310_v55 = vpop.xlane.xlu0 %1309 }
 0xaab   :  { %v1311_v56 = vsub.f32 %v1307_v47, %v1310_v55 }
 0xaad   :  { %v1312_v57 = vmul.f32 1.442695, %v1311_v56 }
 0xaae   :  { %v1476_v58 = vpop.xlane.xlu1 %1475 }
 0xaaf   :  { %7344 = vpow2.f32 %v1312_v57  ;;  %v1477_v59 = vsub.f32 %v1473_v51, %v1476_v58 }
 0xab1   :  { %v1478_v60 = vmul.f32 1.442695, %v1477_v59 }
 0xab2   :  { %v1320_v61 = vpop.permute.xlu1 %1319 }
 0xab3   :  { %7346 = vpow2.f32 %v1478_v60  ;;  %6671 = vmatpush3.msra.mxu0 %v1320_v61 }
 0xab4   :  { %6680 = vmatprep.subr.mxu0 %v7408_v18 }
 0xab6   :  { %v1710_v14 = vpop.permute.xlu1 %1709 }
 0xab9   :  { %v7345_v62 = vpop.eup %7344 }
 0xaba   :  { %v1314_v63 = vsel %vm267_vm4, %v7345_v62, 0.0 }
 0xabb   :  { %1315 = vadd.xlane.f32.xlu0 %v1314_v63 }
 0xabd   :  { %v7347_v0 = vpop.eup %7346 }
 0xabe   :  { %v1480_v1 = vsel %vm267_vm4, %v7347_v0, 0.0 }
 0xabf   :  { %1481 = vadd.xlane.f32.xlu0 %v1480_v1 }
 0xad5   :  { %1485 = vrot.lane.b32.xlu0 %v7574_v21, %s8483_s22 }
 0xae9   :  { %v1217_v2 = vpop.f32.mrb[12].mxu0 }
 0xaea   :  { %v7720_v3 = vadd.f32 %v1217_v2, %v981_v23  ;;  %v6664_v4 = vpop.f32.mrb[13].mxu0 }
 0xaec   :  { %v1229_v46 = vadd.f32 %v6229_v41, %v7720_v3 }
 0xaee   :  { %v2188_v49 = vadd.f32 %v1229_v46, %v7557_v16 }
 0xaf0   :  { %v2192_v50 = vsel %vm178_vm2, %v2188_v49, 0.0 }
 0xb48   :  { %v1316_v5 = vpop.xlane.xlu0 %1315 }
 0xb49   :  { %7348 = vrcp.f32 %v1316_v5 }
 0xb4c   :  { %v1482_v6 = vpop.xlane.xlu0 %1481 }
 0xb4d   :  { %7350 = vrcp.f32 %v1482_v6 }
 0xb50   :  { %v1486_v9 = vpop.permute.xlu0 %1485 }
 0xb53   :  { %v7349_v7 = vpop.eup %7348 }
 0xb54   :  { %v1318_v8 = vmul.f32 %v7349_v7, %v7345_v62 }
 0xb56   :  { %6673 = vmatmul.mubr.msk.f32.vlgmr.msra.gmra.mrb[14].mxu0 %vm267_vm4, %v1318_v8 }
 0xb57   :  { %v7351_v10 = vpop.eup %7350  ;;  %6681 = vmatpush3.msra.mxu0 %v1486_v9  ;;  %6682 = vmatprep.mubr.msk.f32.mxu0 %vm7409_vm3, %v7408_v18 }
 0xb58   :  { %v1484_v11 = vmul.f32 %v7351_v10, %v7347_v0  ;;  %6690 = vmatprep.subr.mxu0 %v7408_v18 }
 0xb5a   :  { %6683 = vmatmul.mubr.msk.f32.vlgmr.msra.gmra.mrb[16].mxu0 %vm267_vm4, %v1484_v11 }
 0xb5b   :  { %6691 = vmatpush3.msra.mxu0 %v7625_v54  ;;  %6692 = vmatprep.mubr.msk.f32.mxu0 %vm7409_vm3, %v7408_v18  ;;  %v1708_v54 = vpop.permute.xlu1 %1707 }
 0xb5c   :  { %6700 = vmatprep.subr.mxu0 %v7408_v18 }
 0xc29   :  { %v1391_v12 = vpop.f32.mrb[14].mxu0 }
 0xc2a   :  { %v6674_v13 = vpop.f32.mrb[15].mxu0  ;;  %6693 = vmatmul.mubr.msk.f32.vlgmr.msra.gmra.mrb[18].mxu0 %vm267_vm4, %v1391_v12 }
 0xc2b   :  { %6702 = vmatprep.mubr.msk.f32.mxu0 %vm7409_vm3, %v7408_v18 }
 0xc2d   :  { %v1557_v15 = vpop.f32.mrb[16].mxu0 }
 0xc2e   :  { %v6684_v19 = vpop.f32.mrb[17].mxu0  ;;  %6688 = vmatmul.mubr.msk.f32.vlgmr.msra.gmra.mrb[18].mxu1 %vm267_vm4, %v1557_v15 }
 0xc2f   :  { %6696 = vmatpush3.xpose.msk.msra.mxu1 %vm267_vm4, %v1710_v14  ;;  %6697 = vmatprep.mubr.msk.f32.mxu1 %vm7409_vm3, %v7408_v18 }
 0xc30   :  { %6705 = vmatprep.subr.mxu1 %v7408_v18 }
 0xc32   :  { %6698 = vmatmul.mubr.msk.f32.vlgmr.msra.gmra.mrb[20].mxu1 %vm267_vm4, %v1708_v54 }
 0xc33   :  { %6706 = vmatpush3.msra.mxu1 %v7664_v20  ;;  %6707 = vmatprep.mubr.msk.f32.mxu1 %vm7409_vm3, %v7408_v18 }
 0xc34   :  { %6715 = vmatprep.subr.mxu1 %v7408_v18 }
 0xcfd   :  { %v1703_v22 = vpop.f32.mrb[18].mxu0 }
 0xcfe   :  { %v6694_v24 = vpop.f32.mrb[19].mxu0 }
 0xd01   :  { %v1630_v25 = vpop.f32.mrb[18].mxu1 }
 0xd02   :  { %v1704_v26 = vadd.f32 %v1703_v22, %v1630_v25  ;;  %v6689_v27 = vpop.f32.mrb[19].mxu1 }
 0xd05   :  { %v1781_v28 = vpop.f32.mrb[20].mxu1 }
 0xd06   :  { %v1785_v29 = vmul.f32 0.35355338, %v1781_v28  ;;  %v6699_v30 = vpop.f32.mrb[21].mxu1 }
 0xd07   :  { %v2236_v30 = vld [vmem:[%s8459_s8 + $0x8] sm:$0xff] }
 0xd08   :  { %v1786_v31 = vsel %vm267_vm4, %v1785_v29, -inf }
 0xd09   :  { %1787 = vmax.xlane.f32.xlu0 %v1786_v31 }
 0xd1f   :  { %1797 = vrot.lane.b32.xlu0 %v7574_v21, %s8479_s30  ;;  %s8503_s30 = smov 40  }
 0xd23   :  { %1947 = vrot.lane.b32.xlu0 %v7574_v21, %s8477_s29 }
 0xd96   :  { %v1788_v20 = vpop.xlane.xlu0 %1787 }
 0xd97   :  { %v1789_v32 = vsub.f32 %v1785_v29, %v1788_v20  ;;  %v2235_v29 = vld [vmem:[%s8459_s8] sm:$0xff]  ;;  %v2237_v20 = vld [vmem:[%s8459_s8 + $0x10] sm:$0xff] }
 0xd98   :  { %v7138_v31 = vpack.c.bf16 %v2236_v30, %v2235_v29  ;;  %v6254_v30 = vld [vmem:[%s8463_s14] ss:$0 sm:$0xff] }
 0xd99   :  { %v1790_v33 = vmul.f32 1.442695, %v1789_v32  ;;  %v2238_v32 = vld [vmem:[%s8459_s8 + $0x18] sm:$0xff] }
 0xd9a   :  { %v1798_v34 = vpop.permute.xlu0 %1797 }
 0xd9b   :  { %7352 = vpow2.f32 %v1790_v33  ;;  %6701 = vmatpush3.msra.mxu0 %v1798_v34  ;;  %v7142_v33 = vpack.c.bf16 %v2238_v32, %v2237_v20  ;;  %v2329_v34 = vld [vmem:[%s8460_s10] sm:$0xff] }
 0xd9c   :  { %6710 = vmatprep.subr.mxu0 %v7408_v18  ;;  %v6255_v20 = vld [vmem:[%s8464_s15] ss:$0 sm:$0xff] }
 0xd9e   :  { %v1948_v40 = vpop.permute.xlu0 %1947 }
 0xda5   :  { %v7353_v35 = vpop.eup %7352 }
 0xda6   :  { %v1792_v23 = vsel %vm267_vm4, %v7353_v35, 0.0 }
 0xda7   :  { %1793 = vadd.xlane.f32.xlu1 %v1792_v23  ;;  %v2331_v23 = vld [vmem:[%s8460_s10 + $0x10] sm:$0xff] }
 0xdb8   :  { %1949 = vrot.lane.b32.xlu1 %v7574_v21, %s8475_s28  ;;  %s8502_s28 = smov 72  }
 0xe34   :  { %v1794_v36 = vpop.xlane.xlu1 %1793 }
 0xe35   :  { %7354 = vrcp.f32 %v1794_v36 }
 0xe38   :  { %v1950_v39 = vpop.permute.xlu1 %1949 }
 0xe3f   :  { %v7355_v37 = vpop.eup %7354 }
 0xe40   :  { %v1796_v38 = vmul.f32 %v7355_v37, %v7353_v35  ;;  %v2330_v35 = vld [vmem:[%s8460_s10 + $0x8] sm:$0xff]  ;;  %v2332_v37 = vld [vmem:[%s8460_s10 + $0x18] sm:$0xff] }
 0xe41   :  { %v7146_v36 = vpack.c.bf16 %v2330_v35, %v2329_v34 }
 0xe42   :  { %6703 = vmatmul.mubr.msk.f32.vlgmr.msra.gmra.mrb[20].mxu0 %vm267_vm4, %v1796_v38  ;;  %v7150_v38 = vpack.c.bf16 %v2332_v37, %v2331_v23  ;;  %v6261_v37 = vld [vmem:[%s8454_s5 + $0x1] ss:$0 sm:$0xff]  ;;  %s8497_s5 = smov 80  }
 0xe43   :  { %6711 = vmatpush3.xpose.msk.msra.mxu0 %vm267_vm4, %v1950_v39  ;;  %6712 = vmatprep.mubr.msk.f32.mxu0 %vm7409_vm3, %v7408_v18  ;;  %v2333_v39 = vld [vmem:[%s8460_s10 + $0x20] sm:$0xff] }
 0xe44   :  { %6720 = vmatprep.subr.mxu0 %v7408_v18 }
 0xe46   :  { %6713 = vmatmul.mubr.msk.f32.vlgmr.msra.gmra.mrb[22].mxu0 %vm267_vm4, %v1948_v40  ;;  %v2334_v40 = vld [vmem:[%s8460_s10 + $0x28] sm:$0xff] }
 0xe47   :  { %6721 = vmatpush3.msra.mxu0 %v7700_v43  ;;  %6722 = vmatprep.mubr.msk.f32.mxu0 %vm7409_vm3, %v7408_v18 }
 0xe48   :  { %7147 = vmatprep.subr.bf16.mxu0 %v7146_v36 }
 0xf15   :  { %v1869_v42 = vpop.f32.mrb[20].mxu0 }
 0xf16   :  { %v6704_v44 = vpop.f32.mrb[21].mxu0  ;;  %6708 = vmatmul.mubr.msk.f32.vlgmr.msra.gmra.mrb[22].mxu1 %vm267_vm4, %v1869_v42 }
 0xf17   :  { %6717 = vmatprep.mubr.msk.f32.mxu1 %vm7409_vm3, %v7408_v18 }
 0xf19   :  { %v2021_v45 = vpop.f32.mrb[22].mxu0 }
 0xf1a   :  { %v2025_v47 = vmul.f32 0.35355338, %v2021_v45  ;;  %v6714_v48 = vpop.f32.mrb[23].mxu0 }
 0xf1c   :  { %v2026_v43 = vsel %vm267_vm4, %v2025_v47, -inf }
 0xf1d   :  { %2027 = vmax.xlane.f32.xlu1 %v2026_v43 }
 0xf21   :  { %2193 = vadd.xlane.f32.xlu1 %v2192_v50  ;;  %v2336_v50 = vld [vmem:[%s8460_s10 + $0x38] sm:$0xff] }
 0xfaa   :  { %v2028_v51 = vpop.xlane.xlu1 %2027 }
 0xfab   :  { %v2029_v52 = vsub.f32 %v2025_v47, %v2028_v51 }
 0xfad   :  { %v2030_v53 = vmul.f32 1.442695, %v2029_v52  ;;  %v6248_v52 = vld [vmem:[%s8461_s9] ss:$0 sm:$0xff] }
 0xfae   :  { %v2194_v1 = vpop.xlane.xlu1 %2193 }
 0xfaf   :  { %7356 = vpow2.f32 %v2030_v53  ;;  %v2199_v2 = vmul.f32 0.03125, %v2194_v1 }
 0xfb1   :  { %v2201_v5 = vsub.f32 %v2188_v49, %v2199_v2  ;;  %v2335_v49 = vld [vmem:[%s8460_s10 + $0x30] sm:$0xff] }
 0xfb2   :  { %v7158_v51 = vpack.c.bf16 %v2336_v50, %v2335_v49 }
 0xfb3   :  { %v2203_v9 = vmul.f32 %v2201_v5, %v2201_v5 }
 0xfb5   :  { %v2205_v10 = vsel %vm178_vm2, %v2203_v9, 0.0 }
 0xfb9   :  { %v7357_v55 = vpop.eup %7356 }
 0xfba   :  { %v2032_v56 = vsel %vm267_vm4, %v7357_v55, 0.0 }
 0xfbb   :  { %2033 = vadd.xlane.f32.xlu0 %v2032_v56 }
 0xfd1   :  { %2037 = vrot.lane.b32.xlu0 %v7574_v21, %s8473_s26 }
 0xfe9   :  { %v1942_v57 = vpop.f32.mrb[22].mxu1 }
 0xfea   :  { %v1946_v58 = vadd.f32 %v1942_v57, %v1704_v26  ;;  %v6709_v59 = vpop.f32.mrb[23].mxu1  ;;  %v6247_v26 = vld [vmem:[%s8458_s13] ss:$0 sm:$0xff] }
0x1048   :  { %v2034_v60 = vpop.xlane.xlu0 %2033 }
0x1049   :  { %7358 = vrcp.f32 %v2034_v60  ;;  %v6251_v60 = vld [vmem:[%s8462_s11] ss:$0 sm:$0xff] }
0x104c   :  { %v2038_v16 = vpop.permute.xlu0 %2037 }
0x104d   :  { %6716 = vmatpush3.msra.mxu1 %v2038_v16 }
0x104e   :  { %7139 = vmatprep.subr.bf16.mxu1 %v7138_v31 }
0x1053   :  { %v7359_v61 = vpop.eup %7358 }
0x1054   :  { %v2036_v62 = vmul.f32 %v7359_v61, %v7357_v55 }
0x1056   :  { %6718 = vmatmul.mubr.msk.f32.vlgmr.msra.gmra.mrb[24].mxu1 %vm267_vm4, %v2036_v62 }
0x1057   :  { %7141 = vmatpush3.bf16.msra.mxu1 %v7138_v31 }
0x1058   :  { %7143 = vmatprep.subr.bf16.mxu1 %v7142_v33 }
0x105b   :  { %7145 = vmatpush3.bf16.msra.mxu1 %v7142_v33 }
0x1129   :  { %v2109_v63 = vpop.f32.mrb[24].mxu1 }
0x112a   :  { %v6719_v0 = vpop.f32.mrb[25].mxu1  ;;  %6723 = vmatmul.mubr.msk.f32.vlgmr.msra.gmra.mrb[24].mxu0 %vm267_vm4, %v2109_v63 }
0x112b   :  { %7149 = vmatpush3.bf16.msra.mxu0 %v7146_v36 }
0x112c   :  { %7151 = vmatprep.subr.bf16.mxu0 %v7150_v38 }
0x112f   :  { %7153 = vmatpush3.bf16.msra.mxu0 %v7150_v38 }
0x11fd   :  { %v2182_v3 = vpop.f32.mrb[24].mxu0 }
0x11fe   :  { %v2186_v4 = vadd.f32 %v2182_v3, %v1946_v58  ;;  %v6724_v21 = vpop.f32.mrb[25].mxu0 }
0x1200   :  { %v2187_v6 = vadd.f32 %v6229_v41, %v2186_v4  ;;  %v7154_v41 = vpack.c.bf16 %v2334_v40, %v2333_v39 }
0x1202   :  { %v2189_v7 = vadd.f32 %v2187_v6, %v7559_v17  ;;  %v6246_v17 = vld [vmem:[%s8457_s12] ss:$0 sm:$0xff]  ;;  %7155 = vmatprep.subr.bf16.mxu0 %v7154_v41 }
0x1203   :  { %7157 = vmatpush3.bf16.msra.mxu0 %v7154_v41 }
0x1204   :  { %v2195_v8 = vsel %vm178_vm2, %v2189_v7, 0.0  ;;  %7159 = vmatprep.subr.bf16.mxu0 %v7158_v51 }
0x1205   :  { %2196 = vadd.xlane.f32.xlu1 %v2195_v8 }
0x1207   :  { %7161 = vmatpush3.bf16.msra.mxu0 %v7158_v51 }
0x1208   :  { %6771 = vmatprep.subr.mxu0 %v7408_v18 }
0x1209   :  { %2206 = vadd.xlane.f32.xlu1 %v2205_v10 }
0x1292   :  { %v2197_v11 = vpop.xlane.xlu1 %2196 }
0x1293   :  { %v2200_v12 = vmul.f32 0.03125, %v2197_v11 }
0x1295   :  { %v2202_v13 = vsub.f32 %v2189_v7, %v2200_v12 }
0x1296   :  { %v2207_v14 = vpop.xlane.xlu1 %2206 }
0x1297   :  { %v2211_v15 = vmul.f32 0.03125, %v2207_v14  ;;  %v2204_v19 = vmul.f32 %v2202_v13, %v2202_v13  ;;  %v6257_v14 = vld [vmem:[%s8494_s3 + $0x28] sm:$0xff] }
0x1299   :  { %v2213_v54 = vadd.f32 1e-05, %v2211_v15  ;;  %v2208_v22 = vsel %vm178_vm2, %v2204_v19, 0.0  ;;  %v6258_v19 = vld [vmem:[%s8494_s3 + $0x30] sm:$0xff] }
0x129a   :  { %2209 = vadd.xlane.f32.xlu1 %v2208_v22 }
0x129b   :  { %7360 = vrsqrt.f32 %v2213_v54  ;;  %v6259_v54 = vld [vmem:[%s8494_s3 + $0x38] sm:$0xff] }
0x129c   :  { %v7166_v22 = vpack.c.bf16 %v6259_v54, %v6258_v19 }
0x12a5   :  { %v7361_v24 = vpop.eup %7360 }
0x12a6   :  { %v2217_v25 = vmul.f32 %v7361_v24, %v2201_v5 }
0x12a8   :  { %v2225_v27 = vmul.f32 %v6246_v17, %v2217_v25 }
0x12aa   :  { %v2233_v28 = vadd.f32 %v6247_v26, %v2225_v27 }
0x12ac   :  { %6733 = vmatprep.mubr.msk.f32.mxu1 %vm178_vm2, %v2233_v28 }
0x1327   :  { %v2210_v42 = vpop.xlane.xlu1 %2209 }
0x1328   :  { %v2212_v44 = vmul.f32 0.03125, %v2210_v42 }
0x132a   :  { %v2214_v46 = vadd.f32 1e-05, %v2212_v44 }
0x132c   :  { %7362 = vrsqrt.f32 %v2214_v46 }
0x1336   :  { %v7363_v45 = vpop.eup %7362 }
0x1337   :  { %v2218_v47 = vmul.f32 %v7363_v45, %v2202_v13  ;;  %v6256_v13 = vld [vmem:[%s8494_s3 + $0x20] sm:$0xff]  ;;  %s8501_s3 = smov 104  }
0x1338   :  { %v7162_v15 = vpack.c.bf16 %v6257_v14, %v6256_v13 }
0x1339   :  { %v2226_v48 = vmul.f32 %v6246_v17, %v2218_v47 }
0x133a   :  { %7163 = vmatprep.subr.bf16.mxu1 %v7162_v15 }
0x133b   :  { %v2234_v43 = vadd.f32 %v6247_v26, %v2226_v48 }
0x133d   :  { %6734 = vmatmul.mubr.msk.f32.vlgmr.msra.gmra.mrb[26].mxu1 %vm178_vm2, %v2234_v43 }
0x133e   :  { %7165 = vmatpush3.bf16.msra.mxu1 %v7162_v15 }
0x133f   :  { %7167 = vmatprep.subr.bf16.mxu1 %v7166_v22 }
0x1342   :  { %7169 = vmatpush3.bf16.msra.mxu1 %v7166_v22 }
0x1343   :  { %6766 = vmatprep.subr.mxu1 %v7408_v18 }
0x1410   :  { %v6735_v53 = vpop.f32.mrb[26].mxu1 }
0x1411   :  { %v2324_v55 = vadd.f32 %v6735_v53, %v6248_v52  ;;  %v2318_v56 = vpop.f32.mrb[27].mxu1 }
0x1412   :  { %v2319_v57 = vadd.f32 %v6248_v52, %v2318_v56 }
0x1413   :  { %v2328_v59 = vmax.f32 %v2324_v55, 0.0 }
0x1414   :  { %v2327_v58 = vmax.f32 %v2319_v57, 0.0 }
0x1416   :  { %6752 = vmatprep.mubr.msk.f32.mxu0 %vm2344_vm5, %v2327_v58 }
0x1417   :  { %6753 = vmatmul.mubr.msk.f32.vlgmr.msra.gmra.mrb[26].mxu0 %vm2344_vm5, %v2328_v59 }
0x1418   :  { %6773 = vmatprep.mubr.msk.f32.mxu0 %vm7409_vm3, %v7408_v18 }
0x14ea   :  { %v6754_v16 = vpop.f32.mrb[26].mxu0 }
0x14eb   :  { %v2417_v61 = vpop.f32.mrb[27].mxu0  ;;  %v2423_v62 = vadd.f32 %v6754_v16, %v6251_v60 }
0x14ec   :  { %v2418_v63 = vadd.f32 %v6251_v60, %v2417_v61 }
0x14ed   :  { %v2427_v2 = vadd.f32 %v2423_v62, %v2234_v43 }
0x14ee   :  { %v2426_v0 = vadd.f32 %v2418_v63, %v2233_v28 }
0x14ef   :  { %v2433_v3 = vsel %vm178_vm2, %v2427_v2, 0.0 }
0x14f0   :  { %v2430_v1 = vsel %vm178_vm2, %v2426_v0, 0.0 }
0x14f1   :  { %2431 = vadd.xlane.f32.xlu1 %v2430_v1 }
0x14f5   :  { %2434 = vadd.xlane.f32.xlu1 %v2433_v3 }
0x157e   :  { %v2432_v4 = vpop.xlane.xlu1 %2431 }
0x157f   :  { %v2436_v21 = vmul.f32 0.03125, %v2432_v4 }
0x1581   :  { %v2438_v5 = vsub.f32 %v2426_v0, %v2436_v21  ;;  %v7909_v0 = vld [vmem:[%s8455_s6 + $0x28] sm:$0xff] }
0x1582   :  { %v2435_v6 = vpop.xlane.xlu1 %2434 }
0x1583   :  { %v2437_v7 = vmul.f32 0.03125, %v2435_v6  ;;  %v2440_v8 = vmul.f32 %v2438_v5, %v2438_v5 }
0x1585   :  { %v2439_v9 = vsub.f32 %v2427_v2, %v2437_v7  ;;  %v2442_v10 = vsel %vm178_vm2, %v2440_v8, 0.0  ;;  %v7923_v7 = vld [vmem:[%s8455_s6 + $0x20] sm:$0xff] }
0x1586   :  { %2443 = vadd.xlane.f32.xlu0 %v2442_v10 }
0x1587   :  { %v2441_v11 = vmul.f32 %v2439_v9, %v2439_v9 }
0x1589   :  { %v2445_v12 = vsel %vm178_vm2, %v2441_v11, 0.0 }
0x158a   :  { %2446 = vadd.xlane.f32.xlu1 %v2445_v12 }
0x1613   :  { %v2444_v24 = vpop.xlane.xlu0 %2443 }
0x1614   :  { %v2448_v17 = vmul.f32 0.03125, %v2444_v24 }
0x1616   :  { %v2450_v25 = vadd.f32 1e-05, %v2448_v17 }
0x1617   :  { %v2447_v26 = vpop.xlane.xlu1 %2446 }
0x1618   :  { %7364 = vrsqrt.f32 %v2450_v25  ;;  %v2449_v27 = vmul.f32 0.03125, %v2447_v26 }
0x161a   :  { %v2451_v28 = vadd.f32 1e-05, %v2449_v27 }
0x161c   :  { %7366 = vrsqrt.f32 %v2451_v28 }
0x1622   :  { %v7365_v29 = vpop.eup %7364 }
0x1623   :  { %v2454_v31 = vmul.f32 %v7365_v29, %v2438_v5 }
0x1625   :  { %v2462_v32 = vmul.f32 %v6254_v30, %v2454_v31 }
0x1626   :  { %v7367_v33 = vpop.eup %7366 }
0x1627   :  { %v2455_v34 = vmul.f32 %v7367_v33, %v2439_v9  ;;  %v7859_v35 = vadd.f32 %v6255_v20, %v2462_v32 }
0x1629   :  { %v2463_v23 = vmul.f32 %v6254_v30, %v2455_v34  ;;  %6763 = vmatprep.mubr.msk.f32.mxu1 %vm178_vm2, %v7859_v35 }
0x162b   :  { %v7863_v36 = vadd.f32 %v6255_v20, %v2463_v23 }
0x162d   :  { %6764 = vmatmul.mubr.msk.f32.vlgmr.msra.gmra.mrb[28].mxu1 %vm178_vm2, %v7863_v36 }
0x162e   :  { %6768 = vmatprep.mubr.msk.f32.mxu1 %vm7409_vm3, %v7408_v18 }
0x1700   :  { %v6765_v38 = vpop.f32.mrb[28].mxu1 }
0x1701   :  { %v7872_v39 = vadd.f32 %v6765_v38, %v6261_v37  ;;  %v2557_v40 = vpop.f32.mrb[29].mxu1  ;;  %v7958_v38 = vld [vmem:[%s8455_s6 + $0x30] sm:$0xff] }
0x1702   :  { %v7874_v41 = vadd.f32 %v6261_v37, %v2557_v40 }
0x1704   :  { %2572 = vrot.lane.b32.xlu1 %v7874_v41, %s7411_s21 }
0x1708   :  { %2738 = vrot.lane.b32.xlu1 %v7874_v41, %s7412_s0 }
0x170c   :  { %2736 = vrot.lane.b32.xlu1 %v7874_v41, %s7410_s1 }
0x1776   :  { %v2573_v42 = vpop.permute.xlu1 %2572 }
0x1777   :  { %6767 = vmatpush3.xpose.msk.msra.mxu1 %vm267_vm4, %v2573_v42 }
0x1778   :  { %6776 = vmatprep.subr.mxu1 %v7408_v18 }
0x177a   :  { %6769 = vmatmul.mubr.msk.f32.vlgmr.msra.gmra.mrb[30].mxu1 %vm267_vm4, %v7874_v41  ;;  %v2739_v44 = vpop.permute.xlu1 %2738 }
0x177b   :  { %6777 = vmatpush3.xpose.msk.msra.mxu1 %vm267_vm4, %v2739_v44  ;;  %6778 = vmatprep.mubr.msk.f32.mxu1 %vm7409_vm3, %v7408_v18 }
0x177c   :  { %6786 = vmatprep.subr.mxu1 %v7408_v18 }
0x177e   :  { %v2737_v46 = vpop.permute.xlu1 %2736 }
0x177f   :  { %6779 = vmatmul.mubr.msk.f32.vlgmr.msra.gmra.mrb[32].mxu1 %vm267_vm4, %v2737_v46 }
0x1780   :  { %6788 = vmatprep.mubr.msk.f32.mxu1 %vm7409_vm3, %v7408_v18  ;;  %6787 = vmatpush3.msra.mxu1 %v7909_v0 }
0x1781   :  { %6796 = vmatprep.subr.mxu1 %v7408_v18 }
0x184d   :  { %v2644_v45 = vpop.f32.mrb[30].mxu1 }
0x184e   :  { %v2648_v47 = vmul.f32 0.35355338, %v2644_v45  ;;  %v6770_v48 = vpop.f32.mrb[31].mxu1 }
0x1850   :  { %v2649_v43 = vsel %vm267_vm4, %v2648_v47, -inf }
0x1851   :  { %2650 = vmax.xlane.f32.xlu0 %v2649_v43 }
0x1852   :  { %v2810_v49 = vpop.f32.mrb[32].mxu1 }
0x1853   :  { %v2814_v50 = vmul.f32 0.35355338, %v2810_v49  ;;  %v6780_v51 = vpop.f32.mrb[33].mxu1 }
0x1855   :  { %v2815_v52 = vsel %vm267_vm4, %v2814_v50, -inf }
0x1856   :  { %2816 = vmax.xlane.f32.xlu1 %v2815_v52 }
0x1867   :  { %2660 = vrot.lane.b32.xlu0 %v7874_v41, %s7414_s23  ;;  %3050 = vrot.lane.b32.xlu1 %v7874_v41, %s8497_s5 }
0x18de   :  { %v2651_v53 = vpop.xlane.xlu0 %2650 }
0x18df   :  { %v2652_v55 = vsub.f32 %v2648_v47, %v2651_v53 }
0x18e1   :  { %v2653_v56 = vmul.f32 1.442695, %v2652_v55 }
0x18e2   :  { %v2661_v57 = vpop.permute.xlu0 %2660 }
0x18e3   :  { %7368 = vpow2.f32 %v2653_v56  ;;  %6772 = vmatpush3.msra.mxu0 %v2661_v57  ;;  %v2817_v58 = vpop.xlane.xlu1 %2816 }
0x18e4   :  { %v2818_v59 = vsub.f32 %v2814_v50, %v2817_v58  ;;  %6781 = vmatprep.subr.mxu0 %v7408_v18 }
0x18e6   :  { %v2819_v60 = vmul.f32 1.442695, %v2818_v59 }
0x18e7   :  { %v3051_v11 = vpop.permute.xlu1 %3050 }
0x18e8   :  { %7370 = vpow2.f32 %v2819_v60 }
0x18ed   :  { %v7369_v16 = vpop.eup %7368 }
0x18ee   :  { %v2655_v61 = vsel %vm267_vm4, %v7369_v16, 0.0 }
0x18ef   :  { %2656 = vadd.xlane.f32.xlu0 %v2655_v61  ;;  %v7995_v61 = vld [vmem:[%s8455_s6 + $0x38] sm:$0xff] }
0x18f2   :  { %v7371_v62 = vpop.eup %7370 }
0x18f3   :  { %v2821_v63 = vsel %vm267_vm4, %v7371_v62, 0.0 }
0x18f4   :  { %2822 = vadd.xlane.f32.xlu0 %v2821_v63 }
0x190a   :  { %2826 = vrot.lane.b32.xlu0 %v7874_v41, %s8498_s24 }
0x190e   :  { %3048 = vrot.lane.b32.xlu0 %v7874_v41, %s8499_s4 }
0x197c   :  { %v2657_v1 = vpop.xlane.xlu0 %2656 }
0x197d   :  { %7372 = vrcp.f32 %v2657_v1 }
0x1981   :  { %v2823_v2 = vpop.xlane.xlu0 %2822 }
0x1982   :  { %7374 = vrcp.f32 %v2823_v2 }
0x1985   :  { %v2827_v21 = vpop.permute.xlu0 %2826 }
0x1987   :  { %v7373_v3 = vpop.eup %7372 }
0x1988   :  { %v2659_v4 = vmul.f32 %v7373_v3, %v7369_v16 }
0x1989   :  { %v3049_v13 = vpop.permute.xlu0 %3048 }
0x198a   :  { %6774 = vmatmul.mubr.msk.f32.vlgmr.msra.gmra.mrb[28].mxu0 %vm267_vm4, %v2659_v4 }
0x198b   :  { %6782 = vmatpush3.msra.mxu0 %v2827_v21  ;;  %6783 = vmatprep.mubr.msk.f32.mxu0 %vm7409_vm3, %v7408_v18 }
0x198c   :  { %v7375_v5 = vpop.eup %7374  ;;  %6791 = vmatprep.subr.mxu0 %v7408_v18 }
0x198d   :  { %v2825_v6 = vmul.f32 %v7375_v5, %v7371_v62 }
0x198f   :  { %6784 = vmatmul.mubr.msk.f32.vlgmr.msra.gmra.mrb[30].mxu0 %vm267_vm4, %v2825_v6 }
0x1990   :  { %6793 = vmatprep.mubr.msk.f32.mxu0 %vm7409_vm3, %v7408_v18  ;;  %6792 = vmatpush3.msra.mxu0 %v7923_v7 }
0x1991   :  { %6801 = vmatprep.subr.mxu0 %v7408_v18 }
0x1a5d   :  { %v2732_v8 = vpop.f32.mrb[28].mxu0 }
0x1a5e   :  { %v6775_v9 = vpop.f32.mrb[29].mxu0  ;;  %6794 = vmatmul.mubr.msk.f32.vlgmr.msra.gmra.mrb[32].mxu0 %vm267_vm4, %v2732_v8 }
0x1a5f   :  { %6803 = vmatprep.mubr.msk.f32.mxu0 %vm7409_vm3, %v7408_v18 }
0x1a62   :  { %v2898_v10 = vpop.f32.mrb[30].mxu0 }
0x1a63   :  { %v6785_v12 = vpop.f32.mrb[31].mxu0  ;;  %6789 = vmatmul.mubr.msk.f32.vlgmr.msra.gmra.mrb[34].mxu1 %vm267_vm4, %v2898_v10 }
0x1a64   :  { %6797 = vmatpush3.xpose.msk.msra.mxu1 %vm267_vm4, %v3051_v11  ;;  %6798 = vmatprep.mubr.msk.f32.mxu1 %vm7409_vm3, %v7408_v18 }
0x1a65   :  { %6806 = vmatprep.subr.mxu1 %v7408_v18 }
0x1a67   :  { %6799 = vmatmul.mubr.msk.f32.vlgmr.msra.gmra.mrb[36].mxu1 %vm267_vm4, %v3049_v13 }
0x1a68   :  { %6808 = vmatprep.mubr.msk.f32.mxu1 %vm7409_vm3, %v7408_v18  ;;  %6807 = vmatpush3.msra.mxu1 %v7958_v38 }
0x1a69   :  { %6816 = vmatprep.subr.mxu1 %v7408_v18 }
0x1b31   :  { %v3044_v14 = vpop.f32.mrb[32].mxu0 }
0x1b32   :  { %v6795_v15 = vpop.f32.mrb[33].mxu0 }
0x1b36   :  { %v2971_v19 = vpop.f32.mrb[34].mxu1 }
0x1b37   :  { %v3045_v54 = vadd.f32 %v3044_v14, %v2971_v19  ;;  %v6790_v22 = vpop.f32.mrb[35].mxu1 }
0x1b3a   :  { %v3122_v24 = vpop.f32.mrb[36].mxu1 }
0x1b3b   :  { %v3126_v17 = vmul.f32 0.35355338, %v3122_v24  ;;  %v6800_v25 = vpop.f32.mrb[37].mxu1 }
0x1b3d   :  { %v3127_v26 = vsel %vm267_vm4, %v3126_v17, -inf }
0x1b3e   :  { %3128 = vmax.xlane.f32.xlu0 %v3127_v26 }
0x1b54   :  { %3138 = vrot.lane.b32.xlu0 %v7874_v41, %s8500_s27 }
0x1b58   :  { %3288 = vrot.lane.b32.xlu0 %v7874_v41, %s8501_s3 }
0x1bcb   :  { %v3129_v27 = vpop.xlane.xlu0 %3128 }
0x1bcc   :  { %v3130_v28 = vsub.f32 %v3126_v17, %v3129_v27 }
0x1bce   :  { %v3131_v29 = vmul.f32 1.442695, %v3130_v28 }
0x1bcf   :  { %v3139_v30 = vpop.permute.xlu0 %3138 }
0x1bd0   :  { %7376 = vpow2.f32 %v3131_v29  ;;  %6802 = vmatpush3.msra.mxu0 %v3139_v30 }
0x1bd1   :  { %6811 = vmatprep.subr.mxu0 %v7408_v18 }
0x1bd3   :  { %v3289_v37 = vpop.permute.xlu0 %3288 }
0x1bda   :  { %v7377_v31 = vpop.eup %7376 }
0x1bdb   :  { %v3133_v20 = vsel %vm267_vm4, %v7377_v31, 0.0 }
0x1bdc   :  { %3134 = vadd.xlane.f32.xlu1 %v3133_v20 }
0x1bed   :  { %3290 = vrot.lane.b32.xlu1 %v7874_v41, %s8502_s28 }
0x1c69   :  { %v3135_v32 = vpop.xlane.xlu1 %3134 }
0x1c6a   :  { %7378 = vrcp.f32 %v3135_v32 }
0x1c6d   :  { %v3291_v23 = vpop.permute.xlu1 %3290 }
0x1c74   :  { %v7379_v33 = vpop.eup %7378 }
0x1c75   :  { %v3137_v34 = vmul.f32 %v7379_v33, %v7377_v31 }
0x1c77   :  { %6804 = vmatmul.mubr.msk.f32.vlgmr.msra.gmra.mrb[34].mxu0 %vm267_vm4, %v3137_v34 }
0x1c78   :  { %6812 = vmatpush3.xpose.msk.msra.mxu0 %vm267_vm4, %v3291_v23  ;;  %6813 = vmatprep.mubr.msk.f32.mxu0 %vm7409_vm3, %v7408_v18 }
0x1c79   :  { %6821 = vmatprep.subr.mxu0 %v7408_v18 }
0x1c7b   :  { %6814 = vmatmul.mubr.msk.f32.vlgmr.msra.gmra.mrb[36].mxu0 %vm267_vm4, %v3289_v37 }
0x1c7c   :  { %6823 = vmatprep.mubr.msk.f32.mxu0 %vm7409_vm3, %v7408_v18  ;;  %6822 = vmatpush3.msra.mxu0 %v7995_v61 }
0x1c7d   :  { %6831 = vmatprep.subr.mxu0 %v7408_v18 }
0x1d4a   :  { %v3210_v40 = vpop.f32.mrb[34].mxu0 }
0x1d4b   :  { %v6805_v42 = vpop.f32.mrb[35].mxu0  ;;  %6809 = vmatmul.mubr.msk.f32.vlgmr.msra.gmra.mrb[38].mxu1 %vm267_vm4, %v3210_v40 }
0x1d4c   :  { %6818 = vmatprep.mubr.msk.f32.mxu1 %vm7409_vm3, %v7408_v18 }
0x1d4e   :  { %v3362_v44 = vpop.f32.mrb[36].mxu0 }
0x1d4f   :  { %v3366_v46 = vmul.f32 0.35355338, %v3362_v44  ;;  %v6815_v45 = vpop.f32.mrb[37].mxu0 }
0x1d51   :  { %v3367_v47 = vsel %vm267_vm4, %v3366_v46, -inf }
0x1d52   :  { %3368 = vmax.xlane.f32.xlu0 %v3367_v47 }
0x1d68   :  { %3378 = vrot.lane.b32.xlu0 %v7874_v41, %s8503_s30 }
0x1d6c   :  { %3704 = vrot.lane.b32.xlu0 %v7872_v39, %s7412_s0 }
0x1d70   :  { %3702 = vrot.lane.b32.xlu0 %v7872_v39, %s7410_s1 }
0x1ddf   :  { %v3369_v48 = vpop.xlane.xlu0 %3368 }
0x1de0   :  { %v3370_v43 = vsub.f32 %v3366_v46, %v3369_v48 }
0x1de2   :  { %v3371_v49 = vmul.f32 1.442695, %v3370_v43 }
0x1de3   :  { %v3379_v50 = vpop.permute.xlu0 %3378 }
0x1de4   :  { %7380 = vpow2.f32 %v3371_v49  ;;  %6817 = vmatpush3.msra.mxu1 %v3379_v50 }
0x1de5   :  { %6826 = vmatprep.subr.mxu1 %v7408_v18 }
0x1de7   :  { %v3705_v60 = vpop.permute.xlu0 %3704 }
0x1deb   :  { %v3703_v16 = vpop.permute.xlu0 %3702 }
0x1dee   :  { %v7381_v51 = vpop.eup %7380 }
0x1def   :  { %v3373_v52 = vsel %vm267_vm4, %v7381_v51, 0.0 }
0x1df0   :  { %3374 = vadd.xlane.f32.xlu1 %v3373_v52 }
0x1e01   :  { %3538 = vrot.lane.b32.xlu1 %v7872_v39, %s7411_s21 }
0x1e1e   :  { %v3283_v41 = vpop.f32.mrb[38].mxu1 }
0x1e1f   :  { %v3287_v53 = vadd.f32 %v3283_v41, %v3045_v54  ;;  %v6810_v55 = vpop.f32.mrb[39].mxu1 }
0x1e7d   :  { %v3375_v56 = vpop.xlane.xlu1 %3374 }
0x1e7e   :  { %7382 = vrcp.f32 %v3375_v56 }
0x1e81   :  { %v3539_v59 = vpop.permute.xlu1 %3538 }
0x1e88   :  { %v7383_v57 = vpop.eup %7382 }
0x1e89   :  { %v3377_v58 = vmul.f32 %v7383_v57, %v7381_v51 }
0x1e8b   :  { %6819 = vmatmul.mubr.msk.f32.vlgmr.msra.gmra.mrb[40].mxu1 %vm267_vm4, %v3377_v58 }
0x1e8c   :  { %6827 = vmatpush3.xpose.msk.msra.mxu1 %vm267_vm4, %v3539_v59  ;;  %6828 = vmatprep.mubr.msk.f32.mxu1 %vm7409_vm3, %v7408_v18 }
0x1e8d   :  { %6836 = vmatprep.subr.mxu1 %v7408_v18 }
0x1e8f   :  { %6829 = vmatmul.mubr.msk.f32.vlgmr.msra.gmra.mrb[42].mxu1 %vm267_vm4, %v7872_v39 }
0x1e90   :  { %6837 = vmatpush3.xpose.msk.msra.mxu1 %vm267_vm4, %v3705_v60  ;;  %6838 = vmatprep.mubr.msk.f32.mxu1 %vm7409_vm3, %v7408_v18  ;;  %v6285_v60 = vld [vmem:[%s8456_s7 + $0x1] ss:$0 sm:$0xff] }
0x1e91   :  { %6846 = vmatprep.subr.mxu1 %v7408_v18 }
0x1e93   :  { %6839 = vmatmul.mubr.msk.f32.vlgmr.msra.gmra.mrb[44].mxu1 %vm267_vm4, %v3703_v16 }
0x1e94   :  { %6847 = vmatpush3.msra.mxu1 %v7909_v0  ;;  %6848 = vmatprep.mubr.msk.f32.mxu1 %vm7409_vm3, %v7408_v18 }
0x1e95   :  { %6856 = vmatprep.subr.mxu1 %v7408_v18 }
0x1f5e   :  { %v3450_v62 = vpop.f32.mrb[40].mxu1 }
0x1f5f   :  { %v6820_v63 = vpop.f32.mrb[41].mxu1  ;;  %6824 = vmatmul.mubr.msk.f32.vlgmr.msra.gmra.mrb[38].mxu0 %vm267_vm4, %v3450_v62 }
0x1f60   :  { %6833 = vmatprep.mubr.msk.f32.mxu0 %vm7409_vm3, %v7408_v18 }
0x1f62   :  { %v3610_v0 = vpop.f32.mrb[42].mxu1 }
0x1f63   :  { %v3614_v1 = vmul.f32 0.35355338, %v3610_v0  ;;  %v6830_v2 = vpop.f32.mrb[43].mxu1 }
0x1f65   :  { %v3615_v3 = vsel %vm267_vm4, %v3614_v1, -inf }
0x1f66   :  { %3616 = vmax.xlane.f32.xlu0 %v3615_v3  ;;  %v3776_v4 = vpop.f32.mrb[44].mxu1 }
0x1f67   :  { %v3780_v21 = vmul.f32 0.35355338, %v3776_v4  ;;  %v6840_v5 = vpop.f32.mrb[45].mxu1 }
0x1f69   :  { %v3781_v6 = vsel %vm267_vm4, %v3780_v21, -inf }
0x1f6a   :  { %3782 = vmax.xlane.f32.xlu1 %v3781_v6 }
0x1f7b   :  { %3626 = vrot.lane.b32.xlu1 %v7872_v39, %s7414_s23 }
0x1f7f   :  { %4016 = vrot.lane.b32.xlu1 %v7872_v39, %s8497_s5 }
0x1f83   :  { %4014 = vrot.lane.b32.xlu1 %v7872_v39, %s8499_s4 }
0x1ff3   :  { %v3617_v8 = vpop.xlane.xlu0 %3616 }
0x1ff4   :  { %v3618_v9 = vsub.f32 %v3614_v1, %v3617_v8 }
0x1ff6   :  { %v3619_v10 = vmul.f32 1.442695, %v3618_v9 }
0x1ff7   :  { %v3783_v11 = vpop.xlane.xlu1 %3782 }
0x1ff8   :  { %7384 = vpow2.f32 %v3619_v10  ;;  %v3784_v12 = vsub.f32 %v3780_v21, %v3783_v11 }
0x1ffa   :  { %v3785_v13 = vmul.f32 1.442695, %v3784_v12 }
0x1ffb   :  { %v3627_v14 = vpop.permute.xlu1 %3626 }
0x1ffc   :  { %7386 = vpow2.f32 %v3785_v13  ;;  %6832 = vmatpush3.msra.mxu0 %v3627_v14 }
0x1ffd   :  { %6841 = vmatprep.subr.mxu0 %v7408_v18 }
0x1fff   :  { %v4017_v34 = vpop.permute.xlu1 %4016 }
0x2002   :  { %v7385_v15 = vpop.eup %7384 }
0x2003   :  { %v3621_v19 = vsel %vm267_vm4, %v7385_v15, 0.0 }
0x2004   :  { %3622 = vadd.xlane.f32.xlu0 %v3621_v19 }
0x2006   :  { %v7387_v54 = vpop.eup %7386 }
0x2007   :  { %v3787_v22 = vsel %vm267_vm4, %v7387_v54, 0.0 }
0x2008   :  { %3788 = vadd.xlane.f32.xlu0 %v3787_v22 }
0x201e   :  { %3792 = vrot.lane.b32.xlu0 %v7872_v39, %s8498_s24 }
0x2032   :  { %v3523_v24 = vpop.f32.mrb[38].mxu0 }
0x2033   :  { %v8015_v17 = vadd.f32 %v3523_v24, %v3287_v53  ;;  %v6825_v25 = vpop.f32.mrb[39].mxu0 }
0x2035   :  { %v3536_v63 = vadd.f32 %v6285_v60, %v8015_v17 }
0x2037   :  { %v4495_v3 = vadd.f32 %v3536_v63, %v7859_v35 }
0x2039   :  { %v4501_v4 = vsel %vm178_vm2, %v4495_v3, 0.0 }
0x2091   :  { %v3623_v26 = vpop.xlane.xlu0 %3622 }
0x2092   :  { %7388 = vrcp.f32 %v3623_v26 }
0x2095   :  { %v3789_v27 = vpop.xlane.xlu0 %3788 }
0x2096   :  { %7390 = vrcp.f32 %v3789_v27 }
0x2099   :  { %v3793_v30 = vpop.permute.xlu0 %3792 }
0x209c   :  { %v7389_v28 = vpop.eup %7388 }
0x209d   :  { %v3625_v29 = vmul.f32 %v7389_v28, %v7385_v15 }
0x209f   :  { %6834 = vmatmul.mubr.msk.f32.vlgmr.msra.gmra.mrb[40].mxu0 %vm267_vm4, %v3625_v29 }
0x20a0   :  { %v7391_v31 = vpop.eup %7390  ;;  %6842 = vmatpush3.msra.mxu0 %v3793_v30  ;;  %6843 = vmatprep.mubr.msk.f32.mxu0 %vm7409_vm3, %v7408_v18 }
0x20a1   :  { %v3791_v20 = vmul.f32 %v7391_v31, %v7387_v54  ;;  %6851 = vmatprep.subr.mxu0 %v7408_v18 }
0x20a3   :  { %6844 = vmatmul.mubr.msk.f32.vlgmr.msra.gmra.mrb[42].mxu0 %vm267_vm4, %v3791_v20 }
0x20a4   :  { %6852 = vmatpush3.msra.mxu0 %v7923_v7  ;;  %6853 = vmatprep.mubr.msk.f32.mxu0 %vm7409_vm3, %v7408_v18  ;;  %v4015_v7 = vpop.permute.xlu1 %4014 }
0x20a5   :  { %6861 = vmatprep.subr.mxu0 %v7408_v18 }
0x2172   :  { %v3698_v32 = vpop.f32.mrb[40].mxu0 }
0x2173   :  { %v6835_v33 = vpop.f32.mrb[41].mxu0  ;;  %6854 = vmatmul.mubr.msk.f32.vlgmr.msra.gmra.mrb[44].mxu0 %vm267_vm4, %v3698_v32 }
0x2174   :  { %6863 = vmatprep.mubr.msk.f32.mxu0 %vm7409_vm3, %v7408_v18 }
0x2176   :  { %v3864_v23 = vpop.f32.mrb[42].mxu0 }
0x2177   :  { %v6845_v37 = vpop.f32.mrb[43].mxu0  ;;  %6849 = vmatmul.mubr.msk.f32.vlgmr.msra.gmra.mrb[46].mxu1 %vm267_vm4, %v3864_v23 }
0x2178   :  { %6857 = vmatpush3.xpose.msk.msra.mxu1 %vm267_vm4, %v4017_v34  ;;  %6858 = vmatprep.mubr.msk.f32.mxu1 %vm7409_vm3, %v7408_v18 }
0x2179   :  { %6866 = vmatprep.subr.mxu1 %v7408_v18 }
0x217b   :  { %6859 = vmatmul.mubr.msk.f32.vlgmr.msra.gmra.mrb[48].mxu1 %vm267_vm4, %v4015_v7 }
0x217c   :  { %6867 = vmatpush3.msra.mxu1 %v7958_v38  ;;  %6868 = vmatprep.mubr.msk.f32.mxu1 %vm7409_vm3, %v7408_v18 }
0x217d   :  { %6876 = vmatprep.subr.mxu1 %v7408_v18 }
0x2246   :  { %v4010_v40 = vpop.f32.mrb[44].mxu0 }
0x2247   :  { %v6855_v42 = vpop.f32.mrb[45].mxu0 }
0x224a   :  { %v3937_v44 = vpop.f32.mrb[46].mxu1 }
0x224b   :  { %v4011_v46 = vadd.f32 %v4010_v40, %v3937_v44  ;;  %v6850_v45 = vpop.f32.mrb[47].mxu1 }
0x224e   :  { %v4088_v47 = vpop.f32.mrb[48].mxu1 }
0x224f   :  { %v4092_v48 = vmul.f32 0.35355338, %v4088_v47  ;;  %v6860_v43 = vpop.f32.mrb[49].mxu1 }
0x2250   :  { %v6307_v43 = vld [vmem:[%s8459_s8 + $0x28] sm:$0xff] }
0x2251   :  { %v4093_v49 = vsel %vm267_vm4, %v4092_v48, -inf }
0x2252   :  { %4094 = vmax.xlane.f32.xlu0 %v4093_v49 }
0x2268   :  { %4104 = vrot.lane.b32.xlu0 %v7872_v39, %s8500_s27 }
0x226c   :  { %4254 = vrot.lane.b32.xlu0 %v7872_v39, %s8501_s3 }
0x22df   :  { %v4095_v38 = vpop.xlane.xlu0 %4094 }
0x22e0   :  { %v4096_v50 = vsub.f32 %v4092_v48, %v4095_v38  ;;  %v6306_v48 = vld [vmem:[%s8459_s8 + $0x20] sm:$0xff]  ;;  %v6308_v38 = vld [vmem:[%s8459_s8 + $0x30] sm:$0xff] }
0x22e1   :  { %v7170_v49 = vpack.c.bf16 %v6307_v43, %v6306_v48 }
0x22e2   :  { %v4097_v51 = vmul.f32 1.442695, %v4096_v50  ;;  %v6309_v50 = vld [vmem:[%s8459_s8 + $0x38] sm:$0xff] }
0x22e3   :  { %v4105_v52 = vpop.permute.xlu0 %4104 }
0x22e4   :  { %7392 = vpow2.f32 %v4097_v51  ;;  %6862 = vmatpush3.msra.mxu0 %v4105_v52  ;;  %v7174_v51 = vpack.c.bf16 %v6309_v50, %v6308_v38  ;;  %v6314_v52 = vld [vmem:[%s8460_s10 + $0x40] sm:$0xff] }
0x22e5   :  { %6871 = vmatprep.subr.mxu0 %v7408_v18 }
0x22e7   :  { %v4255_v59 = vpop.permute.xlu0 %4254 }
0x22ee   :  { %v7393_v41 = vpop.eup %7392 }
0x22ef   :  { %v4099_v53 = vsel %vm267_vm4, %v7393_v41, 0.0 }
0x22f0   :  { %4100 = vadd.xlane.f32.xlu1 %v4099_v53  ;;  %v6316_v53 = vld [vmem:[%s8460_s10 + $0x50] sm:$0xff] }
0x2301   :  { %4256 = vrot.lane.b32.xlu1 %v7872_v39, %s8502_s28 }
0x237d   :  { %v4101_v55 = vpop.xlane.xlu1 %4100 }
0x237e   :  { %7394 = vrcp.f32 %v4101_v55 }
0x2381   :  { %v4257_v58 = vpop.permute.xlu1 %4256 }
0x2388   :  { %v7395_v56 = vpop.eup %7394 }
0x2389   :  { %v4103_v57 = vmul.f32 %v7395_v56, %v7393_v41  ;;  %v6315_v41 = vld [vmem:[%s8460_s10 + $0x48] sm:$0xff]  ;;  %v6317_v56 = vld [vmem:[%s8460_s10 + $0x58] sm:$0xff] }
0x238a   :  { %v7178_v55 = vpack.c.bf16 %v6315_v41, %v6314_v52 }
0x238b   :  { %6864 = vmatmul.mubr.msk.f32.vlgmr.msra.gmra.mrb[46].mxu0 %vm267_vm4, %v4103_v57  ;;  %v7182_v57 = vpack.c.bf16 %v6317_v56, %v6316_v53  ;;  %v6328_v53 = vld [vmem:[%s8463_s14 + $0x1] ss:$0 sm:$0xff] }
0x238c   :  { %6872 = vmatpush3.xpose.msk.msra.mxu0 %vm267_vm4, %v4257_v58  ;;  %6873 = vmatprep.mubr.msk.f32.mxu0 %vm7409_vm3, %v7408_v18  ;;  %v6318_v58 = vld [vmem:[%s8460_s10 + $0x60] sm:$0xff] }
0x238d   :  { %6881 = vmatprep.subr.mxu0 %v7408_v18  ;;  %v6329_v56 = vld [vmem:[%s8464_s15 + $0x1] ss:$0 sm:$0xff] }
0x238f   :  { %6874 = vmatmul.mubr.msk.f32.vlgmr.msra.gmra.mrb[48].mxu0 %vm267_vm4, %v4255_v59  ;;  %v6319_v59 = vld [vmem:[%s8460_s10 + $0x68] sm:$0xff] }
0x2390   :  { %6882 = vmatpush3.msra.mxu0 %v7995_v61  ;;  %6883 = vmatprep.mubr.msk.f32.mxu0 %vm7409_vm3, %v7408_v18 }
0x2391   :  { %7179 = vmatprep.subr.bf16.mxu0 %v7178_v55 }
0x245e   :  { %v4176_v16 = vpop.f32.mrb[46].mxu0 }
0x245f   :  { %v6865_v62 = vpop.f32.mrb[47].mxu0  ;;  %6869 = vmatmul.mubr.msk.f32.vlgmr.msra.gmra.mrb[50].mxu1 %vm267_vm4, %v4176_v16 }
0x2460   :  { %6878 = vmatprep.mubr.msk.f32.mxu1 %vm7409_vm3, %v7408_v18 }
0x2462   :  { %v4328_v0 = vpop.f32.mrb[48].mxu0 }
0x2463   :  { %v4332_v1 = vmul.f32 0.35355338, %v4328_v0  ;;  %v6875_v2 = vpop.f32.mrb[49].mxu0 }
0x2465   :  { %v4333_v61 = vsel %vm267_vm4, %v4332_v1, -inf }
0x2466   :  { %4334 = vmax.xlane.f32.xlu1 %v4333_v61 }
0x246a   :  { %4502 = vadd.xlane.f32.xlu1 %v4501_v4  ;;  %v6321_v4 = vld [vmem:[%s8460_s10 + $0x78] sm:$0xff] }
0x24f3   :  { %v4335_v21 = vpop.xlane.xlu1 %4334 }
0x24f4   :  { %v4336_v5 = vsub.f32 %v4332_v1, %v4335_v21 }
0x24f6   :  { %v4337_v6 = vmul.f32 1.442695, %v4336_v5  ;;  %v6311_v5 = vld [vmem:[%s8461_s9 + $0x1] ss:$0 sm:$0xff] }
0x24f7   :  { %v4503_v22 = vpop.xlane.xlu1 %4502 }
0x24f8   :  { %7396 = vpow2.f32 %v4337_v6  ;;  %v4507_v24 = vmul.f32 0.03125, %v4503_v22 }
0x24fa   :  { %v4509_v26 = vsub.f32 %v4495_v3, %v4507_v24  ;;  %v6320_v3 = vld [vmem:[%s8460_s10 + $0x70] sm:$0xff] }
0x24fb   :  { %v7190_v21 = vpack.c.bf16 %v6321_v4, %v6320_v3 }
0x24fc   :  { %v4511_v30 = vmul.f32 %v4509_v26, %v4509_v26 }
0x24fe   :  { %v4513_v31 = vsel %vm178_vm2, %v4511_v30, 0.0 }
0x2502   :  { %v7397_v8 = vpop.eup %7396 }
0x2503   :  { %v4339_v9 = vsel %vm267_vm4, %v7397_v8, 0.0 }
0x2504   :  { %4340 = vadd.xlane.f32.xlu0 %v4339_v9 }
0x251a   :  { %4344 = vrot.lane.b32.xlu0 %v7872_v39, %s8503_s30 }
0x2532   :  { %v4249_v10 = vpop.f32.mrb[50].mxu1 }
0x2533   :  { %v4253_v11 = vadd.f32 %v4249_v10, %v4011_v46  ;;  %v6870_v12 = vpop.f32.mrb[51].mxu1  ;;  %v6305_v46 = vld [vmem:[%s8458_s13 + $0x1] ss:$0 sm:$0xff] }
0x2591   :  { %v4341_v13 = vpop.xlane.xlu0 %4340 }
0x2592   :  { %7398 = vrcp.f32 %v4341_v13  ;;  %v6323_v13 = vld [vmem:[%s8462_s11 + $0x1] ss:$0 sm:$0xff] }
0x2595   :  { %v4345_v35 = vpop.permute.xlu0 %4344 }
0x2596   :  { %6877 = vmatpush3.msra.mxu1 %v4345_v35 }
0x2597   :  { %7171 = vmatprep.subr.bf16.mxu1 %v7170_v49 }
0x259c   :  { %v7399_v14 = vpop.eup %7398 }
0x259d   :  { %v4343_v15 = vmul.f32 %v7399_v14, %v7397_v8 }
0x259f   :  { %6879 = vmatmul.mubr.msk.f32.vlgmr.msra.gmra.mrb[52].mxu1 %vm267_vm4, %v4343_v15 }
0x25a0   :  { %7173 = vmatpush3.bf16.msra.mxu1 %v7170_v49 }
0x25a1   :  { %7175 = vmatprep.subr.bf16.mxu1 %v7174_v51 }
0x25a4   :  { %7177 = vmatpush3.bf16.msra.mxu1 %v7174_v51 }
0x2672   :  { %v4416_v19 = vpop.f32.mrb[52].mxu1 }
0x2673   :  { %v6880_v54 = vpop.f32.mrb[53].mxu1  ;;  %6884 = vmatmul.mubr.msk.f32.vlgmr.msra.gmra.mrb[50].mxu0 %vm267_vm4, %v4416_v19 }
0x2674   :  { %7181 = vmatpush3.bf16.msra.mxu0 %v7178_v55 }
0x2675   :  { %7183 = vmatprep.subr.bf16.mxu0 %v7182_v57 }
0x2678   :  { %7185 = vmatpush3.bf16.msra.mxu0 %v7182_v57  ;;  %v4785_v57 = vld [vmem:[%s8465_s16] sm:$0xff] }
0x2746   :  { %v4489_v17 = vpop.f32.mrb[50].mxu0 }
0x2747   :  { %v4493_v25 = vadd.f32 %v4489_v17, %v4253_v11  ;;  %v6885_v39 = vpop.f32.mrb[51].mxu0 }
0x2749   :  { %v4494_v27 = vadd.f32 %v6285_v60, %v4493_v25  ;;  %v7186_v60 = vpack.c.bf16 %v6319_v59, %v6318_v58  ;;  %v4786_v59 = vld [vmem:[%s8465_s16 + $0x8] sm:$0xff] }
0x274b   :  { %v4496_v28 = vadd.f32 %v4494_v27, %v7863_v36  ;;  %v6304_v36 = vld [vmem:[%s8457_s12 + $0x1] ss:$0 sm:$0xff]  ;;  %7187 = vmatprep.subr.bf16.mxu0 %v7186_v60 }
0x274c   :  { %7189 = vmatpush3.bf16.msra.mxu0 %v7186_v60  ;;  %v5095_v60 = vld [vmem:[%s8465_s16 + $0x80] sm:$0xff] }
0x274d   :  { %v4504_v29 = vsel %vm178_vm2, %v4496_v28, 0.0  ;;  %7191 = vmatprep.subr.bf16.mxu0 %v7190_v21 }
0x274e   :  { %4505 = vadd.xlane.f32.xlu1 %v4504_v29 }
0x2750   :  { %7193 = vmatpush3.bf16.msra.mxu0 %v7190_v21 }
0x2752   :  { %4514 = vadd.xlane.f32.xlu1 %v4513_v31 }
0x27db   :  { %v4506_v20 = vpop.xlane.xlu1 %4505 }
0x27dc   :  { %v4508_v32 = vmul.f32 0.03125, %v4506_v20 }
0x27de   :  { %v4510_v33 = vsub.f32 %v4496_v28, %v4508_v32 }
0x27df   :  { %v4515_v34 = vpop.xlane.xlu1 %4514 }
0x27e0   :  { %v4519_v23 = vmul.f32 0.03125, %v4515_v34  ;;  %v4512_v37 = vmul.f32 %v4510_v33, %v4510_v33  ;;  %v4790_v34 = vld [vmem:[%s8465_s16 + $0x28] sm:$0xff] }
0x27e2   :  { %v4521_v7 = vadd.f32 1e-05, %v4519_v23  ;;  %v4516_v40 = vsel %vm178_vm2, %v4512_v37, 0.0  ;;  %v4939_v23 = vld [vmem:[%s8465_s16 + $0x40] sm:$0xff] }
0x27e3   :  { %4517 = vadd.xlane.f32.xlu1 %v4516_v40  ;;  %v7421_v40 = vmov 0.0|0.0  }
0x27e4   :  { %7400 = vrsqrt.f32 %v4521_v7  ;;  %v4940_v7 = vld [vmem:[%s8465_s16 + $0x48] sm:$0xff]  ;;  %7194 = vmatprep.subr.bf16.mxu1 %v7421_v40  ;;  %7206 = vmatprep.subr.bf16.mxu0 %v7421_v40 }
0x27ee   :  { %v7401_v42 = vpop.eup %7400 }
0x27ef   :  { %v4525_v44 = vmul.f32 %v7401_v42, %v4509_v26  ;;  %v8152_v42 = vpack.c.bf16 %v4940_v7, %v4939_v23  ;;  %v5330_v23 = vld [vmem:[%s8465_s16 + $0xe8] sm:$0xff] }
0x27f1   :  { %v4533_v45 = vmul.f32 %v6304_v36, %v4525_v44  ;;  %v4792_v44 = vld [vmem:[%s8465_s16 + $0x38] sm:$0xff] }
0x27f3   :  { %v4541_v47 = vadd.f32 %v6305_v46, %v4533_v45 }
0x27f5   :  { %6894 = vmatprep.mubr.msk.f32.mxu1 %vm178_vm2, %v4541_v47 }
0x2870   :  { %v4518_v16 = vpop.xlane.xlu1 %4517 }
0x2871   :  { %v4520_v62 = vmul.f32 0.03125, %v4518_v16  ;;  %v5096_v16 = vld [vmem:[%s8465_s16 + $0x88] sm:$0xff] }
0x2873   :  { %v4522_v63 = vadd.f32 1e-05, %v4520_v62 }
0x2875   :  { %7402 = vrsqrt.f32 %v4522_v63 }
0x287f   :  { %v7403_v0 = vpop.eup %7402 }
0x2880   :  { %v4526_v1 = vmul.f32 %v7403_v0, %v4510_v33  ;;  %v4789_v33 = vld [vmem:[%s8465_s16 + $0x20] sm:$0xff] }
0x2881   :  { %v8145_v37 = vpack.c.bf16 %v4790_v34, %v4789_v33  ;;  %v5329_v34 = vld [vmem:[%s8465_s16 + $0xe0] sm:$0xff] }
0x2882   :  { %v4534_v2 = vmul.f32 %v6304_v36, %v4526_v1  ;;  %v4791_v36 = vld [vmem:[%s8465_s16 + $0x30] sm:$0xff]  ;;  %v8198_v1 = vpack.c.bf16 %v4786_v59, %v4785_v57  ;;  %v7237_v7 = vpack.c.bf16 %v5330_v23, %v5329_v34  ;;  %v5415_v57 = vld [vmem:[%s8466_s18 + $0x28] sm:$0xff] }
0x2883   :  { %v8167_v45 = vpack.c.bf16 %v4792_v44, %v4791_v36  ;;  %v5331_v44 = vld [vmem:[%s8465_s16 + $0xf0] sm:$0xff] }
0x2884   :  { %v4542_v61 = vadd.f32 %v6305_v46, %v4534_v2  ;;  %v4941_v46 = vld [vmem:[%s8465_s16 + $0x50] sm:$0xff]  ;;  %v8200_v2 = vpack.c.bf16 %v5096_v16, %v5095_v60  ;;  %v5417_v60 = vld [vmem:[%s8466_s18 + $0x38] sm:$0xff] }
0x2885   :  { %v5416_v59 = vld [vmem:[%s8466_s18 + $0x30] sm:$0xff] }
0x2886   :  { %6895 = vmatmul.mubr.msk.f32.vlgmr.msra.gmra.mrb[54].mxu1 %vm178_vm2, %v4542_v61  ;;  %v8393_v16 = vpack.c.bf16 %v5417_v60, %v5416_v59 }
0x2887   :  { %6924 = vmatprep.mubr.msk.f32.mxu1 %vm7409_vm3, %v7408_v18  ;;  %7196 = vmatpush3.bf16.msra.mxu1 %v8145_v37 }
0x2888   :  { %7197 = vmatprep.subr.bf16.mxu1 %v7421_v40 }
0x288b   :  { %7199 = vmatpush3.bf16.msra.mxu1 %v8167_v45 }
0x288c   :  { %7200 = vmatprep.subr.bf16.mxu1 %v7421_v40 }
0x2959   :  { %v6896_v6 = vpop.f32.mrb[54].mxu1 }
0x295a   :  { %v4634_v8 = vadd.f32 %v6896_v6, %v6311_v5  ;;  %v4628_v9 = vpop.f32.mrb[55].mxu1  ;;  %v5097_v6 = vld [vmem:[%s8465_s16 + $0x90] sm:$0xff] }
0x295b   :  { %v4629_v10 = vadd.f32 %v6311_v5, %v4628_v9  ;;  %v4788_v5 = vld [vmem:[%s8465_s16 + $0x18] sm:$0xff] }
0x295c   :  { %v4638_v12 = vmax.f32 %v4634_v8, 0.0  ;;  %v5098_v8 = vld [vmem:[%s8465_s16 + $0x98] sm:$0xff] }
0x295d   :  { %v4637_v11 = vmax.f32 %v4629_v10, 0.0 }
0x295f   :  { %6913 = vmatprep.mubr.msk.f32.mxu0 %vm2344_vm5, %v4637_v11  ;;  %v8224_v11 = vpack.c.bf16 %v5098_v8, %v5097_v6 }
0x2960   :  { %6914 = vmatmul.mubr.msk.f32.vlgmr.msra.gmra.mrb[52].mxu0 %vm2344_vm5, %v4638_v12  ;;  %v5017_v12 = vld [vmem:[%s8465_s16 + $0x60] sm:$0xff] }
0x2961   :  { %6946 = vmatprep.mubr.msk.f32.mxu0 %vm7409_vm3, %v7408_v18  ;;  %7208 = vmatpush3.bf16.msra.mxu0 %v8152_v42 }
0x2962   :  { %7209 = vmatprep.subr.bf16.mxu0 %v7421_v40 }
0x2a33   :  { %v6915_v35 = vpop.f32.mrb[52].mxu0 }
0x2a34   :  { %v4734_v14 = vadd.f32 %v6915_v35, %v6323_v13  ;;  %v4728_v15 = vpop.f32.mrb[53].mxu0  ;;  %v5251_v35 = vld [vmem:[%s8465_s16 + $0xc0] sm:$0xff] }
0x2a35   :  { %v4729_v19 = vadd.f32 %v6323_v13, %v4728_v15  ;;  %v5018_v13 = vld [vmem:[%s8465_s16 + $0x68] sm:$0xff] }
0x2a36   :  { %v4738_v54 = vadd.f32 %v4734_v14, %v4542_v61  ;;  %v4787_v61 = vld [vmem:[%s8465_s16 + $0x10] sm:$0xff]  ;;  %v5252_v14 = vld [vmem:[%s8465_s16 + $0xc8] sm:$0xff]  ;;  %v8246_v15 = vpack.c.bf16 %v5018_v13, %v5017_v12 }
0x2a37   :  { %v4737_v22 = vadd.f32 %v4729_v19, %v4541_v47  ;;  %v4942_v47 = vld [vmem:[%s8465_s16 + $0x58] sm:$0xff]  ;;  %v8222_v10 = vpack.c.bf16 %v4788_v5, %v4787_v61  ;;  %v8248_v19 = vpack.c.bf16 %v5252_v14, %v5251_v35 }
0x2a38   :  { %v4746_v24 = vsel %vm178_vm2, %v4738_v54, 0.0  ;;  %v8172_v48 = vpack.c.bf16 %v4942_v47, %v4941_v46  ;;  %v5332_v46 = vld [vmem:[%s8465_s16 + $0xf8] sm:$0xff] }
0x2a39   :  { %4747 = vadd.xlane.f32.xlu0 %v4746_v24  ;;  %v4743_v17 = vsel %vm178_vm2, %v4737_v22, 0.0  ;;  %v5020_v24 = vld [vmem:[%s8465_s16 + $0x78] sm:$0xff]  ;;  %v7240_v47 = vpack.c.bf16 %v5332_v46, %v5331_v44 }
0x2a3a   :  { %4744 = vadd.xlane.f32.xlu1 %v4743_v17  ;;  %7211 = vmatpush3.bf16.msra.mxu0 %v8172_v48  ;;  %v5253_v17 = vld [vmem:[%s8465_s16 + $0xd0] sm:$0xff] }
0x2a3b   :  { %7218 = vmatprep.subr.bf16.mxu0 %v7421_v40 }
0x2ac6   :  { %v4748_v25 = vpop.xlane.xlu0 %4747 }
0x2ac7   :  { %v4750_v39 = vmul.f32 0.03125, %v4748_v25  ;;  %v4745_v26 = vpop.xlane.xlu1 %4744  ;;  %v5254_v25 = vld [vmem:[%s8465_s16 + $0xd8] sm:$0xff] }
0x2ac8   :  { %v4749_v27 = vmul.f32 0.03125, %v4745_v26  ;;  %v8270_v26 = vpack.c.bf16 %v5254_v25, %v5253_v17 }
0x2ac9   :  { %v4752_v28 = vsub.f32 %v4738_v54, %v4750_v39  ;;  %v5019_v54 = vld [vmem:[%s8465_s16 + $0x70] sm:$0xff] }
0x2aca   :  { %v4751_v29 = vsub.f32 %v4737_v22, %v4749_v27  ;;  %v7216_v39 = vpack.c.bf16 %v5020_v24, %v5019_v54  ;;  %v5173_v27 = vld [vmem:[%s8465_s16 + $0xa0] sm:$0xff] }
0x2acb   :  { %v4754_v20 = vmul.f32 %v4752_v28, %v4752_v28 }
0x2acc   :  { %v4753_v30 = vmul.f32 %v4751_v29, %v4751_v29 }
0x2acd   :  { %v4758_v32 = vsel %vm178_vm2, %v4754_v20, 0.0  ;;  %v5175_v20 = vld [vmem:[%s8465_s16 + $0xb0] sm:$0xff] }
0x2ace   :  { %v4755_v31 = vsel %vm178_vm2, %v4753_v30, 0.0 }
0x2acf   :  { %4756 = vadd.xlane.f32.xlu1 %v4755_v31 }
0x2ad3   :  { %4759 = vadd.xlane.f32.xlu1 %v4758_v32  ;;  %v5176_v32 = vld [vmem:[%s8465_s16 + $0xb8] sm:$0xff] }
0x2ad4   :  { %v7228_v33 = vpack.c.bf16 %v5176_v32, %v5175_v20 }
0x2b5c   :  { %v4757_v43 = vpop.xlane.xlu1 %4756 }
0x2b5d   :  { %v4761_v49 = vmul.f32 0.03125, %v4757_v43 }
0x2b5f   :  { %v4763_v38 = vadd.f32 1e-05, %v4761_v49 }
0x2b60   :  { %v4760_v50 = vpop.xlane.xlu1 %4759 }
0x2b61   :  { %7404 = vrsqrt.f32 %v4763_v38  ;;  %v4762_v51 = vmul.f32 0.03125, %v4760_v50  ;;  %v5410_v50 = vld [vmem:[%s8466_s18] sm:$0xff] }
0x2b63   :  { %v4764_v52 = vadd.f32 1e-05, %v4762_v51  ;;  %v5411_v51 = vld [vmem:[%s8466_s18 + $0x8] sm:$0xff] }
0x2b65   :  { %7406 = vrsqrt.f32 %v4764_v52  ;;  %v8363_v52 = vpack.c.bf16 %v5411_v51, %v5410_v50 }
0x2b6b   :  { %v7405_v41 = vpop.eup %7404 }
0x2b6c   :  { %v4767_v55 = vmul.f32 %v7405_v41, %v4751_v29  ;;  %v5412_v41 = vld [vmem:[%s8466_s18 + $0x10] sm:$0xff] }
0x2b6e   :  { %v4775_v58 = vmul.f32 %v6328_v53, %v4767_v55 }
0x2b6f   :  { %v7407_v62 = vpop.eup %7406 }
0x2b70   :  { %v8196_v63 = vadd.f32 %v6329_v56, %v4775_v58  ;;  %v4768_v0 = vmul.f32 %v7407_v62, %v4752_v28  ;;  %v5174_v28 = vld [vmem:[%s8465_s16 + $0xa8] sm:$0xff]  ;;  %v25_v62 = vstv %s8467_s19 }
0x2b71   :  { %v7225_v29 = vpack.c.bf16 %v5174_v28, %v5173_v27  ;;  %26 = vst [vmem:[#allocation2] sm:$0x1] %v25_v62 }
0x2b72   :  { %v4776_v3 = vmul.f32 %v6328_v53, %v4768_v0  ;;  %v4794_v4 = vrot.slane %v8196_v63, 1  ;;  %v4943_v21 = vrot.slane %v8196_v63, 2  ;;  %v5099_v22 = vrot.slane %v8196_v63, 4  ;;  %v5413_v53 = vld [vmem:[%s8466_s18 + $0x18] sm:$0xff] }
0x2b73   :  { %v5021_v30 = vrot.slane %v8196_v63, 3  ;;  %v5255_v31 = vrot.slane %v8196_v63, 6  ;;  %v5177_v36 = vrot.slane %v8196_v63, 5  ;;  %v5333_v43 = vrot.slane %v8196_v63, 7 }
0x2b74   :  { %v8216_v9 = vadd.f32 %v6329_v56, %v4776_v3  ;;  %6925 = vmatmul.mubr.msk.f32.vlgmr.msra.gmra.mrb[56].mxu1 %vm178_vm2, %v4794_v4  ;;  %6947 = vmatmul.mubr.msk.f32.vlgmr.msra.gmra.mrb[54].mxu0 %vm178_vm2, %v4943_v21  ;;  %v8373_v55 = vpack.c.bf16 %v5413_v53, %v5412_v41  ;;  %v5414_v56 = vld [vmem:[%s8466_s18 + $0x20] sm:$0xff] }
0x2b75   :  { %7202 = vmatpush3.bf16.msra.mxu1 %v8198_v1  ;;  %7220 = vmatpush3.bf16.msra.mxu0 %v8200_v2  ;;  %v8382_v58 = vpack.c.bf16 %v5415_v57, %v5414_v56  ;;  %v6116_v53 = vld [vmem:[%s8468_s17] sm:$0x1] }
0x2b76   :  { %7203 = vmatprep.subr.bf16.mxu1 %v7421_v40  ;;  %7221 = vmatprep.subr.bf16.mxu0 %v7421_v40  ;;  %v5503_v49 = vrot.slane %v8216_v9, 1  ;;  %v6042_v38 = vrot.slane %v8216_v9, 7  ;;  %v5652_v32 = vrot.slane %v8216_v9, 2 }
0x2b77   :  { %6935 = vmatprep.mubr.msk.f32.mxu1 %vm7409_vm3, %v7408_v18  ;;  %6968 = vmatprep.mubr.msk.f32.mxu0 %vm7409_vm3, %v7408_v18 }
0x2b79   :  { %7205 = vmatpush3.bf16.msra.mxu1 %v8222_v10  ;;  %7223 = vmatpush3.bf16.msra.mxu0 %v8224_v11 }
0x2b7a   :  { %7212 = vmatprep.subr.bf16.mxu1 %v7421_v40  ;;  %7230 = vmatprep.subr.bf16.mxu0 %v7421_v40 }
0x2b7c   :  { %6936 = vmatmul.mubr.msk.f32.vlgmr.msra.gmra.mrb[58].mxu1 %vm178_vm2, %v8196_v63  ;;  %6969 = vmatmul.mubr.msk.f32.vlgmr.msra.gmra.mrb[56].mxu0 %vm178_vm2, %v5099_v22 }
0x2b7d   :  { %7214 = vmatpush3.bf16.msra.mxu1 %v8246_v15  ;;  %7232 = vmatpush3.bf16.msra.mxu0 %v8248_v19 }
0x2b7e   :  { %7215 = vmatprep.subr.bf16.mxu1 %v7421_v40  ;;  %7233 = vmatprep.subr.bf16.mxu0 %v7421_v40 }
0x2b7f   :  { %6957 = vmatprep.mubr.msk.f32.mxu1 %vm7409_vm3, %v7408_v18  ;;  %6990 = vmatprep.mubr.msk.f32.mxu0 %vm7409_vm3, %v7408_v18 }
0x2b81   :  { %7217 = vmatpush3.bf16.msra.mxu1 %v7216_v39  ;;  %7235 = vmatpush3.bf16.msra.mxu0 %v8270_v26 }
0x2b82   :  { %7224 = vmatprep.subr.bf16.mxu1 %v7421_v40  ;;  %7242 = vmatprep.subr.bf16.mxu0 %v7421_v40 }
0x2b84   :  { %6958 = vmatmul.mubr.msk.f32.vlgmr.msra.gmra.mrb[60].mxu1 %vm178_vm2, %v5021_v30  ;;  %6991 = vmatmul.mubr.msk.f32.vlgmr.msra.gmra.mrb[58].mxu0 %vm178_vm2, %v5255_v31 }
0x2b85   :  { %7226 = vmatpush3.bf16.msra.mxu1 %v7225_v29  ;;  %6979 = vmatprep.mubr.msk.f32.mxu1 %vm7409_vm3, %v7408_v18 }
0x2b86   :  { %7227 = vmatprep.subr.bf16.mxu1 %v7421_v40  ;;  %7020 = vmatprep.mubr.msk.f32.mxu0 %vm7409_vm3, %v7408_v18 }
0x2b87   :  { %7244 = vmatpush3.bf16.msra.mxu0 %v8363_v52 }
0x2b88   :  { %7245 = vmatprep.subr.bf16.mxu0 %v7421_v40 }
0x2b89   :  { %7229 = vmatpush3.bf16.msra.mxu1 %v7228_v33 }
0x2b8a   :  { %7236 = vmatprep.subr.bf16.mxu1 %v7421_v40 }
0x2b8b   :  { %7247 = vmatpush3.bf16.msra.mxu0 %v8373_v55 }
0x2b8c   :  { %6980 = vmatmul.mubr.msk.f32.vlgmr.msra.gmra.mrb[62].mxu1 %vm178_vm2, %v5177_v36  ;;  %7248 = vmatprep.subr.bf16.mxu0 %v7421_v40  ;;  %v5418_v36 = vld [vmem:[#allocation2] sm:$0x1] }
0x2b8d   :  { %7238 = vmatpush3.bf16.msra.mxu1 %v7237_v7  ;;  %7001 = vmatprep.mubr.msk.f32.mxu1 %vm7409_vm3, %v7408_v18 }
0x2b8e   :  { %7239 = vmatprep.subr.bf16.mxu1 %v7421_v40 }
0x2b8f   :  { %7250 = vmatpush3.bf16.msra.mxu0 %v8382_v58 }
0x2b90   :  { %7251 = vmatprep.subr.bf16.mxu0 %v7421_v40 }
0x2b91   :  { %7241 = vmatpush3.bf16.msra.mxu1 %v7240_v47 }
0x2b92   :  { %7254 = vmatprep.subr.bf16.mxu1 %v7421_v40 }
0x2b93   :  { %7253 = vmatpush3.bf16.msra.mxu0 %v8393_v16 }
0x2b94   :  { %7002 = vmatmul.mubr.msk.f32.vlgmr.msra.gmra.mrb[64].mxu1 %vm178_vm2, %v5333_v43  ;;  %7266 = vmatprep.subr.bf16.mxu0 %v7421_v40 }
0x2b95   :  { %7256 = vmatpush3.bf16.msra.mxu1 %v8145_v37  ;;  %7031 = vmatprep.mubr.msk.f32.mxu1 %vm7409_vm3, %v7408_v18  ;;  %v5730_v37 = vrot.slane %v8216_v9, 3 }
0x2b96   :  { %7257 = vmatprep.subr.bf16.mxu1 %v7421_v40 }
0x2b99   :  { %7259 = vmatpush3.bf16.msra.mxu1 %v8167_v45  ;;  %v5886_v45 = vrot.slane %v8216_v9, 5 }
0x2b9a   :  { %7260 = vmatprep.subr.bf16.mxu1 %v7421_v40 }
0x2b9c   :  { %7032 = vmatmul.mubr.msk.f32.vlgmr.msra.gmra.mrb[66].mxu1 %vm178_vm2, %v5503_v49 }
0x2b9d   :  { %7262 = vmatpush3.bf16.msra.mxu1 %v8198_v1  ;;  %7042 = vmatprep.mubr.msk.f32.mxu1 %vm7409_vm3, %v7408_v18 }
0x2b9e   :  { %7263 = vmatprep.subr.bf16.mxu1 %v7421_v40 }
0x2ba1   :  { %7265 = vmatpush3.bf16.msra.mxu1 %v8222_v10 }
0x2ba2   :  { %7272 = vmatprep.subr.bf16.mxu1 %v7421_v40 }
0x2ba4   :  { %7043 = vmatmul.mubr.msk.f32.vlgmr.msra.gmra.mrb[68].mxu1 %vm178_vm2, %v8216_v9 }
0x2ba5   :  { %7274 = vmatpush3.bf16.msra.mxu1 %v8246_v15  ;;  %7064 = vmatprep.mubr.msk.f32.mxu1 %vm7409_vm3, %v7408_v18 }
0x2ba6   :  { %7275 = vmatprep.subr.bf16.mxu1 %v7421_v40 }
0x2ba9   :  { %7277 = vmatpush3.bf16.msra.mxu1 %v7216_v39  ;;  %v5407_v39 = vld [vmem:[%s8468_s17] sm:$0x1] }
0x2baa   :  { %7284 = vmatprep.subr.bf16.mxu1 %v7421_v40 }
0x2bac   :  { %7065 = vmatmul.mubr.msk.f32.vlgmr.msra.gmra.mrb[70].mxu1 %vm178_vm2, %v5730_v37 }
0x2bad   :  { %7286 = vmatpush3.bf16.msra.mxu1 %v7225_v29  ;;  %7086 = vmatprep.mubr.msk.f32.mxu1 %vm7409_vm3, %v7408_v18 }
0x2bae   :  { %7287 = vmatprep.subr.bf16.mxu1 %v7421_v40 }
0x2bb1   :  { %7289 = vmatpush3.bf16.msra.mxu1 %v7228_v33 }
0x2bb2   :  { %7296 = vmatprep.subr.bf16.mxu1 %v7421_v40 }
0x2bb4   :  { %7087 = vmatmul.mubr.msk.f32.vlgmr.msra.gmra.mrb[72].mxu1 %vm178_vm2, %v5886_v45 }
0x2bb5   :  { %7298 = vmatpush3.bf16.msra.mxu1 %v7237_v7  ;;  %7108 = vmatprep.mubr.msk.f32.mxu1 %vm7409_vm3, %v7408_v18  ;;  %v5964_v7 = vrot.slane %v8216_v9, 6 }
0x2bb6   :  { %7299 = vmatprep.subr.bf16.mxu1 %v7421_v40 }
0x2bb9   :  { %7301 = vmatpush3.bf16.msra.mxu1 %v7240_v47 }
0x2bbc   :  { %7109 = vmatmul.mubr.msk.f32.vlgmr.msra.gmra.mrb[74].mxu1 %vm178_vm2, %v6042_v38 }
0x2c47   :  { %v4863_v63 = vpop.f32.mrb[56].mxu1  ;;  %v5012_v0 = vpop.f32.mrb[54].mxu0 }
0x2c48   :  { %v6926_v1 = vpop.f32.mrb[57].mxu1  ;;  %v6948_v61 = vpop.f32.mrb[55].mxu0 }
0x2c4f   :  { %v4935_v3 = vpop.f32.mrb[58].mxu1  ;;  %v5168_v4 = vpop.f32.mrb[56].mxu0 }
0x2c50   :  { %v4936_v21 = vadd.f32 %v4935_v3, %v4863_v63  ;;  %v6937_v5 = vpop.f32.mrb[59].mxu1  ;;  %v6970_v6 = vpop.f32.mrb[57].mxu0 }
0x2c52   :  { %v5016_v8 = vadd.f32 %v5012_v0, %v4936_v21 }
0x2c57   :  { %v5090_v10 = vpop.f32.mrb[60].mxu1  ;;  %v5324_v12 = vpop.f32.mrb[58].mxu0 }
0x2c58   :  { %v5094_v13 = vadd.f32 %v5090_v10, %v5016_v8  ;;  %v6959_v35 = vpop.f32.mrb[61].mxu1  ;;  %v6992_v14 = vpop.f32.mrb[59].mxu0 }
0x2c5a   :  { %v5172_v15 = vadd.f32 %v5168_v4, %v5094_v13 }
0x2c5f   :  { %v5246_v54 = vpop.f32.mrb[62].mxu1 }
0x2c60   :  { %v5250_v22 = vadd.f32 %v5246_v54, %v5172_v15  ;;  %v6981_v24 = vpop.f32.mrb[63].mxu1 }
0x2c62   :  { %v5328_v17 = vadd.f32 %v5324_v12, %v5250_v22 }
0x2c67   :  { %v5402_v25 = vpop.f32.mrb[64].mxu1 }
0x2c68   :  { %v5406_v27 = vadd.f32 %v5402_v25, %v5328_v17  ;;  %v7003_v28 = vpop.f32.mrb[65].mxu1 }
0x2c6a   :  { %v5408_v29 = vadd.f32 %v5407_v39, %v5406_v27 }
0x2c6c   :  { %v5409_v30 = vmax.f32 %v5408_v29, 0.0 }
0x2c6e   :  { %7021 = vmatmul.mubr.msk.f32.vlgmr.msra.gmra.mrb[60].mxu0 %vm2344_vm5, %v5409_v30 }
0x2c6f   :  { %7268 = vmatpush3.bf16.msra.mxu0 %v8152_v42  ;;  %v5572_v31 = vpop.f32.mrb[66].mxu1  ;;  %7053 = vmatprep.mubr.msk.f32.mxu0 %vm7409_vm3, %v7408_v18 }
0x2c70   :  { %v7033_v20 = vpop.f32.mrb[67].mxu1  ;;  %7269 = vmatprep.subr.bf16.mxu0 %v7421_v40 }
0x2c73   :  { %7271 = vmatpush3.bf16.msra.mxu0 %v8172_v48  ;;  %v5808_v48 = vrot.slane %v8216_v9, 4 }
0x2c74   :  { %7278 = vmatprep.subr.bf16.mxu0 %v7421_v40 }
0x2c76   :  { %7054 = vmatmul.mubr.msk.f32.vlgmr.msra.gmra.mrb[62].mxu0 %vm178_vm2, %v5652_v32 }
0x2c77   :  { %7280 = vmatpush3.bf16.msra.mxu0 %v8200_v2  ;;  %v5644_v33 = vpop.f32.mrb[68].mxu1  ;;  %7075 = vmatprep.mubr.msk.f32.mxu0 %vm7409_vm3, %v7408_v18 }
0x2c78   :  { %v5645_v42 = vadd.f32 %v5644_v33, %v5572_v31  ;;  %v7044_v34 = vpop.f32.mrb[69].mxu1  ;;  %7281 = vmatprep.subr.bf16.mxu0 %v7421_v40 }
0x2c7b   :  { %7283 = vmatpush3.bf16.msra.mxu0 %v8224_v11 }
0x2c7c   :  { %7290 = vmatprep.subr.bf16.mxu0 %v7421_v40 }
0x2c7e   :  { %7076 = vmatmul.mubr.msk.f32.vlgmr.msra.gmra.mrb[64].mxu0 %vm178_vm2, %v5808_v48 }
0x2c7f   :  { %7292 = vmatpush3.bf16.msra.mxu0 %v8248_v19  ;;  %v5799_v23 = vpop.f32.mrb[70].mxu1  ;;  %7097 = vmatprep.mubr.msk.f32.mxu0 %vm7409_vm3, %v7408_v18 }
0x2c80   :  { %v7066_v2 = vpop.f32.mrb[71].mxu1  ;;  %7293 = vmatprep.subr.bf16.mxu0 %v7421_v40 }
0x2c83   :  { %7295 = vmatpush3.bf16.msra.mxu0 %v8270_v26 }
0x2c84   :  { %7302 = vmatprep.subr.bf16.mxu0 %v7421_v40 }
0x2c86   :  { %7098 = vmatmul.mubr.msk.f32.vlgmr.msra.gmra.mrb[66].mxu0 %vm178_vm2, %v5964_v7 }
0x2c87   :  { %v5955_v11 = vpop.f32.mrb[72].mxu1  ;;  %7304 = vmatpush3.bf16.msra.mxu0 %v8363_v52  ;;  %7127 = vmatprep.mubr.msk.f32.mxu0 %vm7409_vm3, %v7408_v18 }
0x2c88   :  { %v7088_v19 = vpop.f32.mrb[73].mxu1  ;;  %7305 = vmatprep.subr.bf16.mxu0 %v7421_v40 }
0x2c8b   :  { %7307 = vmatpush3.bf16.msra.mxu0 %v8373_v55 }
0x2c8c   :  { %7308 = vmatprep.subr.bf16.mxu0 %v7421_v40 }
0x2c8f   :  { %v6111_v26 = vpop.f32.mrb[74].mxu1  ;;  %7310 = vmatpush3.bf16.msra.mxu0 %v8382_v58  ;;  %v6127_v58 = vld [vmem:[#allocation2] sm:$0x1] }
0x2c90   :  { %v7110_v9 = vpop.f32.mrb[75].mxu1  ;;  %7311 = vmatprep.subr.bf16.mxu0 %v7421_v40 }
0x2c93   :  { %7313 = vmatpush3.bf16.msra.mxu0 %v8393_v16 }
0x2d41   :  { %v5488_v44 = vpop.f32.mrb[60].mxu0 }
0x2d42   :  { %v5489_v46 = vadd.f32 %v5488_v44, %v5418_v36  ;;  %v7022_v18 = vpop.f32.mrb[61].mxu0 }
0x2d44   :  { %5493 = vst.msk [vmem:[%s8469_s20] sm:$0x1] %vm5492_vm6, %v5489_v46 }
0x2d49   :  { %v5721_v47 = vpop.f32.mrb[62].mxu0 }
0x2d4a   :  { %v5725_v43 = vadd.f32 %v5721_v47, %v5645_v42  ;;  %v7055_v49 = vpop.f32.mrb[63].mxu0 }
0x2d4c   :  { %v5803_v37 = vadd.f32 %v5799_v23, %v5725_v43 }
0x2d51   :  { %v5877_v45 = vpop.f32.mrb[64].mxu0 }
0x2d52   :  { %v5881_v38 = vadd.f32 %v5877_v45, %v5803_v37  ;;  %v7077_v50 = vpop.f32.mrb[65].mxu0 }
0x2d54   :  { %v5959_v40 = vadd.f32 %v5955_v11, %v5881_v38 }
0x2d59   :  { %v6033_v51 = vpop.f32.mrb[66].mxu0 }
0x2d5a   :  { %v6037_v52 = vadd.f32 %v6033_v51, %v5959_v40  ;;  %v7099_v41 = vpop.f32.mrb[67].mxu0 }
0x2d5c   :  { %v6115_v55 = vadd.f32 %v6111_v26, %v6037_v52 }
0x2d5e   :  { %v6117_v56 = vadd.f32 %v6116_v53, %v6115_v55 }
0x2d60   :  { %v6118_v57 = vmax.f32 %v6117_v56, 0.0 }
0x2d62   :  { %7128 = vmatmul.mubr.msk.f32.vlgmr.msra.gmra.mrb[68].mxu0 %vm2344_vm5, %v6118_v57 }
0x2e35   :  { %v6197_v59 = vpop.f32.mrb[68].mxu0 }
0x2e36   :  { %v6198_v60 = vadd.f32 %v6197_v59, %v6127_v58  ;;  %v7129_v16 = vpop.f32.mrb[69].mxu0 }
0x2e38   :  { %6201 = vst.msk [vmem:[%s8469_s20 + $0x1] sm:$0x1] %vm5492_vm6, %v6198_v60 }

</bundles_post_ra>
